<compile_context>
chip_gen: v6e
topology: v6e:2x2x1
jax: 0.10.0
libtpu: 0.0.40
codegen_flags: <defaults>
</compile_context>

<pallas_src>
import math
import functools

import jax
import jax.numpy as jnp
from jax.experimental import pallas as pl
from jax.experimental.pallas import tpu as pltpu


def _round_up(x, m):
    return ((x + m - 1) // m) * m


# --------------------------- fused multi-modality kernel ---------------------------

def _fused_gating_kernel(x_ref, rus_ref,
                         tpw_ref, tpb_ref, ws_ref, bs_ref,
                         wgi_ref, bgi_ref, whh_ref, bhhn_ref,
                         mwp_ref, mwh_ref, mb1_ref, mw2_ref, mb2_ref,
                         o_ref, *, seq_len, rows, hidden_dim, num_modalities):
    T, RT, H, M = seq_len, rows, hidden_dim, num_modalities
    NT = T * RT
    E = x_ref.shape[-1]

    # ---- token processor: bf16 MXU matmul over the whole (T*RT) tile ----
    x2 = x_ref[...].reshape(NT, E)                                    # time-major tokens (bf16)
    proc = jnp.maximum(
        jnp.dot(x2, tpw_ref[...], preferred_element_type=jnp.float32) + tpb_ref[...],
        0.0)                                                          # (NT, P) f32

    # ---- RUS attention (collapsed; self-modality column masked in-kernel) ----
    rus = rus_ref[...].reshape(NT, 1 + 2 * M)                         # [U | R(0..M-1) | S(0..M-1)]
    u2 = rus[:, 0:1]
    r2 = rus[:, 1:1 + M]
    s2 = rus[:, 1 + M:1 + 2 * M]
    # ws/bs fold query_proj with key_proj (and 1/sqrt(K)): scores = c_r*R + c_s*S + c_b.
    sc3 = jnp.dot(proc, ws_ref[...], preferred_element_type=jnp.float32) + bs_ref[...]
    scores = sc3[:, 0:1] * r2 + sc3[:, 1:2] * s2 + sc3[:, 2:3]        # (NT, M)
    # Mask the row's own modality column: modality index = (global row) % M.
    local_row = jax.lax.broadcasted_iota(jnp.int32, (NT, M), 0) % RT
    mod_idx = (pl.program_id(0) * RT + local_row) % M
    col_idx = jax.lax.broadcasted_iota(jnp.int32, (NT, M), 1)
    scores = jnp.where(col_idx == mod_idx, -1e30, scores)
    scores = scores - jnp.max(scores, axis=-1, keepdims=True)
    ew = jnp.exp(scores)
    attn = ew * pl.reciprocal(jnp.sum(ew, axis=-1, keepdims=True), approx=False)
    a_r = jnp.sum(attn * r2, axis=-1, keepdims=True)                  # (NT, 1)
    a_s = jnp.sum(attn * s2, axis=-1, keepdims=True)                  # (NT, 1)

    # ---- GRU input projection (value_proj + input proj folded; one MXU dot) ----
    av3 = jnp.concatenate([u2, a_r, a_s], axis=-1)                    # (NT, 3)
    gi = jnp.dot(av3, wgi_ref[...], preferred_element_type=jnp.float32) + bgi_ref[...]
    # (NT, 3H); b_ih and b_hr/b_hz are already folded into bgi.

    # ---- proc-dependent part of the final MLP (does not depend on h -> hoisted) ----
    pm = jnp.dot(proc, mwp_ref[...], preferred_element_type=jnp.float32) + mb1_ref[...]

    whh = whh_ref[...]                                                # (H, 3H)
    mwh = mwh_ref[...]                                                # (H, C2)
    mw2 = mw2_ref[...]                                                # (C2, NE)
    mb2 = mb2_ref[...]                                                # (1, NE)
    bhn = jnp.broadcast_to(bhhn_ref[...], (RT, H))                    # pre-broadcast b_hn once

    # ---- GRU recurrence + fused final MLP (PyTorch gate equations, h0 = 0) ----
    # T is small/static here; for long sequences switch the unroll to lax.fori_loop.
    h = jnp.zeros((RT, H), jnp.float32)
    step_logits = []
    for t in range(T):
        lo = t * RT
        hh = jnp.dot(h, whh, preferred_element_type=jnp.float32)      # one (RT,H)@(H,3H) per step
        rz = jax.nn.sigmoid(gi[lo:lo + RT, 0:2 * H] + hh[:, 0:2 * H])
        r = rz[:, 0:H]
        z = rz[:, H:2 * H]
        n = jnp.tanh(gi[lo:lo + RT, 2 * H:3 * H] + r * (hh[:, 2 * H:3 * H] + bhn))
        h = (1.0 - z) * n + z * h
        hid = jnp.maximum(
            pm[lo:lo + RT, :] + jnp.dot(h, mwh, preferred_element_type=jnp.float32), 0.0)
        step_logits.append(jnp.dot(hid, mw2, preferred_element_type=jnp.float32) + mb2)

    # Lane-dense output block: out[n, t*NE + e].
    o_ref[...] = jnp.concatenate(step_logits, axis=-1).astype(o_ref.dtype)


# ---------------------- single-modality (M <= 1) fused kernel ----------------------

def _token_mlp_kernel(x_ref, tpw_ref, tpb_ref, mwp_ref, mb1_ref, mw2_ref, mb2_ref, o_ref):
    proc = jnp.maximum(
        jnp.dot(x_ref[...], tpw_ref[...], preferred_element_type=jnp.float32) + tpb_ref[...],
        0.0)
    hid = jnp.maximum(
        jnp.dot(proc, mwp_ref[...], preferred_element_type=jnp.float32) + mb1_ref[...],
        0.0)
    o_ref[...] = (jnp.dot(hid, mw2_ref[...], preferred_element_type=jnp.float32)
                  + mb2_ref[...]).astype(o_ref.dtype)


# ----------------------------------- parameters ------------------------------------

def init_params(key, embedding_dim, gru_hidden_dim, token_processed_dim,
                attn_key_dim, attn_value_dim, num_experts):
    def lin(k, fan_in, fan_out):
        k1, k2 = jax.random.split(k)
        bound = 1.0 / math.sqrt(fan_in)
        w = jax.random.uniform(k1, (fan_in, fan_out), jnp.float32, -bound, bound)
        b = jax.random.uniform(k2, (1, fan_out), jnp.float32, -bound, bound)
        return w, b

    keys = jax.random.split(key, 8)
    combined = token_processed_dim + gru_hidden_dim
    p = {}
    p['tp_w'], p['tp_b'] = lin(keys[0], embedding_dim, token_processed_dim)
    p['q_w'], p['q_b'] = lin(keys[1], token_processed_dim, attn_key_dim)
    p['k_w'], p['k_b'] = lin(keys[2], 2, attn_key_dim)
    p['v_w'], p['v_b'] = lin(keys[3], 2, attn_value_dim)
    bound = 1.0 / math.sqrt(gru_hidden_dim)
    kih, khh, kbih, kbhh = jax.random.split(keys[4], 4)
    p['gru_wih'] = jax.random.uniform(kih, (1 + attn_value_dim, 3 * gru_hidden_dim),
                                      jnp.float32, -bound, bound)
    p['gru_whh'] = jax.random.uniform(khh, (gru_hidden_dim, 3 * gru_hidden_dim),
                                      jnp.float32, -bound, bound)
    p['gru_bih'] = jax.random.uniform(kbih, (1, 3 * gru_hidden_dim), jnp.float32, -bound, bound)
    p['gru_bhh'] = jax.random.uniform(kbhh, (1, 3 * gru_hidden_dim), jnp.float32, -bound, bound)
    p['mlp1_w'], p['mlp1_b'] = lin(keys[5], combined, combined // 2)
    p['mlp2_w'], p['mlp2_b'] = lin(keys[6], combined // 2, num_experts)
    return p


# ------------------------------------- forward -------------------------------------

def rus_gating_forward(params, token_embeddings, rus_values, *,
                       gru_hidden_dim, attn_key_dim, num_experts, rows_tile=256):
    B, M, T, E = token_embeddings.shape
    P = params['tp_w'].shape[1]
    C2 = params['mlp1_w'].shape[1]
    H = gru_hidden_dim
    NE = num_experts

    # Split mlp1 so proc / h contributions are two matmuls (no lane-concat in kernel).
    mwp = params['mlp1_w'][:P]
    mwh = params['mlp1_w'][P:]
    mb1, mw2, mb2 = params['mlp1_b'], params['mlp2_w'], params['mlp2_b']

    if M <= 1:
        # RUS temporal context is identically zero -> only the token path matters.
        n_tok = B * M * T
        rt = min(256, _round_up(n_tok, 8))
        n_pad = _round_up(n_tok, rt)
        x2 = token_embeddings.reshape(n_tok, E)
        if n_pad > n_tok:
            x2 = jnp.pad(x2, ((0, n_pad - n_tok), (0, 0)))
        wmap = lambda i: (0, 0)
        logits = pl.pallas_call(
            _token_mlp_kernel,
            out_shape=jax.ShapeDtypeStruct((n_pad, NE), jnp.float32),
            grid_spec=pltpu.PrefetchScalarGridSpec(
                num_scalar_prefetch=0,
                grid=(n_pad // rt,),
                in_specs=[pl.BlockSpec((rt, E), lambda i: (i, 0)),
                          pl.BlockSpec((E, P), wmap),
                          pl.BlockSpec((1, P), wmap),
                          pl.BlockSpec((P, C2), wmap),
                          pl.BlockSpec((1, C2), wmap),
                          pl.BlockSpec((C2, NE), wmap),
                          pl.BlockSpec((1, NE), wmap)],
                out_specs=pl.BlockSpec((rt, NE), lambda i: (i, 0))),
            compiler_params=pltpu.CompilerParams(dimension_semantics=("parallel",)),
        )(x2, params['tp_w'], params['tp_b'], mwp, mb1, mw2, mb2)
        return logits[:n_tok].reshape(B, M, T, NE)

    N = B * M

    # ---- row tiling: multiple of 8 sublanes AND rt*NE a multiple of 128 lanes ----
    row_align = max(8, 128 // math.gcd(NE, 128))
    n_units = -(-N // row_align)
    units = max(1, min(rows_tile // row_align, n_units))
    if n_units >= 2 and units >= n_units:
        units = (n_units + 1) // 2          # keep >= 2 "parallel" grid steps (v7x 2 TCs)
    rt = units * row_align
    G = -(-n_units // units)
    N_pad = G * rt

    # ---- fold tiny projections (exact algebra, done once outside the kernel) ----
    inv_sqrt_k = 1.0 / math.sqrt(attn_key_dim)
    kkb = jnp.concatenate([params['k_w'], params['k_b']], axis=0)           # (3, K)
    ws = (params['q_w'] @ kkb.T) * inv_sqrt_k                               # (P, 3)
    bs = (params['q_b'] @ kkb.T) * inv_sqrt_k                               # (1, 3)
    wih_u = params['gru_wih'][0:1]                                          # (1, 3H)
    wih_v = params['gru_wih'][1:]                                           # (V, 3H)
    w_gi = jnp.concatenate([wih_u,
                            params['v_w'][0:1] @ wih_v,
                            params['v_w'][1:2] @ wih_v], axis=0)            # (3, 3H)
    b_gi = params['v_b'] @ wih_v + params['gru_bih']                        # (1, 3H)
    # Fold the r/z hidden biases (added linearly in the GRU) into b_gi.
    b_gi = b_gi.at[:, :2 * H].add(params['gru_bhh'][:, :2 * H])
    bhh_n = params['gru_bhh'][:, 2 * H:3 * H]                               # (1, H)

    # ---- time-major layouts (T, N, feature); one fused RUS tensor (no gathers) ----
    x_tm = jnp.transpose(token_embeddings.reshape(N, T, E), (1, 0, 2)).astype(jnp.bfloat16)
    u_tm = jnp.transpose(rus_values['U'].reshape(N, T), (1, 0))[..., None]  # (T, N, 1)
    r_tm = jnp.transpose(rus_values['R'], (3, 0, 1, 2)).reshape(T, N, M)    # (T, N, M)
    s_tm = jnp.transpose(rus_values['S'], (3, 0, 1, 2)).reshape(T, N, M)
    rus_tm = jnp.concatenate([u_tm, r_tm, s_tm], axis=-1)                   # (T, N, 1+2M)

    if N_pad > N:
        x_tm = jnp.pad(x_tm, ((0, 0), (0, N_pad - N), (0, 0)))
        rus_tm = jnp.pad(rus_tm, ((0, 0), (0, N_pad - N), (0, 0)))

    F_rus = 1 + 2 * M
    dmap = lambda i: (0, i, 0)
    wmap = lambda i: (0, 0)

    # ---- VMEM budget from the actual per-step footprint (safe on v5e/v6e/v7x) ----
    def _blk_bytes(shape, dtype):
        s = list(shape)
        s[-1] = _round_up(s[-1], 128)
        if len(s) >= 2:
            s[-2] = _round_up(s[-2], 8)
        n = 1
        for d in s:
            n *= d
        return n * jnp.dtype(dtype).itemsize

    nt = T * rt
    inter = nt * (P + 3 * H + C2 + 4 * M + 16) * 4          # proc / gi / pm / score values
    need = (2 * (_blk_bytes((T, rt, E), jnp.bfloat16)
                 + _blk_bytes((T, rt, F_rus), jnp.float32)
                 + _blk_bytes((rt, T * NE), jnp.float32))
            + 2 * inter + (8 << 20))
    vmem_limit = int(min(max(need, 32 << 20), 56 << 20))

    out = pl.pallas_call(
        functools.partial(_fused_gating_kernel, seq_len=T, rows=rt,
                          hidden_dim=H, num_modalities=M),
        out_shape=jax.ShapeDtypeStruct((N_pad, T * NE), jnp.float32),
        grid_spec=pltpu.PrefetchScalarGridSpec(
            num_scalar_prefetch=0,
            grid=(G,),
            in_specs=[pl.BlockSpec((T, rt, E), dmap),
                      pl.BlockSpec((T, rt, F_rus), dmap),
                      pl.BlockSpec((E, P), wmap),
                      pl.BlockSpec((1, P), wmap),
                      pl.BlockSpec((P, 3), wmap),
                      pl.BlockSpec((1, 3), wmap),
                      pl.BlockSpec((3, 3 * H), wmap),
                      pl.BlockSpec((1, 3 * H), wmap),
                      pl.BlockSpec((H, 3 * H), wmap),
                      pl.BlockSpec((1, H), wmap),
                      pl.BlockSpec((P, C2), wmap),
                      pl.BlockSpec((H, C2), wmap),
                      pl.BlockSpec((1, C2), wmap),
                      pl.BlockSpec((C2, NE), wmap),
                      pl.BlockSpec((1, NE), wmap)],
            out_specs=pl.BlockSpec((rt, T * NE), lambda i: (i, 0))),
        compiler_params=pltpu.CompilerParams(
            dimension_semantics=("parallel",),
            vmem_limit_bytes=vmem_limit),
    )(x_tm, rus_tm,
      params['tp_w'].astype(jnp.bfloat16), params['tp_b'], ws, bs, w_gi, b_gi,
      params['gru_whh'], bhh_n,
      mwp, mwh, mb1, mw2, mb2)

    return out[:N].reshape(B, M, T, NE)


# ---------------------------- pure-JAX reference (spec) -----------------------------

def _reference_forward(params, token_embeddings, rus_values, *,
                       gru_hidden_dim, attn_key_dim, num_experts):
    B, M, T, E = token_embeddings.shape
    H = gru_hidden_dim
    proc = jax.nn.relu(token_embeddings @ params['tp_w'] + params['tp_b'][0])
    if M <= 1:
        comb = jnp.concatenate([proc, jnp.zeros((B, M, T, H), proc.dtype)], -1)
    else:
        q = proc @ params['q_w'] + params['q_b'][0]                           # (B,M,T,K)
        other = jnp.array([[j for j in range(M) if j != m] for m in range(M)], jnp.int32)
        R, S, U = rus_values['R'], rus_values['S'], rus_values['U']
        Rm = R[:, jnp.arange(M)[:, None], other, :].transpose(0, 1, 3, 2)     # (B,M,T,M-1)
        Sm = S[:, jnp.arange(M)[:, None], other, :].transpose(0, 1, 3, 2)
        f = jnp.stack([Rm, Sm], axis=-1)                                      # (B,M,T,M-1,2)
        keys = f @ params['k_w'] + params['k_b'][0]
        vals = f @ params['v_w'] + params['v_b'][0]
        scores = jnp.einsum('bmtk,bmtjk->bmtj', q, keys) / math.sqrt(attn_key_dim)
        attn = jax.nn.softmax(scores, axis=-1)
        ctx = jnp.einsum('bmtj,bmtjv->bmtv', attn, vals)
        gru_in = jnp.concatenate([U[..., None], ctx], -1)                     # (B,M,T,1+V)
        x_seq = gru_in.reshape(B * M, T, -1).transpose(1, 0, 2)
        wih, whh = params['gru_wih'], params['gru_whh']
        bih, bhh = params['gru_bih'][0], params['gru_bhh'][0]

        def step(h, x_t):
            gi = x_t @ wih + bih
            gh = h @ whh + bhh
            r = jax.nn.sigmoid(gi[:, :H] + gh[:, :H])
            z = jax.nn.sigmoid(gi[:, H:2 * H] + gh[:, H:2 * H])
            n = jnp.tanh(gi[:, 2 * H:] + r * gh[:, 2 * H:])
            h = (1.0 - z) * n + z * h
            return h, h

        _, hs = jax.lax.scan(step, jnp.zeros((B * M, H), jnp.float32), x_seq)
        hs = hs.transpose(1, 0, 2).reshape(B, M, T, H)
        comb = jnp.concatenate([proc, hs], -1)
    hid = jax.nn.relu(comb @ params['mlp1_w'] + params['mlp1_b'][0])
    return hid @ params['mlp2_w'] + params['mlp2_b'][0]


# --------------------------------------- main ---------------------------------------

if __name__ == "__main__":
    B, M, T = 8, 4, 8
    E, P, H = 32, 32, 32            # embedding / token_processed / gru_hidden
    K, V, NE = 16, 16, 8            # attn_key / attn_value / num_experts

    key = jax.random.PRNGKey(0)
    kp, kx, ku, kr, ks = jax.random.split(key, 5)
    params = init_params(kp, E, H, P, K, V, NE)

    token_embeddings = jax.random.normal(kx, (B, M, T, E), jnp.float32)
    rus_values = {
        'U': jax.random.uniform(ku, (B, M, T), dtype=jnp.float32),
        'R': jax.random.uniform(kr, (B, M, M, T), dtype=jnp.float32),
        'S': jax.random.uniform(ks, (B, M, M, T), dtype=jnp.float32),
    }

    fwd = jax.jit(functools.partial(rus_gating_forward, gru_hidden_dim=H,
                                    attn_key_dim=K, num_experts=NE))
    logits = fwd(params, token_embeddings, rus_values)
    jax.block_until_ready(logits)
    assert logits.shape == (B, M, T, NE)
    assert bool(jnp.all(jnp.isfinite(logits)))

    # Reference check (token embeddings / tp_w rounded through bf16 to mirror the
    # kernel's bf16 MXU operands; everything else f32 like the kernel).
    te_q = token_embeddings.astype(jnp.bfloat16).astype(jnp.float32)
    params_q = dict(params, tp_w=params['tp_w'].astype(jnp.bfloat16).astype(jnp.float32))
    ref = _reference_forward(params_q, te_q, rus_values,
                             gru_hidden_dim=H, attn_key_dim=K, num_experts=NE)
    max_err = float(jnp.max(jnp.abs(logits - ref)))
    assert max_err < 5e-3, max_err

    # Exercise the M <= 1 branch of the module as well (pure f32 path).
    rus_single = {'U': rus_values['U'][:, :1],
                  'R': rus_values['R'][:, :1, :1],
                  'S': rus_values['S'][:, :1, :1]}
    logits_single = rus_gating_forward(params, token_embeddings[:, :1], rus_single,
                                       gru_hidden_dim=H, attn_key_dim=K, num_experts=NE)
    jax.block_until_ready(logits_single)
    assert logits_single.shape == (B, 1, T, NE)
    ref_single = _reference_forward(params, token_embeddings[:, :1], rus_single,
                                    gru_hidden_dim=H, attn_key_dim=K, num_experts=NE)
    assert float(jnp.max(jnp.abs(logits_single - ref_single))) < 5e-3

    print("KERNEL_OK")
</pallas_src>

<mosaic_0001>
module attributes {stable_mosaic.version = 11 : i64} {
  func.func @_fused_gating_kernel(%arg0: i32, %arg1: memref<8x16x32xbf16, #tpu.memory_space<vmem>>, %arg2: memref<8x16x9xf32, #tpu.memory_space<vmem>>, %arg3: memref<32x32xbf16, #tpu.memory_space<vmem>>, %arg4: memref<1x32xf32, #tpu.memory_space<vmem>>, %arg5: memref<32x3xf32, #tpu.memory_space<vmem>>, %arg6: memref<1x3xf32, #tpu.memory_space<vmem>>, %arg7: memref<3x96xf32, #tpu.memory_space<vmem>>, %arg8: memref<1x96xf32, #tpu.memory_space<vmem>>, %arg9: memref<32x96xf32, #tpu.memory_space<vmem>>, %arg10: memref<1x32xf32, #tpu.memory_space<vmem>>, %arg11: memref<32x32xf32, #tpu.memory_space<vmem>>, %arg12: memref<32x32xf32, #tpu.memory_space<vmem>>, %arg13: memref<1x32xf32, #tpu.memory_space<vmem>>, %arg14: memref<32x8xf32, #tpu.memory_space<vmem>>, %arg15: memref<1x8xf32, #tpu.memory_space<vmem>>, %arg16: memref<16x64xf32, #tpu.memory_space<vmem>>) attributes {dimension_semantics = [#tpu.dimension_semantics<parallel>], iteration_bounds = array<i64: 2>, scalar_prefetch = 0 : i64, scratch_operands = 0 : i64, tpu.core_type = #tpu.core_type<tc>, window_params = [{transform_indices = @transform_0, window_bounds = array<i64: 8, 16, 32>}, {transform_indices = @transform_1, window_bounds = array<i64: 8, 16, 9>}, {pipeline_mode = #tpu.pipeline_mode<synchronous>, transform_indices = @transform_2, window_bounds = array<i64: 32, 32>}, {pipeline_mode = #tpu.pipeline_mode<synchronous>, transform_indices = @transform_3, window_bounds = array<i64: 1, 32>}, {pipeline_mode = #tpu.pipeline_mode<synchronous>, transform_indices = @transform_4, window_bounds = array<i64: 32, 3>}, {pipeline_mode = #tpu.pipeline_mode<synchronous>, transform_indices = @transform_5, window_bounds = array<i64: 1, 3>}, {pipeline_mode = #tpu.pipeline_mode<synchronous>, transform_indices = @transform_6, window_bounds = array<i64: 3, 96>}, {pipeline_mode = #tpu.pipeline_mode<synchronous>, transform_indices = @transform_7, window_bounds = array<i64: 1, 96>}, {pipeline_mode = #tpu.pipeline_mode<synchronous>, transform_indices = @transform_8, window_bounds = array<i64: 32, 96>}, {pipeline_mode = #tpu.pipeline_mode<synchronous>, transform_indices = @transform_9, window_bounds = array<i64: 1, 32>}, {pipeline_mode = #tpu.pipeline_mode<synchronous>, transform_indices = @transform_10, window_bounds = array<i64: 32, 32>}, {pipeline_mode = #tpu.pipeline_mode<synchronous>, transform_indices = @transform_11, window_bounds = array<i64: 32, 32>}, {pipeline_mode = #tpu.pipeline_mode<synchronous>, transform_indices = @transform_12, window_bounds = array<i64: 1, 32>}, {pipeline_mode = #tpu.pipeline_mode<synchronous>, transform_indices = @transform_13, window_bounds = array<i64: 32, 8>}, {pipeline_mode = #tpu.pipeline_mode<synchronous>, transform_indices = @transform_14, window_bounds = array<i64: 1, 8>}, {transform_indices = @transform_15, window_bounds = array<i64: 16, 64>}]} {
    %c0 = arith.constant 0 : index
    %c0_0 = arith.constant 0 : index
    %c0_1 = arith.constant 0 : index
    %0 = vector.load %arg1[%c0, %c0_0, %c0_1] : memref<8x16x32xbf16, #tpu.memory_space<vmem>>, vector<8x16x32xbf16>
    %1 = vector.shape_cast %0 : vector<8x16x32xbf16> to vector<128x32xbf16>
    %c0_2 = arith.constant 0 : index
    %c0_3 = arith.constant 0 : index
    %2 = vector.load %arg3[%c0_2, %c0_3] : memref<32x32xbf16, #tpu.memory_space<vmem>>, vector<32x32xbf16>
    %cst = arith.constant dense<0.000000e+00> : vector<128x32xf32>
    %3 = tpu.matmul %1, %2, %cst {dimension_numbers = #tpu.dot_dimension_numbers<[1], [0], [0], [1], [0, 0, 1, 1], [], []>} : vector<128x32xbf16>, vector<32x32xbf16>, vector<128x32xf32> -> vector<128x32xf32>
    %c0_4 = arith.constant 0 : index
    %c0_5 = arith.constant 0 : index
    %4 = vector.load %arg4[%c0_4, %c0_5] : memref<1x32xf32, #tpu.memory_space<vmem>>, vector<1x32xf32>
    %5 = vector.broadcast %4 : vector<1x32xf32> to vector<128x32xf32>
    %6 = arith.addf %3, %5 : vector<128x32xf32>
    %cst_6 = arith.constant 0.000000e+00 : f32
    %7 = vector.broadcast %cst_6 : f32 to vector<128x32xf32>
    %8 = arith.maximumf %6, %7 : vector<128x32xf32>
    %c0_7 = arith.constant 0 : index
    %c0_8 = arith.constant 0 : index
    %c0_9 = arith.constant 0 : index
    %9 = vector.load %arg2[%c0_7, %c0_8, %c0_9] : memref<8x16x9xf32, #tpu.memory_space<vmem>>, vector<8x16x9xf32>
    %10 = vector.shape_cast %9 : vector<8x16x9xf32> to vector<128x9xf32>
    %11 = vector.extract_strided_slice %10 {offsets = [0, 0], sizes = [128, 1], strides = [1, 1]} : vector<128x9xf32> to vector<128x1xf32>
    %12 = vector.extract_strided_slice %10 {offsets = [0, 1], sizes = [128, 4], strides = [1, 1]} : vector<128x9xf32> to vector<128x4xf32>
    %13 = vector.extract_strided_slice %10 {offsets = [0, 5], sizes = [128, 4], strides = [1, 1]} : vector<128x9xf32> to vector<128x4xf32>
    %c0_10 = arith.constant 0 : index
    %c0_11 = arith.constant 0 : index
    %14 = vector.load %arg5[%c0_10, %c0_11] : memref<32x3xf32, #tpu.memory_space<vmem>>, vector<32x3xf32>
    %cst_12 = arith.constant dense<0.000000e+00> : vector<128x3xf32>
    %15 = tpu.matmul %8, %14, %cst_12 {dimension_numbers = #tpu.dot_dimension_numbers<[1], [0], [0], [1], [0, 0, 1, 1], [], []>} : vector<128x32xf32>, vector<32x3xf32>, vector<128x3xf32> -> vector<128x3xf32>
    %c0_13 = arith.constant 0 : index
    %c0_14 = arith.constant 0 : index
    %16 = vector.load %arg6[%c0_13, %c0_14] : memref<1x3xf32, #tpu.memory_space<vmem>>, vector<1x3xf32>
    %17 = vector.broadcast %16 : vector<1x3xf32> to vector<128x3xf32>
    %18 = arith.addf %15, %17 : vector<128x3xf32>
    %19 = vector.extract_strided_slice %18 {offsets = [0, 0], sizes = [128, 1], strides = [1, 1]} : vector<128x3xf32> to vector<128x1xf32>
    %20 = vector.broadcast %19 : vector<128x1xf32> to vector<128x4xf32>
    %21 = arith.mulf %20, %12 : vector<128x4xf32>
    %22 = vector.extract_strided_slice %18 {offsets = [0, 1], sizes = [128, 1], strides = [1, 1]} : vector<128x3xf32> to vector<128x1xf32>
    %23 = vector.broadcast %22 : vector<128x1xf32> to vector<128x4xf32>
    %24 = arith.mulf %23, %13 : vector<128x4xf32>
    %25 = arith.addf %21, %24 : vector<128x4xf32>
    %26 = vector.extract_strided_slice %18 {offsets = [0, 2], sizes = [128, 1], strides = [1, 1]} : vector<128x3xf32> to vector<128x1xf32>
    %27 = vector.broadcast %26 : vector<128x1xf32> to vector<128x4xf32>
    %28 = arith.addf %25, %27 : vector<128x4xf32>
    %29 = tpu.iota {dimensions = array<i32: 0>} : vector<128x4xi32>
    %c16_i32 = arith.constant 16 : i32
    %c0_i32 = arith.constant 0 : i32
    %30 = arith.cmpi eq, %c16_i32, %c0_i32 : i32
    %c1_i32 = arith.constant 1 : i32
    %31 = arith.select %30, %c1_i32, %c16_i32 : i32
    %32 = vector.broadcast %31 : i32 to vector<128x4xi32>
    %33 = arith.remsi %29, %32 : vector<128x4xi32>
    %c0_i32_15 = arith.constant 0 : i32
    %34 = vector.broadcast %c0_i32_15 : i32 to vector<128x4xi32>
    %35 = arith.cmpi ne, %33, %34 : vector<128x4xi32>
    %c0_i32_16 = arith.constant 0 : i32
    %36 = vector.broadcast %c0_i32_16 : i32 to vector<128x4xi32>
    %37 = arith.cmpi slt, %33, %36 : vector<128x4xi32>
    %c0_i32_17 = arith.constant 0 : i32
    %38 = arith.cmpi slt, %31, %c0_i32_17 : i32
    %39 = vector.broadcast %38 : i1 to vector<128x4xi1>
    %40 = vector.broadcast %39 : vector<128x4xi1> to vector<128x4xi1>
    %41 = arith.xori %37, %40 : vector<128x4xi1>
    %42 = arith.andi %41, %35 : vector<128x4xi1>
    %43 = vector.broadcast %31 : i32 to vector<128x4xi32>
    %44 = arith.addi %33, %43 : vector<128x4xi32>
    %45 = arith.select %42, %44, %33 : vector<128x4xi1>, vector<128x4xi32>
    %c16_i32_18 = arith.constant 16 : i32
    %46 = arith.muli %arg0, %c16_i32_18 : i32
    %47 = vector.broadcast %46 : i32 to vector<128x4xi32>
    %48 = arith.addi %47, %45 : vector<128x4xi32>
    %c4_i32 = arith.constant 4 : i32
    %c0_i32_19 = arith.constant 0 : i32
    %49 = arith.cmpi eq, %c4_i32, %c0_i32_19 : i32
    %c1_i32_20 = arith.constant 1 : i32
    %50 = arith.select %49, %c1_i32_20, %c4_i32 : i32
    %51 = vector.broadcast %50 : i32 to vector<128x4xi32>
    %52 = arith.remsi %48, %51 : vector<128x4xi32>
    %c0_i32_21 = arith.constant 0 : i32
    %53 = vector.broadcast %c0_i32_21 : i32 to vector<128x4xi32>
    %54 = arith.cmpi ne, %52, %53 : vector<128x4xi32>
    %c0_i32_22 = arith.constant 0 : i32
    %55 = vector.broadcast %c0_i32_22 : i32 to vector<128x4xi32>
    %56 = arith.cmpi slt, %52, %55 : vector<128x4xi32>
    %c0_i32_23 = arith.constant 0 : i32
    %57 = arith.cmpi slt, %50, %c0_i32_23 : i32
    %58 = vector.broadcast %57 : i1 to vector<128x4xi1>
    %59 = vector.broadcast %58 : vector<128x4xi1> to vector<128x4xi1>
    %60 = arith.xori %56, %59 : vector<128x4xi1>
    %61 = arith.andi %60, %54 : vector<128x4xi1>
    %62 = vector.broadcast %50 : i32 to vector<128x4xi32>
    %63 = arith.addi %52, %62 : vector<128x4xi32>
    %64 = arith.select %61, %63, %52 : vector<128x4xi1>, vector<128x4xi32>
    %65 = tpu.iota {dimensions = array<i32: 1>} : vector<128x4xi32>
    %66 = arith.cmpi eq, %65, %64 : vector<128x4xi32>
    %cst_24 = arith.constant -1.000000e+30 : f32
    %67 = vector.broadcast %cst_24 : f32 to vector<128x4xf32>
    %68 = arith.select %66, %67, %28 : vector<128x4xi1>, vector<128x4xf32>
    %cst_25 = arith.constant dense<0xFF800000> : vector<128xf32>
    %69 = vector.multi_reduction <maximumf>, %68, %cst_25 [1] : vector<128x4xf32> to vector<128xf32>
    %70 = vector.shape_cast %69 : vector<128xf32> to vector<128x1xf32>
    %71 = vector.broadcast %70 : vector<128x1xf32> to vector<128x4xf32>
    %72 = arith.subf %68, %71 : vector<128x4xf32>
    %73 = math.exp %72 : vector<128x4xf32>
    %cst_26 = arith.constant dense<0.000000e+00> : vector<128xf32>
    %74 = vector.multi_reduction <add>, %73, %cst_26 [1] : vector<128x4xf32> to vector<128xf32>
    %75 = vector.shape_cast %74 : vector<128xf32> to vector<128x1xf32>
    %76 = tpu.reciprocal %75 : vector<128x1xf32> -> vector<128x1xf32>
    %77 = vector.broadcast %76 : vector<128x1xf32> to vector<128x4xf32>
    %78 = arith.mulf %73, %77 : vector<128x4xf32>
    %79 = arith.mulf %78, %12 : vector<128x4xf32>
    %cst_27 = arith.constant dense<0.000000e+00> : vector<128xf32>
    %80 = vector.multi_reduction <add>, %79, %cst_27 [1] : vector<128x4xf32> to vector<128xf32>
    %81 = vector.shape_cast %80 : vector<128xf32> to vector<128x1xf32>
    %82 = arith.mulf %78, %13 : vector<128x4xf32>
    %cst_28 = arith.constant dense<0.000000e+00> : vector<128xf32>
    %83 = vector.multi_reduction <add>, %82, %cst_28 [1] : vector<128x4xf32> to vector<128xf32>
    %84 = vector.shape_cast %83 : vector<128xf32> to vector<128x1xf32>
    %85 = tpu.concatenate %11, %81, %84 in 1 : vector<128x1xf32>, vector<128x1xf32>, vector<128x1xf32> -> vector<128x3xf32>
    %c0_29 = arith.constant 0 : index
    %c0_30 = arith.constant 0 : index
    %86 = vector.load %arg7[%c0_29, %c0_30] : memref<3x96xf32, #tpu.memory_space<vmem>>, vector<3x96xf32>
    %cst_31 = arith.constant dense<0.000000e+00> : vector<128x96xf32>
    %87 = tpu.matmul %85, %86, %cst_31 {dimension_numbers = #tpu.dot_dimension_numbers<[1], [0], [0], [1], [0, 0, 1, 1], [], []>} : vector<128x3xf32>, vector<3x96xf32>, vector<128x96xf32> -> vector<128x96xf32>
    %c0_32 = arith.constant 0 : index
    %c0_33 = arith.constant 0 : index
    %88 = vector.load %arg8[%c0_32, %c0_33] : memref<1x96xf32, #tpu.memory_space<vmem>>, vector<1x96xf32>
    %89 = vector.broadcast %88 : vector<1x96xf32> to vector<128x96xf32>
    %90 = arith.addf %87, %89 : vector<128x96xf32>
    %c0_34 = arith.constant 0 : index
    %c0_35 = arith.constant 0 : index
    %91 = vector.load %arg11[%c0_34, %c0_35] : memref<32x32xf32, #tpu.memory_space<vmem>>, vector<32x32xf32>
    %cst_36 = arith.constant dense<0.000000e+00> : vector<128x32xf32>
    %92 = tpu.matmul %8, %91, %cst_36 {dimension_numbers = #tpu.dot_dimension_numbers<[1], [0], [0], [1], [0, 0, 1, 1], [], []>} : vector<128x32xf32>, vector<32x32xf32>, vector<128x32xf32> -> vector<128x32xf32>
    %c0_37 = arith.constant 0 : index
    %c0_38 = arith.constant 0 : index
    %93 = vector.load %arg13[%c0_37, %c0_38] : memref<1x32xf32, #tpu.memory_space<vmem>>, vector<1x32xf32>
    %94 = vector.broadcast %93 : vector<1x32xf32> to vector<128x32xf32>
    %95 = arith.addf %92, %94 : vector<128x32xf32>
    %c0_39 = arith.constant 0 : index
    %c0_40 = arith.constant 0 : index
    %96 = vector.load %arg9[%c0_39, %c0_40] : memref<32x96xf32, #tpu.memory_space<vmem>>, vector<32x96xf32>
    %c0_41 = arith.constant 0 : index
    %c0_42 = arith.constant 0 : index
    %97 = vector.load %arg12[%c0_41, %c0_42] : memref<32x32xf32, #tpu.memory_space<vmem>>, vector<32x32xf32>
    %c0_43 = arith.constant 0 : index
    %c0_44 = arith.constant 0 : index
    %98 = vector.load %arg14[%c0_43, %c0_44] : memref<32x8xf32, #tpu.memory_space<vmem>>, vector<32x8xf32>
    %c0_45 = arith.constant 0 : index
    %c0_46 = arith.constant 0 : index
    %99 = vector.load %arg15[%c0_45, %c0_46] : memref<1x8xf32, #tpu.memory_space<vmem>>, vector<1x8xf32>
    %c0_47 = arith.constant 0 : index
    %c0_48 = arith.constant 0 : index
    %100 = vector.load %arg10[%c0_47, %c0_48] : memref<1x32xf32, #tpu.memory_space<vmem>>, vector<1x32xf32>
    %101 = vector.shape_cast %100 : vector<1x32xf32> to vector<1x32xf32>
    %102 = vector.broadcast %101 : vector<1x32xf32> to vector<16x32xf32>
    %cst_49 = arith.constant 0.000000e+00 : f32
    %103 = vector.broadcast %cst_49 : f32 to vector<16x32xf32>
    %cst_50 = arith.constant dense<0.000000e+00> : vector<16x96xf32>
    %104 = tpu.matmul %103, %96, %cst_50 {dimension_numbers = #tpu.dot_dimension_numbers<[1], [0], [0], [1], [0, 0, 1, 1], [], []>} : vector<16x32xf32>, vector<32x96xf32>, vector<16x96xf32> -> vector<16x96xf32>
    %105 = vector.extract_strided_slice %90 {offsets = [0, 0], sizes = [16, 64], strides = [1, 1]} : vector<128x96xf32> to vector<16x64xf32>
    %106 = vector.extract_strided_slice %104 {offsets = [0, 0], sizes = [16, 64], strides = [1, 1]} : vector<16x96xf32> to vector<16x64xf32>
    %107 = arith.addf %105, %106 : vector<16x64xf32>
    %108 = arith.negf %107 : vector<16x64xf32>
    %109 = math.exp %108 : vector<16x64xf32>
    %cst_51 = arith.constant 1.000000e+00 : f32
    %110 = vector.broadcast %cst_51 : f32 to vector<16x64xf32>
    %111 = arith.addf %110, %109 : vector<16x64xf32>
    %112 = arith.divf %110, %111 : vector<16x64xf32>
    %113 = vector.extract_strided_slice %112 {offsets = [0, 0], sizes = [16, 32], strides = [1, 1]} : vector<16x64xf32> to vector<16x32xf32>
    %114 = vector.extract_strided_slice %112 {offsets = [0, 32], sizes = [16, 32], strides = [1, 1]} : vector<16x64xf32> to vector<16x32xf32>
    %115 = vector.extract_strided_slice %90 {offsets = [0, 64], sizes = [16, 32], strides = [1, 1]} : vector<128x96xf32> to vector<16x32xf32>
    %116 = vector.extract_strided_slice %104 {offsets = [0, 64], sizes = [16, 32], strides = [1, 1]} : vector<16x96xf32> to vector<16x32xf32>
    %117 = arith.addf %116, %102 : vector<16x32xf32>
    %118 = arith.mulf %113, %117 : vector<16x32xf32>
    %119 = arith.addf %115, %118 : vector<16x32xf32>
    %120 = math.tanh %119 : vector<16x32xf32>
    %cst_52 = arith.constant 1.000000e+00 : f32
    %121 = vector.broadcast %cst_52 : f32 to vector<16x32xf32>
    %122 = arith.subf %121, %114 : vector<16x32xf32>
    %123 = arith.mulf %122, %120 : vector<16x32xf32>
    %124 = arith.mulf %114, %103 : vector<16x32xf32>
    %125 = arith.addf %123, %124 : vector<16x32xf32>
    %126 = vector.extract_strided_slice %95 {offsets = [0, 0], sizes = [16, 32], strides = [1, 1]} : vector<128x32xf32> to vector<16x32xf32>
    %cst_53 = arith.constant dense<0.000000e+00> : vector<16x32xf32>
    %127 = tpu.matmul %125, %97, %cst_53 {dimension_numbers = #tpu.dot_dimension_numbers<[1], [0], [0], [1], [0, 0, 1, 1], [], []>} : vector<16x32xf32>, vector<32x32xf32>, vector<16x32xf32> -> vector<16x32xf32>
    %128 = arith.addf %126, %127 : vector<16x32xf32>
    %cst_54 = arith.constant 0.000000e+00 : f32
    %129 = vector.broadcast %cst_54 : f32 to vector<16x32xf32>
    %130 = arith.maximumf %128, %129 : vector<16x32xf32>
    %cst_55 = arith.constant dense<0.000000e+00> : vector<16x8xf32>
    %131 = tpu.matmul %130, %98, %cst_55 {dimension_numbers = #tpu.dot_dimension_numbers<[1], [0], [0], [1], [0, 0, 1, 1], [], []>} : vector<16x32xf32>, vector<32x8xf32>, vector<16x8xf32> -> vector<16x8xf32>
    %132 = vector.broadcast %99 : vector<1x8xf32> to vector<16x8xf32>
    %133 = arith.addf %131, %132 : vector<16x8xf32>
    %cst_56 = arith.constant dense<0.000000e+00> : vector<16x96xf32>
    %134 = tpu.matmul %125, %96, %cst_56 {dimension_numbers = #tpu.dot_dimension_numbers<[1], [0], [0], [1], [0, 0, 1, 1], [], []>} : vector<16x32xf32>, vector<32x96xf32>, vector<16x96xf32> -> vector<16x96xf32>
    %135 = vector.extract_strided_slice %90 {offsets = [16, 0], sizes = [16, 64], strides = [1, 1]} : vector<128x96xf32> to vector<16x64xf32>
    %136 = vector.extract_strided_slice %134 {offsets = [0, 0], sizes = [16, 64], strides = [1, 1]} : vector<16x96xf32> to vector<16x64xf32>
    %137 = arith.addf %135, %136 : vector<16x64xf32>
    %138 = arith.negf %137 : vector<16x64xf32>
    %139 = math.exp %138 : vector<16x64xf32>
    %cst_57 = arith.constant 1.000000e+00 : f32
    %140 = vector.broadcast %cst_57 : f32 to vector<16x64xf32>
    %141 = arith.addf %140, %139 : vector<16x64xf32>
    %142 = arith.divf %140, %141 : vector<16x64xf32>
    %143 = vector.extract_strided_slice %142 {offsets = [0, 0], sizes = [16, 32], strides = [1, 1]} : vector<16x64xf32> to vector<16x32xf32>
    %144 = vector.extract_strided_slice %142 {offsets = [0, 32], sizes = [16, 32], strides = [1, 1]} : vector<16x64xf32> to vector<16x32xf32>
    %145 = vector.extract_strided_slice %90 {offsets = [16, 64], sizes = [16, 32], strides = [1, 1]} : vector<128x96xf32> to vector<16x32xf32>
    %146 = vector.extract_strided_slice %134 {offsets = [0, 64], sizes = [16, 32], strides = [1, 1]} : vector<16x96xf32> to vector<16x32xf32>
    %147 = arith.addf %146, %102 : vector<16x32xf32>
    %148 = arith.mulf %143, %147 : vector<16x32xf32>
    %149 = arith.addf %145, %148 : vector<16x32xf32>
    %150 = math.tanh %149 : vector<16x32xf32>
    %cst_58 = arith.constant 1.000000e+00 : f32
    %151 = vector.broadcast %cst_58 : f32 to vector<16x32xf32>
    %152 = arith.subf %151, %144 : vector<16x32xf32>
    %153 = arith.mulf %152, %150 : vector<16x32xf32>
    %154 = arith.mulf %144, %125 : vector<16x32xf32>
    %155 = arith.addf %153, %154 : vector<16x32xf32>
    %156 = vector.extract_strided_slice %95 {offsets = [16, 0], sizes = [16, 32], strides = [1, 1]} : vector<128x32xf32> to vector<16x32xf32>
    %cst_59 = arith.constant dense<0.000000e+00> : vector<16x32xf32>
    %157 = tpu.matmul %155, %97, %cst_59 {dimension_numbers = #tpu.dot_dimension_numbers<[1], [0], [0], [1], [0, 0, 1, 1], [], []>} : vector<16x32xf32>, vector<32x32xf32>, vector<16x32xf32> -> vector<16x32xf32>
    %158 = arith.addf %156, %157 : vector<16x32xf32>
    %cst_60 = arith.constant 0.000000e+00 : f32
    %159 = vector.broadcast %cst_60 : f32 to vector<16x32xf32>
    %160 = arith.maximumf %158, %159 : vector<16x32xf32>
    %cst_61 = arith.constant dense<0.000000e+00> : vector<16x8xf32>
    %161 = tpu.matmul %160, %98, %cst_61 {dimension_numbers = #tpu.dot_dimension_numbers<[1], [0], [0], [1], [0, 0, 1, 1], [], []>} : vector<16x32xf32>, vector<32x8xf32>, vector<16x8xf32> -> vector<16x8xf32>
    %162 = vector.broadcast %99 : vector<1x8xf32> to vector<16x8xf32>
    %163 = arith.addf %161, %162 : vector<16x8xf32>
    %cst_62 = arith.constant dense<0.000000e+00> : vector<16x96xf32>
    %164 = tpu.matmul %155, %96, %cst_62 {dimension_numbers = #tpu.dot_dimension_numbers<[1], [0], [0], [1], [0, 0, 1, 1], [], []>} : vector<16x32xf32>, vector<32x96xf32>, vector<16x96xf32> -> vector<16x96xf32>
    %165 = vector.extract_strided_slice %90 {offsets = [32, 0], sizes = [16, 64], strides = [1, 1]} : vector<128x96xf32> to vector<16x64xf32>
    %166 = vector.extract_strided_slice %164 {offsets = [0, 0], sizes = [16, 64], strides = [1, 1]} : vector<16x96xf32> to vector<16x64xf32>
    %167 = arith.addf %165, %166 : vector<16x64xf32>
    %168 = arith.negf %167 : vector<16x64xf32>
    %169 = math.exp %168 : vector<16x64xf32>
    %cst_63 = arith.constant 1.000000e+00 : f32
    %170 = vector.broadcast %cst_63 : f32 to vector<16x64xf32>
    %171 = arith.addf %170, %169 : vector<16x64xf32>
    %172 = arith.divf %170, %171 : vector<16x64xf32>
    %173 = vector.extract_strided_slice %172 {offsets = [0, 0], sizes = [16, 32], strides = [1, 1]} : vector<16x64xf32> to vector<16x32xf32>
    %174 = vector.extract_strided_slice %172 {offsets = [0, 32], sizes = [16, 32], strides = [1, 1]} : vector<16x64xf32> to vector<16x32xf32>
    %175 = vector.extract_strided_slice %90 {offsets = [32, 64], sizes = [16, 32], strides = [1, 1]} : vector<128x96xf32> to vector<16x32xf32>
    %176 = vector.extract_strided_slice %164 {offsets = [0, 64], sizes = [16, 32], strides = [1, 1]} : vector<16x96xf32> to vector<16x32xf32>
    %177 = arith.addf %176, %102 : vector<16x32xf32>
    %178 = arith.mulf %173, %177 : vector<16x32xf32>
    %179 = arith.addf %175, %178 : vector<16x32xf32>
    %180 = math.tanh %179 : vector<16x32xf32>
    %cst_64 = arith.constant 1.000000e+00 : f32
    %181 = vector.broadcast %cst_64 : f32 to vector<16x32xf32>
    %182 = arith.subf %181, %174 : vector<16x32xf32>
    %183 = arith.mulf %182, %180 : vector<16x32xf32>
    %184 = arith.mulf %174, %155 : vector<16x32xf32>
    %185 = arith.addf %183, %184 : vector<16x32xf32>
    %186 = vector.extract_strided_slice %95 {offsets = [32, 0], sizes = [16, 32], strides = [1, 1]} : vector<128x32xf32> to vector<16x32xf32>
    %cst_65 = arith.constant dense<0.000000e+00> : vector<16x32xf32>
    %187 = tpu.matmul %185, %97, %cst_65 {dimension_numbers = #tpu.dot_dimension_numbers<[1], [0], [0], [1], [0, 0, 1, 1], [], []>} : vector<16x32xf32>, vector<32x32xf32>, vector<16x32xf32> -> vector<16x32xf32>
    %188 = arith.addf %186, %187 : vector<16x32xf32>
    %cst_66 = arith.constant 0.000000e+00 : f32
    %189 = vector.broadcast %cst_66 : f32 to vector<16x32xf32>
    %190 = arith.maximumf %188, %189 : vector<16x32xf32>
    %cst_67 = arith.constant dense<0.000000e+00> : vector<16x8xf32>
    %191 = tpu.matmul %190, %98, %cst_67 {dimension_numbers = #tpu.dot_dimension_numbers<[1], [0], [0], [1], [0, 0, 1, 1], [], []>} : vector<16x32xf32>, vector<32x8xf32>, vector<16x8xf32> -> vector<16x8xf32>
    %192 = vector.broadcast %99 : vector<1x8xf32> to vector<16x8xf32>
    %193 = arith.addf %191, %192 : vector<16x8xf32>
    %cst_68 = arith.constant dense<0.000000e+00> : vector<16x96xf32>
    %194 = tpu.matmul %185, %96, %cst_68 {dimension_numbers = #tpu.dot_dimension_numbers<[1], [0], [0], [1], [0, 0, 1, 1], [], []>} : vector<16x32xf32>, vector<32x96xf32>, vector<16x96xf32> -> vector<16x96xf32>
    %195 = vector.extract_strided_slice %90 {offsets = [48, 0], sizes = [16, 64], strides = [1, 1]} : vector<128x96xf32> to vector<16x64xf32>
    %196 = vector.extract_strided_slice %194 {offsets = [0, 0], sizes = [16, 64], strides = [1, 1]} : vector<16x96xf32> to vector<16x64xf32>
    %197 = arith.addf %195, %196 : vector<16x64xf32>
    %198 = arith.negf %197 : vector<16x64xf32>
    %199 = math.exp %198 : vector<16x64xf32>
    %cst_69 = arith.constant 1.000000e+00 : f32
    %200 = vector.broadcast %cst_69 : f32 to vector<16x64xf32>
    %201 = arith.addf %200, %199 : vector<16x64xf32>
    %202 = arith.divf %200, %201 : vector<16x64xf32>
    %203 = vector.extract_strided_slice %202 {offsets = [0, 0], sizes = [16, 32], strides = [1, 1]} : vector<16x64xf32> to vector<16x32xf32>
    %204 = vector.extract_strided_slice %202 {offsets = [0, 32], sizes = [16, 32], strides = [1, 1]} : vector<16x64xf32> to vector<16x32xf32>
    %205 = vector.extract_strided_slice %90 {offsets = [48, 64], sizes = [16, 32], strides = [1, 1]} : vector<128x96xf32> to vector<16x32xf32>
    %206 = vector.extract_strided_slice %194 {offsets = [0, 64], sizes = [16, 32], strides = [1, 1]} : vector<16x96xf32> to vector<16x32xf32>
    %207 = arith.addf %206, %102 : vector<16x32xf32>
    %208 = arith.mulf %203, %207 : vector<16x32xf32>
    %209 = arith.addf %205, %208 : vector<16x32xf32>
    %210 = math.tanh %209 : vector<16x32xf32>
    %cst_70 = arith.constant 1.000000e+00 : f32
    %211 = vector.broadcast %cst_70 : f32 to vector<16x32xf32>
    %212 = arith.subf %211, %204 : vector<16x32xf32>
    %213 = arith.mulf %212, %210 : vector<16x32xf32>
    %214 = arith.mulf %204, %185 : vector<16x32xf32>
    %215 = arith.addf %213, %214 : vector<16x32xf32>
    %216 = vector.extract_strided_slice %95 {offsets = [48, 0], sizes = [16, 32], strides = [1, 1]} : vector<128x32xf32> to vector<16x32xf32>
    %cst_71 = arith.constant dense<0.000000e+00> : vector<16x32xf32>
    %217 = tpu.matmul %215, %97, %cst_71 {dimension_numbers = #tpu.dot_dimension_numbers<[1], [0], [0], [1], [0, 0, 1, 1], [], []>} : vector<16x32xf32>, vector<32x32xf32>, vector<16x32xf32> -> vector<16x32xf32>
    %218 = arith.addf %216, %217 : vector<16x32xf32>
    %cst_72 = arith.constant 0.000000e+00 : f32
    %219 = vector.broadcast %cst_72 : f32 to vector<16x32xf32>
    %220 = arith.maximumf %218, %219 : vector<16x32xf32>
    %cst_73 = arith.constant dense<0.000000e+00> : vector<16x8xf32>
    %221 = tpu.matmul %220, %98, %cst_73 {dimension_numbers = #tpu.dot_dimension_numbers<[1], [0], [0], [1], [0, 0, 1, 1], [], []>} : vector<16x32xf32>, vector<32x8xf32>, vector<16x8xf32> -> vector<16x8xf32>
    %222 = vector.broadcast %99 : vector<1x8xf32> to vector<16x8xf32>
    %223 = arith.addf %221, %222 : vector<16x8xf32>
    %cst_74 = arith.constant dense<0.000000e+00> : vector<16x96xf32>
    %224 = tpu.matmul %215, %96, %cst_74 {dimension_numbers = #tpu.dot_dimension_numbers<[1], [0], [0], [1], [0, 0, 1, 1], [], []>} : vector<16x32xf32>, vector<32x96xf32>, vector<16x96xf32> -> vector<16x96xf32>
    %225 = vector.extract_strided_slice %90 {offsets = [64, 0], sizes = [16, 64], strides = [1, 1]} : vector<128x96xf32> to vector<16x64xf32>
    %226 = vector.extract_strided_slice %224 {offsets = [0, 0], sizes = [16, 64], strides = [1, 1]} : vector<16x96xf32> to vector<16x64xf32>
    %227 = arith.addf %225, %226 : vector<16x64xf32>
    %228 = arith.negf %227 : vector<16x64xf32>
    %229 = math.exp %228 : vector<16x64xf32>
    %cst_75 = arith.constant 1.000000e+00 : f32
    %230 = vector.broadcast %cst_75 : f32 to vector<16x64xf32>
    %231 = arith.addf %230, %229 : vector<16x64xf32>
    %232 = arith.divf %230, %231 : vector<16x64xf32>
    %233 = vector.extract_strided_slice %232 {offsets = [0, 0], sizes = [16, 32], strides = [1, 1]} : vector<16x64xf32> to vector<16x32xf32>
    %234 = vector.extract_strided_slice %232 {offsets = [0, 32], sizes = [16, 32], strides = [1, 1]} : vector<16x64xf32> to vector<16x32xf32>
    %235 = vector.extract_strided_slice %90 {offsets = [64, 64], sizes = [16, 32], strides = [1, 1]} : vector<128x96xf32> to vector<16x32xf32>
    %236 = vector.extract_strided_slice %224 {offsets = [0, 64], sizes = [16, 32], strides = [1, 1]} : vector<16x96xf32> to vector<16x32xf32>
    %237 = arith.addf %236, %102 : vector<16x32xf32>
    %238 = arith.mulf %233, %237 : vector<16x32xf32>
    %239 = arith.addf %235, %238 : vector<16x32xf32>
    %240 = math.tanh %239 : vector<16x32xf32>
    %cst_76 = arith.constant 1.000000e+00 : f32
    %241 = vector.broadcast %cst_76 : f32 to vector<16x32xf32>
    %242 = arith.subf %241, %234 : vector<16x32xf32>
    %243 = arith.mulf %242, %240 : vector<16x32xf32>
    %244 = arith.mulf %234, %215 : vector<16x32xf32>
    %245 = arith.addf %243, %244 : vector<16x32xf32>
    %246 = vector.extract_strided_slice %95 {offsets = [64, 0], sizes = [16, 32], strides = [1, 1]} : vector<128x32xf32> to vector<16x32xf32>
    %cst_77 = arith.constant dense<0.000000e+00> : vector<16x32xf32>
    %247 = tpu.matmul %245, %97, %cst_77 {dimension_numbers = #tpu.dot_dimension_numbers<[1], [0], [0], [1], [0, 0, 1, 1], [], []>} : vector<16x32xf32>, vector<32x32xf32>, vector<16x32xf32> -> vector<16x32xf32>
    %248 = arith.addf %246, %247 : vector<16x32xf32>
    %cst_78 = arith.constant 0.000000e+00 : f32
    %249 = vector.broadcast %cst_78 : f32 to vector<16x32xf32>
    %250 = arith.maximumf %248, %249 : vector<16x32xf32>
    %cst_79 = arith.constant dense<0.000000e+00> : vector<16x8xf32>
    %251 = tpu.matmul %250, %98, %cst_79 {dimension_numbers = #tpu.dot_dimension_numbers<[1], [0], [0], [1], [0, 0, 1, 1], [], []>} : vector<16x32xf32>, vector<32x8xf32>, vector<16x8xf32> -> vector<16x8xf32>
    %252 = vector.broadcast %99 : vector<1x8xf32> to vector<16x8xf32>
    %253 = arith.addf %251, %252 : vector<16x8xf32>
    %cst_80 = arith.constant dense<0.000000e+00> : vector<16x96xf32>
    %254 = tpu.matmul %245, %96, %cst_80 {dimension_numbers = #tpu.dot_dimension_numbers<[1], [0], [0], [1], [0, 0, 1, 1], [], []>} : vector<16x32xf32>, vector<32x96xf32>, vector<16x96xf32> -> vector<16x96xf32>
    %255 = vector.extract_strided_slice %90 {offsets = [80, 0], sizes = [16, 64], strides = [1, 1]} : vector<128x96xf32> to vector<16x64xf32>
    %256 = vector.extract_strided_slice %254 {offsets = [0, 0], sizes = [16, 64], strides = [1, 1]} : vector<16x96xf32> to vector<16x64xf32>
    %257 = arith.addf %255, %256 : vector<16x64xf32>
    %258 = arith.negf %257 : vector<16x64xf32>
    %259 = math.exp %258 : vector<16x64xf32>
    %cst_81 = arith.constant 1.000000e+00 : f32
    %260 = vector.broadcast %cst_81 : f32 to vector<16x64xf32>
    %261 = arith.addf %260, %259 : vector<16x64xf32>
    %262 = arith.divf %260, %261 : vector<16x64xf32>
    %263 = vector.extract_strided_slice %262 {offsets = [0, 0], sizes = [16, 32], strides = [1, 1]} : vector<16x64xf32> to vector<16x32xf32>
    %264 = vector.extract_strided_slice %262 {offsets = [0, 32], sizes = [16, 32], strides = [1, 1]} : vector<16x64xf32> to vector<16x32xf32>
    %265 = vector.extract_strided_slice %90 {offsets = [80, 64], sizes = [16, 32], strides = [1, 1]} : vector<128x96xf32> to vector<16x32xf32>
    %266 = vector.extract_strided_slice %254 {offsets = [0, 64], sizes = [16, 32], strides = [1, 1]} : vector<16x96xf32> to vector<16x32xf32>
    %267 = arith.addf %266, %102 : vector<16x32xf32>
    %268 = arith.mulf %263, %267 : vector<16x32xf32>
    %269 = arith.addf %265, %268 : vector<16x32xf32>
    %270 = math.tanh %269 : vector<16x32xf32>
    %cst_82 = arith.constant 1.000000e+00 : f32
    %271 = vector.broadcast %cst_82 : f32 to vector<16x32xf32>
    %272 = arith.subf %271, %264 : vector<16x32xf32>
    %273 = arith.mulf %272, %270 : vector<16x32xf32>
    %274 = arith.mulf %264, %245 : vector<16x32xf32>
    %275 = arith.addf %273, %274 : vector<16x32xf32>
    %276 = vector.extract_strided_slice %95 {offsets = [80, 0], sizes = [16, 32], strides = [1, 1]} : vector<128x32xf32> to vector<16x32xf32>
    %cst_83 = arith.constant dense<0.000000e+00> : vector<16x32xf32>
    %277 = tpu.matmul %275, %97, %cst_83 {dimension_numbers = #tpu.dot_dimension_numbers<[1], [0], [0], [1], [0, 0, 1, 1], [], []>} : vector<16x32xf32>, vector<32x32xf32>, vector<16x32xf32> -> vector<16x32xf32>
    %278 = arith.addf %276, %277 : vector<16x32xf32>
    %cst_84 = arith.constant 0.000000e+00 : f32
    %279 = vector.broadcast %cst_84 : f32 to vector<16x32xf32>
    %280 = arith.maximumf %278, %279 : vector<16x32xf32>
    %cst_85 = arith.constant dense<0.000000e+00> : vector<16x8xf32>
    %281 = tpu.matmul %280, %98, %cst_85 {dimension_numbers = #tpu.dot_dimension_numbers<[1], [0], [0], [1], [0, 0, 1, 1], [], []>} : vector<16x32xf32>, vector<32x8xf32>, vector<16x8xf32> -> vector<16x8xf32>
    %282 = vector.broadcast %99 : vector<1x8xf32> to vector<16x8xf32>
    %283 = arith.addf %281, %282 : vector<16x8xf32>
    %cst_86 = arith.constant dense<0.000000e+00> : vector<16x96xf32>
    %284 = tpu.matmul %275, %96, %cst_86 {dimension_numbers = #tpu.dot_dimension_numbers<[1], [0], [0], [1], [0, 0, 1, 1], [], []>} : vector<16x32xf32>, vector<32x96xf32>, vector<16x96xf32> -> vector<16x96xf32>
    %285 = vector.extract_strided_slice %90 {offsets = [96, 0], sizes = [16, 64], strides = [1, 1]} : vector<128x96xf32> to vector<16x64xf32>
    %286 = vector.extract_strided_slice %284 {offsets = [0, 0], sizes = [16, 64], strides = [1, 1]} : vector<16x96xf32> to vector<16x64xf32>
    %287 = arith.addf %285, %286 : vector<16x64xf32>
    %288 = arith.negf %287 : vector<16x64xf32>
    %289 = math.exp %288 : vector<16x64xf32>
    %cst_87 = arith.constant 1.000000e+00 : f32
    %290 = vector.broadcast %cst_87 : f32 to vector<16x64xf32>
    %291 = arith.addf %290, %289 : vector<16x64xf32>
    %292 = arith.divf %290, %291 : vector<16x64xf32>
    %293 = vector.extract_strided_slice %292 {offsets = [0, 0], sizes = [16, 32], strides = [1, 1]} : vector<16x64xf32> to vector<16x32xf32>
    %294 = vector.extract_strided_slice %292 {offsets = [0, 32], sizes = [16, 32], strides = [1, 1]} : vector<16x64xf32> to vector<16x32xf32>
    %295 = vector.extract_strided_slice %90 {offsets = [96, 64], sizes = [16, 32], strides = [1, 1]} : vector<128x96xf32> to vector<16x32xf32>
    %296 = vector.extract_strided_slice %284 {offsets = [0, 64], sizes = [16, 32], strides = [1, 1]} : vector<16x96xf32> to vector<16x32xf32>
    %297 = arith.addf %296, %102 : vector<16x32xf32>
    %298 = arith.mulf %293, %297 : vector<16x32xf32>
    %299 = arith.addf %295, %298 : vector<16x32xf32>
    %300 = math.tanh %299 : vector<16x32xf32>
    %cst_88 = arith.constant 1.000000e+00 : f32
    %301 = vector.broadcast %cst_88 : f32 to vector<16x32xf32>
    %302 = arith.subf %301, %294 : vector<16x32xf32>
    %303 = arith.mulf %302, %300 : vector<16x32xf32>
    %304 = arith.mulf %294, %275 : vector<16x32xf32>
    %305 = arith.addf %303, %304 : vector<16x32xf32>
    %306 = vector.extract_strided_slice %95 {offsets = [96, 0], sizes = [16, 32], strides = [1, 1]} : vector<128x32xf32> to vector<16x32xf32>
    %cst_89 = arith.constant dense<0.000000e+00> : vector<16x32xf32>
    %307 = tpu.matmul %305, %97, %cst_89 {dimension_numbers = #tpu.dot_dimension_numbers<[1], [0], [0], [1], [0, 0, 1, 1], [], []>} : vector<16x32xf32>, vector<32x32xf32>, vector<16x32xf32> -> vector<16x32xf32>
    %308 = arith.addf %306, %307 : vector<16x32xf32>
    %cst_90 = arith.constant 0.000000e+00 : f32
    %309 = vector.broadcast %cst_90 : f32 to vector<16x32xf32>
    %310 = arith.maximumf %308, %309 : vector<16x32xf32>
    %cst_91 = arith.constant dense<0.000000e+00> : vector<16x8xf32>
    %311 = tpu.matmul %310, %98, %cst_91 {dimension_numbers = #tpu.dot_dimension_numbers<[1], [0], [0], [1], [0, 0, 1, 1], [], []>} : vector<16x32xf32>, vector<32x8xf32>, vector<16x8xf32> -> vector<16x8xf32>
    %312 = vector.broadcast %99 : vector<1x8xf32> to vector<16x8xf32>
    %313 = arith.addf %311, %312 : vector<16x8xf32>
    %cst_92 = arith.constant dense<0.000000e+00> : vector<16x96xf32>
    %314 = tpu.matmul %305, %96, %cst_92 {dimension_numbers = #tpu.dot_dimension_numbers<[1], [0], [0], [1], [0, 0, 1, 1], [], []>} : vector<16x32xf32>, vector<32x96xf32>, vector<16x96xf32> -> vector<16x96xf32>
    %315 = vector.extract_strided_slice %90 {offsets = [112, 0], sizes = [16, 64], strides = [1, 1]} : vector<128x96xf32> to vector<16x64xf32>
    %316 = vector.extract_strided_slice %314 {offsets = [0, 0], sizes = [16, 64], strides = [1, 1]} : vector<16x96xf32> to vector<16x64xf32>
    %317 = arith.addf %315, %316 : vector<16x64xf32>
    %318 = arith.negf %317 : vector<16x64xf32>
    %319 = math.exp %318 : vector<16x64xf32>
    %cst_93 = arith.constant 1.000000e+00 : f32
    %320 = vector.broadcast %cst_93 : f32 to vector<16x64xf32>
    %321 = arith.addf %320, %319 : vector<16x64xf32>
    %322 = arith.divf %320, %321 : vector<16x64xf32>
    %323 = vector.extract_strided_slice %322 {offsets = [0, 0], sizes = [16, 32], strides = [1, 1]} : vector<16x64xf32> to vector<16x32xf32>
    %324 = vector.extract_strided_slice %322 {offsets = [0, 32], sizes = [16, 32], strides = [1, 1]} : vector<16x64xf32> to vector<16x32xf32>
    %325 = vector.extract_strided_slice %90 {offsets = [112, 64], sizes = [16, 32], strides = [1, 1]} : vector<128x96xf32> to vector<16x32xf32>
    %326 = vector.extract_strided_slice %314 {offsets = [0, 64], sizes = [16, 32], strides = [1, 1]} : vector<16x96xf32> to vector<16x32xf32>
    %327 = arith.addf %326, %102 : vector<16x32xf32>
    %328 = arith.mulf %323, %327 : vector<16x32xf32>
    %329 = arith.addf %325, %328 : vector<16x32xf32>
    %330 = math.tanh %329 : vector<16x32xf32>
    %cst_94 = arith.constant 1.000000e+00 : f32
    %331 = vector.broadcast %cst_94 : f32 to vector<16x32xf32>
    %332 = arith.subf %331, %324 : vector<16x32xf32>
    %333 = arith.mulf %332, %330 : vector<16x32xf32>
    %334 = arith.mulf %324, %305 : vector<16x32xf32>
    %335 = arith.addf %333, %334 : vector<16x32xf32>
    %336 = vector.extract_strided_slice %95 {offsets = [112, 0], sizes = [16, 32], strides = [1, 1]} : vector<128x32xf32> to vector<16x32xf32>
    %cst_95 = arith.constant dense<0.000000e+00> : vector<16x32xf32>
    %337 = tpu.matmul %335, %97, %cst_95 {dimension_numbers = #tpu.dot_dimension_numbers<[1], [0], [0], [1], [0, 0, 1, 1], [], []>} : vector<16x32xf32>, vector<32x32xf32>, vector<16x32xf32> -> vector<16x32xf32>
    %338 = arith.addf %336, %337 : vector<16x32xf32>
    %cst_96 = arith.constant 0.000000e+00 : f32
    %339 = vector.broadcast %cst_96 : f32 to vector<16x32xf32>
    %340 = arith.maximumf %338, %339 : vector<16x32xf32>
    %cst_97 = arith.constant dense<0.000000e+00> : vector<16x8xf32>
    %341 = tpu.matmul %340, %98, %cst_97 {dimension_numbers = #tpu.dot_dimension_numbers<[1], [0], [0], [1], [0, 0, 1, 1], [], []>} : vector<16x32xf32>, vector<32x8xf32>, vector<16x8xf32> -> vector<16x8xf32>
    %342 = vector.broadcast %99 : vector<1x8xf32> to vector<16x8xf32>
    %343 = arith.addf %341, %342 : vector<16x8xf32>
    %344 = tpu.concatenate %133, %163, %193, %223, %253, %283, %313, %343 in 1 : vector<16x8xf32>, vector<16x8xf32>, vector<16x8xf32>, vector<16x8xf32>, vector<16x8xf32>, vector<16x8xf32>, vector<16x8xf32>, vector<16x8xf32> -> vector<16x64xf32>
    %c0_98 = arith.constant 0 : index
    %c0_99 = arith.constant 0 : index
    %345 = vector.load %arg16[%c0_98, %c0_99] : memref<16x64xf32, #tpu.memory_space<vmem>>, vector<16x64xf32>
    tpu.vector_store %arg16[%c0_98, %c0_99], %344 {strides = array<i32>} : memref<16x64xf32, #tpu.memory_space<vmem>>, vector<16x64xf32>,
    return
  }
  func.func @transform_0(%arg0: i32) -> (i32, i32, i32) {
    %c0_i32 = arith.constant 0 : i32
    %c0_i32_0 = arith.constant 0 : i32
    %c0_i32_1 = arith.constant 0 : i32
    return %c0_i32, %arg0, %c0_i32_0 : i32, i32, i32
  }
  func.func @transform_1(%arg0: i32) -> (i32, i32, i32) {
    %c0_i32 = arith.constant 0 : i32
    %c0_i32_0 = arith.constant 0 : i32
    %c0_i32_1 = arith.constant 0 : i32
    return %c0_i32, %arg0, %c0_i32_0 : i32, i32, i32
  }
  func.func @transform_2(%arg0: i32) -> (i32, i32) {
    %c0_i32 = arith.constant 0 : i32
    %c0_i32_0 = arith.constant 0 : i32
    %c0_i32_1 = arith.constant 0 : i32
    return %c0_i32, %c0_i32_0 : i32, i32
  }
  func.func @transform_3(%arg0: i32) -> (i32, i32) {
    %c0_i32 = arith.constant 0 : i32
    %c0_i32_0 = arith.constant 0 : i32
    %c0_i32_1 = arith.constant 0 : i32
    return %c0_i32, %c0_i32_0 : i32, i32
  }
  func.func @transform_4(%arg0: i32) -> (i32, i32) {
    %c0_i32 = arith.constant 0 : i32
    %c0_i32_0 = arith.constant 0 : i32
    %c0_i32_1 = arith.constant 0 : i32
    return %c0_i32, %c0_i32_0 : i32, i32
  }
  func.func @transform_5(%arg0: i32) -> (i32, i32) {
    %c0_i32 = arith.constant 0 : i32
    %c0_i32_0 = arith.constant 0 : i32
    %c0_i32_1 = arith.constant 0 : i32
    return %c0_i32, %c0_i32_0 : i32, i32
  }
  func.func @transform_6(%arg0: i32) -> (i32, i32) {
    %c0_i32 = arith.constant 0 : i32
    %c0_i32_0 = arith.constant 0 : i32
    %c0_i32_1 = arith.constant 0 : i32
    return %c0_i32, %c0_i32_0 : i32, i32
  }
  func.func @transform_7(%arg0: i32) -> (i32, i32) {
    %c0_i32 = arith.constant 0 : i32
    %c0_i32_0 = arith.constant 0 : i32
    %c0_i32_1 = arith.constant 0 : i32
    return %c0_i32, %c0_i32_0 : i32, i32
  }
  func.func @transform_8(%arg0: i32) -> (i32, i32) {
    %c0_i32 = arith.constant 0 : i32
    %c0_i32_0 = arith.constant 0 : i32
    %c0_i32_1 = arith.constant 0 : i32
    return %c0_i32, %c0_i32_0 : i32, i32
  }
  func.func @transform_9(%arg0: i32) -> (i32, i32) {
    %c0_i32 = arith.constant 0 : i32
    %c0_i32_0 = arith.constant 0 : i32
    %c0_i32_1 = arith.constant 0 : i32
    return %c0_i32, %c0_i32_0 : i32, i32
  }
  func.func @transform_10(%arg0: i32) -> (i32, i32) {
    %c0_i32 = arith.constant 0 : i32
    %c0_i32_0 = arith.constant 0 : i32
    %c0_i32_1 = arith.constant 0 : i32
    return %c0_i32, %c0_i32_0 : i32, i32
  }
  func.func @transform_11(%arg0: i32) -> (i32, i32) {
    %c0_i32 = arith.constant 0 : i32
    %c0_i32_0 = arith.constant 0 : i32
    %c0_i32_1 = arith.constant 0 : i32
    return %c0_i32, %c0_i32_0 : i32, i32
  }
  func.func @transform_12(%arg0: i32) -> (i32, i32) {
    %c0_i32 = arith.constant 0 : i32
    %c0_i32_0 = arith.constant 0 : i32
    %c0_i32_1 = arith.constant 0 : i32
    return %c0_i32, %c0_i32_0 : i32, i32
  }
  func.func @transform_13(%arg0: i32) -> (i32, i32) {
    %c0_i32 = arith.constant 0 : i32
    %c0_i32_0 = arith.constant 0 : i32
    %c0_i32_1 = arith.constant 0 : i32
    return %c0_i32, %c0_i32_0 : i32, i32
  }
  func.func @transform_14(%arg0: i32) -> (i32, i32) {
    %c0_i32 = arith.constant 0 : i32
    %c0_i32_0 = arith.constant 0 : i32
    %c0_i32_1 = arith.constant 0 : i32
    return %c0_i32, %c0_i32_0 : i32, i32
  }
  func.func @transform_15(%arg0: i32) -> (i32, i32) {
    %c0_i32 = arith.constant 0 : i32
    %c0_i32_0 = arith.constant 0 : i32
    return %arg0, %c0_i32 : i32, i32
  }
}

</mosaic_0001>

<bundles_post_ra>
// kernel: rus_gating_forward.1
= control target key start
LH: loop header
LB: loop body
LE: loop exit
PB: predicated region body
PF: predicated region fallthrough
CT: control target
= control target key end

     0   :  { %s6564_s18 = smov 0   ;;  %s6566_s19 = smov 0   ;;  %s8289_s0 = inlined_call_operand.vmem [shape: bf16[8,32,32], index: 0, kind: input, shape index: {}]   ;;  %s8290_s1 = inlined_call_operand.vmem [shape: f32[8,32,9], index: 1, kind: input, shape index: {}]   ;;  %s8291_s2 = inlined_call_operand.vmem [shape: bf16[32,32], index: 2, kind: input, shape index: {}]   ;;  %s8292_s3 = inlined_call_operand.vmem [shape: f32[1,32], index: 3, kind: input, shape index: {}]   ;;  %s8293_s4 = inlined_call_operand.vmem [shape: f32[32,3], index: 4, kind: input, shape index: {}]   ;;  %s8294_s5 = inlined_call_operand.vmem [shape: f32[1,3], index: 5, kind: input, shape index: {}]   ;;  %s8295_s6 = inlined_call_operand.vmem [shape: f32[3,96], index: 6, kind: input, shape index: {}]   ;;  %s8296_s7 = inlined_call_operand.vmem [shape: f32[1,96], index: 7, kind: input, shape index: {}]   ;;  %s8297_s8 = inlined_call_operand.vmem [shape: f32[32,96], index: 8, kind: input, shape index: {}]   ;;  %s8298_s9 = inlined_call_operand.vmem [shape: f32[1,32], index: 9, kind: input, shape index: {}]   ;;  %s8299_s10 = inlined_call_operand.vmem [shape: f32[32,32], index: 10, kind: input, shape index: {}]   ;;  %s8300_s11 = inlined_call_operand.vmem [shape: f32[32,32], index: 11, kind: input, shape index: {}]   ;;  %s8301_s12 = inlined_call_operand.vmem [shape: f32[1,32], index: 12, kind: input, shape index: {}]   ;;  %s8302_s13 = inlined_call_operand.vmem [shape: f32[32,8], index: 13, kind: input, shape index: {}]   ;;  %s8303_s14 = inlined_call_operand.vmem [shape: f32[1,8], index: 14, kind: input, shape index: {}]   ;;  %s8304_s15 = inlined_call_operand.vmem [shape: f32[32,64], index: 15, kind: output, shape index: {}]  }
   0x1   :  { %s6568_s20 = smov 0  }
   0x2 LB: > { %s5404_s21 = sadd.s32 4294967295, %s6466_s20   ;;  %s6581_s22 = sadd.s32 1, %s6466_s20   ;;  %s6466_s20 = sphi %s6568_s20, %s8360_s20   ;;  %s6462_s19 = sphi %s6566_s19, %s8359_s19   ;;  %s6458_s18 = sphi %s6564_s18, %s8358_s18  }
   0x3   : > { %s29_s23 = ssub.s32 %s6466_s20, %s6581_s22  ;;  %s32_s24 = sadd.s32 1, %s6462_s19 }
   0x4   : > { %p30_p0 = scmp.eq.s32.totalorder %s29_s23, 0  ;;  %p39_p1 = scmp.ne.s32.totalorder %s6462_s19, %s6458_s18 }
   0x5   : > { %p40_p2 = scmp.eq.s32.totalorder %s6466_s20, 0  ;;  %p5407_p4 = scmp.ge.s32.totalorder %s6466_s20, 2 }
   0x6   : > { %s6590_s25 = scalar_select %p30_p0, %s6462_s19, %s32_s24  }
   0x7   : > { %p6592_p3 = por %p40_p2, %p39_p1  ;;  %429 = sbr.rel (%p5407_p4) target bundleno = 32 (0x20), region = 68 }
   0xc   : > { %432 = sbr.rel (!%p6592_p3) target bundleno = 20 (0x14), region = 72  ;;  %s434_s27 = sand.u32 (%p6592_p3), 1, %s6462_s19  }
   0xd   : > { %s5573_s28 = sshll.u32 (%p6592_p3), %s6466_s20, 3  ;;  %s5408_s29 = sshll.u32 (%p6592_p3), %s434_s27, 6 }
   0xe   : > { %s439_s17 = scalar_lea.vmem (%p6592_p3), %s8289_s0, %s5573_s28  ;;  %s436_s23 = scalar_lea.vmem (%p6592_p3), [#allocation2], %s5408_s29 }
   0xf   : > { %v456_v0 = vld [vmem:[%s439_s17] sm:$0xff] (%p6592_p3)   ;;  %v460_v1 = vld [vmem:[%s439_s17 + $0x10] sm:$0xff] (%p6592_p3)  }
  0x10   : > { %v464_v2 = vld [vmem:[%s439_s17 + $0x20] sm:$0xff] (%p6592_p3)   ;;  %457 = vst [vmem:[%s436_s23] sm:$0xff] (%p6592_p3), %v456_v0   ;;  %461 = vst [vmem:[%s436_s23 + $0x8] sm:$0xff] (%p6592_p3), %v460_v1   ;;  %v468_v3 = vld [vmem:[%s439_s17 + $0x30] sm:$0xff] (%p6592_p3)  }
  0x11   : > { %465 = vst [vmem:[%s436_s23 + $0x10] sm:$0xff] %v464_v2   ;;  %v472_v4 = vld [vmem:[%s439_s17 + $0x40] sm:$0xff]   ;;  %v476_v5 = vld [vmem:[%s439_s17 + $0x50] sm:$0xff]   ;;  %469 = vst [vmem:[%s436_s23 + $0x18] sm:$0xff] %v468_v3  }
  0x12   : > { %473 = vst [vmem:[%s436_s23 + $0x20] sm:$0xff] %v472_v4   ;;  %477 = vst [vmem:[%s436_s23 + $0x28] sm:$0xff] %v476_v5   ;;  %v480_v6 = vld [vmem:[%s439_s17 + $0x60] sm:$0xff]   ;;  %v484_v7 = vld [vmem:[%s439_s17 + $0x70] sm:$0xff]  }
  0x13   : > { %481 = vst [vmem:[%s436_s23 + $0x30] sm:$0xff] %v480_v6   ;;  %485 = vst [vmem:[%s436_s23 + $0x38] sm:$0xff] %v484_v7  }
  0x14 PF: > { %543 = sbr.rel (!%p6592_p3) target bundleno = 32 (0x20), region = 113  ;;  %s545_s24 = sand.u32 (%p6592_p3), 1, %s6462_s19  }
  0x15   : > { %s5574_s27 = sshll.u32 (%p6592_p3), %s6466_s20, 4  ;;  %s5411_s28 = sshll.u32 (%p6592_p3), %s545_s24, 7 }
  0x16   : > { %s6611_s16 = scalar_lea.vmem (%p6592_p3), %s8290_s1, %s5574_s27  ;;  %s547_s26 = scalar_lea.vmem (%p6592_p3), [#allocation3], %s5411_s28 }
  0x17   : > { %v609_v8 = vld [vmem:[%s6611_s16] sm:$0xff] (%p6592_p3)  ;;  %v611_v9 = vld [vmem:[%s6611_s16 + $0x8] sm:$0xff] (%p6592_p3) }
  0x18   : > { %v613_v10 = vld [vmem:[%s6611_s16 + $0x20] sm:$0xff] (%p6592_p3)  ;;  %610 = vst [vmem:[%s547_s26] sm:$0xff] (%p6592_p3), %v609_v8  ;;  %612 = vst [vmem:[%s547_s26 + $0x8] sm:$0xff] (%p6592_p3), %v611_v9  ;;  %v615_v11 = vld [vmem:[%s6611_s16 + $0x28] sm:$0xff] (%p6592_p3) }
  0x19   : > { %614 = vst [vmem:[%s547_s26 + $0x10] sm:$0xff] %v613_v10  ;;  %v617_v12 = vld [vmem:[%s6611_s16 + $0x40] sm:$0xff]  ;;  %v619_v13 = vld [vmem:[%s6611_s16 + $0x48] sm:$0xff]  ;;  %616 = vst [vmem:[%s547_s26 + $0x18] sm:$0xff] %v615_v11 }
  0x1a   : > { %618 = vst [vmem:[%s547_s26 + $0x20] sm:$0xff] %v617_v12  ;;  %620 = vst [vmem:[%s547_s26 + $0x28] sm:$0xff] %v619_v13  ;;  %v621_v14 = vld [vmem:[%s6611_s16 + $0x60] sm:$0xff]  ;;  %v623_v15 = vld [vmem:[%s6611_s16 + $0x68] sm:$0xff] }
  0x1b   : > { %v625_v16 = vld [vmem:[%s6611_s16 + $0x80] sm:$0xff]  ;;  %622 = vst [vmem:[%s547_s26 + $0x30] sm:$0xff] %v621_v14  ;;  %624 = vst [vmem:[%s547_s26 + $0x38] sm:$0xff] %v623_v15  ;;  %v627_v17 = vld [vmem:[%s6611_s16 + $0x88] sm:$0xff] }
  0x1c   : > { %626 = vst [vmem:[%s547_s26 + $0x40] sm:$0xff] %v625_v16  ;;  %v629_v18 = vld [vmem:[%s6611_s16 + $0xa0] sm:$0xff]  ;;  %v631_v19 = vld [vmem:[%s6611_s16 + $0xa8] sm:$0xff]  ;;  %628 = vst [vmem:[%s547_s26 + $0x48] sm:$0xff] %v627_v17 }
  0x1d   : > { %630 = vst [vmem:[%s547_s26 + $0x50] sm:$0xff] %v629_v18  ;;  %632 = vst [vmem:[%s547_s26 + $0x58] sm:$0xff] %v631_v19  ;;  %v633_v20 = vld [vmem:[%s6611_s16 + $0xc0] sm:$0xff]  ;;  %v635_v21 = vld [vmem:[%s6611_s16 + $0xc8] sm:$0xff] }
  0x1e   : > { %v637_v22 = vld [vmem:[%s6611_s16 + $0xe0] sm:$0xff]  ;;  %634 = vst [vmem:[%s547_s26 + $0x60] sm:$0xff] %v633_v20  ;;  %636 = vst [vmem:[%s547_s26 + $0x68] sm:$0xff] %v635_v21  ;;  %v639_v23 = vld [vmem:[%s6611_s16 + $0xe8] sm:$0xff] }
  0x1f   : > { %638 = vst [vmem:[%s547_s26 + $0x70] sm:$0xff] %v637_v22  ;;  %640 = vst [vmem:[%s547_s26 + $0x78] sm:$0xff] %v639_v23 }
  0x20 PF: > { %p5414_p5 = scmp.ge.s32.totalorder %s6466_s20, 1  ;;  %p645_p6 = scmp.lt.s32.totalorder %s6466_s20, 3 }
  0x22   : > { %p646_p7 = pnand %p5414_p5, %p645_p6 }
  0x24   : > { %649 = sbr.rel (%p646_p7) target bundleno = 7404 (0x1cec), region = 151 }
  0x29   : > { %v6243_v24 = vld [vmem:[%s8291_s2 + $0x8] sm:$0xff]   ;;  %s652_s24 = sand.u32 1, %s6458_s18   ;;  %v6244_v25 = vld [vmem:[%s8291_s2] sm:$0xff]   ;;  %vm798_vm0 = vcmask 261120   ;;  %v955_v34 = vld [vmem:[%s8293_s4 + $0x18] sm:$0xff]  ;;  %s6471_s16 = smov 127  }
  0x2a   : > { %s5415_s29 = sshll.u32 %s652_s24, 6  ;;  %5786 = vmatprep.subr.bf16.mxu0 %v6243_v24  ;;  %5806 = vmatprep.subr.mxu1 %v955_v34  ;;  %v954_v35 = vld [vmem:[%s8293_s4 + $0x10] sm:$0xff]  ;;  %v953_v36 = vld [vmem:[%s8293_s4 + $0x8] sm:$0xff]  ;;  %v952_v37 = vld [vmem:[%s8293_s4] sm:$0xff]  ;;  %s6472_s18 = smov 123   ;;  %vm2009_vm6 = vcmask 31744  }
  0x2b   : > { %5787 = vmatpush3.bf16.msra.mxu0 %v6243_v24  ;;  %s654_s30 = scalar_lea.vmem [#allocation2], %s5415_s29  ;;  %5807 = vmatpush3.msra.mxu1 %v955_v34  ;;  %v2669_v38 = vld [vmem:[%s8299_s10 + $0x18] sm:$0xff]  ;;  %v6666_v40 = vld [vmem:[%s8292_s3] ss:$0 sm:$0xff]  ;;  %v2668_v53 = vld [vmem:[%s8299_s10 + $0x10] sm:$0xff]  ;;  %s5416_s29 = sshll.u32 %s652_s24, 7 }
  0x2c   : > { %v6245_v26 = vld [vmem:[%s654_s30] sm:$0xff]   ;;  %5788 = vmatprep.subr.bf16.mxu0 %v6244_v25  ;;  %v6246_v27 = vld [vmem:[%s654_s30 + $0x8] sm:$0xff]   ;;  %v6247_v28 = vld [vmem:[%s654_s30 + $0x10] sm:$0xff]   ;;  %5808 = vmatprep.subr.mxu1 %v954_v35  ;;  %s6473_s24 = smov 124   ;;  %s5455_s26 = sshll.u32 %s5404_s21, 4 }
  0x2d   : > { %5790 = vmatprep.mubr.msk.bf16.mxu0 %vm798_vm0, %v6245_v26  ;;  %v6248_v29 = vld [vmem:[%s654_s30 + $0x18] sm:$0xff]   ;;  %v6249_v30 = vld [vmem:[%s654_s30 + $0x20] sm:$0xff]   ;;  %v6250_v31 = vld [vmem:[%s654_s30 + $0x28] sm:$0xff]   ;;  %5809 = vmatpush3.msra.mxu1 %v954_v35  ;;  %s6477_s27 = smov 8   ;;  %s6478_s28 = smov 16  }
  0x2e   : > { %v6251_v32 = vld [vmem:[%s654_s30 + $0x30] sm:$0xff]   ;;  %v6252_v33 = vld [vmem:[%s654_s30 + $0x38] sm:$0xff]   ;;  %5810 = vmatprep.subr.mxu1 %v953_v36  ;;  %v2667_v57 = vld [vmem:[%s8299_s10 + $0x8] sm:$0xff]  ;;  %s6858_s30 = scalar_lea.vmem [#allocation3], %s5416_s29  ;;  %s6476_s29 = smov 96  }
  0x2f   : > { %5789 = vmatpush3.bf16.msra.mxu0 %v6244_v25  ;;  %5811 = vmatpush3.msra.mxu1 %v953_v36  ;;  %v2666_v61 = vld [vmem:[%s8299_s10] sm:$0xff]  ;;  %v6470_v36 = vmov 2   ;;  %s5417_s23 = sshll.u32 %s5404_s21, 1 }
  0x30   : > { %5812 = vmatprep.subr.mxu1 %v952_v37  ;;  %p713_p8 = scmp.lt.s32.totalorder %s5417_s23, 3 }
  0x31   : > { %5813 = vmatpush3.msra.mxu1 %v952_v37 }
  0x32   : > { %5791 = vmatmul.mubr.msk.bf16.vlgmr.msra.gmra.mxu0 %vm798_vm0, %v6246_v27  ;;  %5864 = vmatprep.subr.mxu1 %v2669_v38  ;;  %v6468_v27 = vmov 1   ;;  %s8362_s23 = smov (!%p713_p8, %s5417_s23), 3 }
  0x33   : > { %5794 = vmatprep.mubr.msk.bf16.mxu0 %vm798_vm0, %v6247_v28  ;;  %6200 = vset.pattern.permute.xlu0 %v6468_v27  ;;  %v6469_v28 = vmov 0   ;;  %s5418_s20 = sshll.u32 %s8362_s23, 3 }
  0x34   : > { %6201 = vset.pattern.permute.xlu1 %v6469_v28 }
  0x3a   : > { %5795 = vmatmul.mubr.msk.bf16.gmra.mxu0 %vm798_vm0, %v6248_v29  ;;  %v6760_v29 = vld [vmem:[%s8294_s5] ss:$0 sm:$0xff] }
  0x3b   : > { %5798 = vmatprep.mubr.msk.bf16.mxu0 %vm798_vm0, %v6249_v30 }
  0x42   : > { %5799 = vmatmul.mubr.msk.bf16.gmra.mxu0 %vm798_vm0, %v6250_v31 }
  0x43   : > { %5802 = vmatprep.mubr.msk.bf16.mxu0 %vm798_vm0, %v6251_v32 }
  0x4a   : > { %5803 = vmatmul.mubr.msk.bf16.gmra.mxu0 %vm798_vm0, %v6252_v33 }
  0xf2   : > { %v5792_v39 = vpop.f32.mrf.mxu0 }
  0xf3   : > { %v6673_v45 = vadd.f32 %v5792_v39, %v6666_v40 }
  0xf4   : > { %v857_v41 = vpop.f32.mrf.mxu0 }
  0xf5   : > { %v6669_v42 = vadd.f32 %v6666_v40, %v857_v41  ;;  %v922_v51 = vmax.f32 %v6673_v45, 0.0 }
  0xf6   : > { %v5793_v43 = vpop.f32.mrf.mxu0 }
  0xf7   : > { %v920_v44 = vmax.f32 %v6669_v42, 0.0  ;;  %v6682_v49 = vadd.f32 %v5793_v43, %v6666_v40 }
  0xf8   : > { %v860_v46 = vpop.f32.mrf.mxu0 }
  0xf9   : > { %v6676_v47 = vadd.f32 %v6666_v40, %v860_v46  ;;  %5814 = vmatprep.mubr.msk.f32.mxu1 %vm798_vm0, %v920_v44  ;;  %v923_v58 = vmax.f32 %v6682_v49, 0.0 }
  0xfa   : > { %v5796_v48 = vpop.f32.mrf.mxu0 }
  0xfb   : > { %v921_v50 = vmax.f32 %v6676_v47, 0.0  ;;  %v6696_v55 = vadd.f32 %v5796_v48, %v6666_v40 }
  0xfc   : > { %v873_v52 = vpop.f32.mrf.mxu0 }
  0xfd   : > { %v6690_v54 = vadd.f32 %v6666_v40, %v873_v52  ;;  %5815 = vmatmul.mubr.msk.f32.vlgmr.msra.gmra.mxu1 %vm798_vm0, %v921_v50  ;;  %v926_v0 = vmax.f32 %v6696_v55, 0.0 }
  0xfe   : > { %v5797_v56 = vpop.f32.mrf.mxu0  ;;  %5817 = vmatprep.mubr.msk.f32.mxu1 %vm798_vm0, %v922_v51  ;;  %5865 = vmatpush3.msra.mxu1 %v2669_v38 }
  0xff   : > { %v924_v59 = vmax.f32 %v6690_v54, 0.0  ;;  %5866 = vmatprep.subr.mxu1 %v2668_v53  ;;  %v885_v62 = vadd.f32 %v5797_v56, %v6666_v40  ;;  %v5490_v56 = vld [vmem:[%s8301_s12] ss:$0 sm:$0xff] }
 0x100   : > { %v876_v60 = vpop.f32.mrf.mxu0  ;;  %5867 = vmatpush3.msra.mxu1 %v2668_v53 }
 0x101   : > { %v877_v63 = vadd.f32 %v6666_v40, %v876_v60  ;;  %5818 = vmatmul.mubr.msk.f32.gmra.mxu1 %vm798_vm0, %v923_v58  ;;  %5868 = vmatprep.subr.mxu1 %v2667_v57  ;;  %v927_v4 = vmax.f32 %v885_v62, 0.0 }
 0x102   : > { %v5800_v1 = vpop.f32.mrf.mxu0  ;;  %5820 = vmatprep.mubr.msk.f32.mxu1 %vm798_vm0, %v924_v59  ;;  %5869 = vmatpush3.msra.mxu1 %v2667_v57 }
 0x103   : > { %v925_v2 = vmax.f32 %v877_v63, 0.0  ;;  %5870 = vmatprep.subr.mxu1 %v2666_v61  ;;  %v898_v6 = vadd.f32 %v5800_v1, %v6666_v40 }
 0x104   : > { %v889_v3 = vpop.f32.mrf.mxu0  ;;  %5871 = vmatpush3.msra.mxu1 %v2666_v61 }
 0x105   : > { %v890_v5 = vadd.f32 %v6666_v40, %v889_v3  ;;  %5821 = vmatmul.mubr.msk.f32.gmra.mxu1 %vm798_vm0, %v925_v2  ;;  %v930_v12 = vmax.f32 %v898_v6, 0.0 }
 0x106   : > { %v5801_v7 = vpop.f32.mrf.mxu0  ;;  %5823 = vmatprep.mubr.msk.f32.mxu1 %vm798_vm0, %v926_v0 }
 0x107   : > { %v928_v8 = vmax.f32 %v890_v5, 0.0  ;;  %v901_v10 = vadd.f32 %v5801_v7, %v6666_v40 }
 0x108   : > { %v892_v9 = vpop.f32.mrf.mxu0 }
 0x109   : > { %v893_v11 = vadd.f32 %v6666_v40, %v892_v9  ;;  %5824 = vmatmul.mubr.msk.f32.gmra.mxu1 %vm798_vm0, %v927_v4  ;;  %v931_v16 = vmax.f32 %v901_v10, 0.0 }
 0x10a   : > { %v5804_v13 = vpop.f32.mrf.mxu0  ;;  %5826 = vmatprep.mubr.msk.f32.mxu1 %vm798_vm0, %v928_v8 }
 0x10b   : > { %v929_v14 = vmax.f32 %v893_v11, 0.0  ;;  %v914_v18 = vadd.f32 %v5804_v13, %v6666_v40 }
 0x10c   : > { %v905_v15 = vpop.f32.mrf.mxu0 }
 0x10d   : > { %v906_v17 = vadd.f32 %v6666_v40, %v905_v15  ;;  %5827 = vmatmul.mubr.msk.f32.gmra.mxu1 %vm798_vm0, %v929_v14  ;;  %v934_v24 = vmax.f32 %v914_v18, 0.0 }
 0x10e   : > { %v5805_v19 = vpop.f32.mrf.mxu0  ;;  %5829 = vmatprep.mubr.msk.f32.mxu1 %vm798_vm0, %v930_v12 }
 0x10f   : > { %v932_v20 = vmax.f32 %v906_v17, 0.0  ;;  %v917_v22 = vadd.f32 %v5805_v19, %v6666_v40 }
 0x110   : > { %v908_v21 = vpop.f32.mrf.mxu0 }
 0x111   : > { %v909_v23 = vadd.f32 %v6666_v40, %v908_v21  ;;  %5830 = vmatmul.mubr.msk.f32.gmra.mxu1 %vm798_vm0, %v931_v16  ;;  %v935_v26 = vmax.f32 %v917_v22, 0.0 }
 0x112   : > { %5832 = vmatprep.mubr.msk.f32.mxu1 %vm798_vm0, %v932_v20 }
 0x113   : > { %v933_v25 = vmax.f32 %v909_v23, 0.0 }
 0x115   : > { %5833 = vmatmul.mubr.msk.f32.gmra.mxu1 %vm798_vm0, %v933_v25 }
 0x116   : > { %5835 = vmatprep.mubr.msk.f32.mxu1 %vm798_vm0, %v934_v24 }
 0x119   : > { %5836 = vmatmul.mubr.msk.f32.gmra.mxu1 %vm798_vm0, %v935_v26 }
 0x11a   : > { %5872 = vmatprep.mubr.msk.f32.mxu1 %vm798_vm0, %v920_v44 }
 0x11d   : > { %5873 = vmatmul.mubr.msk.f32.vlgmr.msra.gmra.mxu1 %vm798_vm0, %v921_v50 }
 0x11e   : > { %5875 = vmatprep.mubr.msk.f32.mxu1 %vm798_vm0, %v922_v51 }
 0x121   : > { %5876 = vmatmul.mubr.msk.f32.gmra.mxu1 %vm798_vm0, %v923_v58 }
 0x122   : > { %5878 = vmatprep.mubr.msk.f32.mxu1 %vm798_vm0, %v924_v59 }
 0x125   : > { %5879 = vmatmul.mubr.msk.f32.gmra.mxu1 %vm798_vm0, %v925_v2 }
 0x126   : > { %5881 = vmatprep.mubr.msk.f32.mxu1 %vm798_vm0, %v926_v0 }
 0x129   : > { %5882 = vmatmul.mubr.msk.f32.gmra.mxu1 %vm798_vm0, %v927_v4 }
 0x12a   : > { %5884 = vmatprep.mubr.msk.f32.mxu1 %vm798_vm0, %v928_v8 }
 0x12d   : > { %5885 = vmatmul.mubr.msk.f32.gmra.mxu1 %vm798_vm0, %v929_v14 }
 0x12e   : > { %5887 = vmatprep.mubr.msk.f32.mxu1 %vm798_vm0, %v930_v12 }
 0x131   : > { %5888 = vmatmul.mubr.msk.f32.gmra.mxu1 %vm798_vm0, %v931_v16 }
 0x132   : > { %5890 = vmatprep.mubr.msk.f32.mxu1 %vm798_vm0, %v932_v20 }
 0x135   : > { %5891 = vmatmul.mubr.msk.f32.gmra.mxu1 %vm798_vm0, %v933_v25  ;;  %v6861_v25 = vld [vmem:[%s6858_s30] sm:$0xff] }
 0x136   : > { %5893 = vmatprep.mubr.msk.f32.mxu1 %vm798_vm0, %v934_v24 }
 0x139   : > { %5894 = vmatmul.mubr.msk.f32.gmra.mxu1 %vm798_vm0, %v935_v26  ;;  %v6870_v26 = vld [vmem:[%s6858_s30 + $0x10] sm:$0xff] }
 0x1bd   : > { %v5816_v30 = vpop.f32.mrf.mxu1 }
 0x1be   : > { %v1083_v31 = vadd.f32 %v5816_v30, %v6760_v29 }
 0x1bf   : > { %v1077_v32 = vpop.f32.mrf.mxu1 }
 0x1c0   : > { %1163 = vperm.xlu1 %6201, %v1083_v31   ;;  %1257 = vperm.xlu0 %6200, %v1083_v31   ;;  %v1078_v34 = vadd.f32 %v6760_v29, %v1077_v32 }
 0x1c1   : > { %v5819_v33 = vpop.f32.mrf.mxu1 }
 0x1c2   : > { %v1093_v39 = vadd.f32 %v5819_v33, %v6760_v29 }
 0x1c3   : > { %v1087_v35 = vpop.f32.mrf.mxu1 }
 0x1c4   : > { %6202 = vset.pattern.permute.xlu1 %v6470_v36  ;;  %1253 = vperm.xlu0 %6200, %v1078_v34   ;;  %v1088_v49 = vadd.f32 %v6760_v29, %v1087_v35 }
 0x1c5   : > { %1417 = vperm.xlu1 %6202, %v1083_v31   ;;  %v5822_v37 = vpop.f32.mrf.mxu1  ;;  %v6881_v31 = vld [vmem:[%s6858_s30 + $0x20] sm:$0xff] }
 0x1c6   : > { %v1103_v43 = vadd.f32 %v5822_v37, %v6760_v29 }
 0x1c7   : > { %v1097_v38 = vpop.f32.mrf.mxu1 }
 0x1c8   : > { %6203 = vset.pattern.permute.xlu0 %v6469_v28  ;;  %v1098_v47 = vadd.f32 %v6760_v29, %v1097_v38 }
 0x1c9   : > { %6205 = vset.pattern.permute.xlu1 %v6468_v27  ;;  %v6768_v40 = vpop.f32.mrf.mxu1  ;;  %1158 = vperm.xlu0 %6203, %v1078_v34  }
 0x1ca   : > { %1265 = vperm.xlu1 %6205, %v1093_v39   ;;  %v1113_v15 = vadd.f32 %v6768_v40, %v6760_v29 }
 0x1cb   : > { %v1107_v41 = vpop.f32.mrf.mxu1 }
 0x1cc   : > { %v6794_v54 = vadd.f32 %v6760_v29, %v1107_v41  ;;  %v6917_v41 = vld [vmem:[%s6858_s30 + $0x18] sm:$0xff] }
 0x1cd   : > { %v5828_v42 = vpop.f32.mrf.mxu1  ;;  %6204 = vset.pattern.permute.xlu0 %v6470_v36 }
 0x1ce   : > { %6206 = vset.pattern.permute.xlu1 %v6469_v28  ;;  %1413 = vperm.xlu0 %6204, %v1078_v34   ;;  %v1123_v63 = vadd.f32 %v5828_v42, %v6760_v29  ;;  %v6898_v34 = vld [vmem:[%s6858_s30 + $0x8] sm:$0xff] }
 0x1cf   : > { %1173 = vperm.xlu1 %6206, %v1093_v39   ;;  %v1117_v44 = vpop.f32.mrf.mxu1 }
 0x1d0   : > { %v1118_v5 = vadd.f32 %v6760_v29, %v1117_v44 }
 0x1d1   : > { %v6773_v45 = vpop.f32.mrf.mxu1 }
 0x1d2   : > { %6212 = vset.pattern.permute.xlu0 %v6469_v28  ;;  %v1133_v30 = vadd.f32 %v6773_v45, %v6760_v29 }
 0x1d3   : > { %6207 = vset.pattern.permute.xlu1 %v6470_v36  ;;  %v1127_v46 = vpop.f32.mrf.mxu1  ;;  %1183 = vperm.xlu0 %6212, %v1103_v43  }
 0x1d4   : > { %1425 = vperm.xlu1 %6207, %v1093_v39   ;;  %v1128_v17 = vadd.f32 %v6760_v29, %v1127_v46 }
 0x1d5   : > { %v6778_v48 = vpop.f32.mrf.mxu1 }
 0x1d6   : > { %v1143_v23 = vadd.f32 %v6778_v48, %v6760_v29 }
 0x1d7   : > { %v6781_v50 = vpop.f32.mrf.mxu1  ;;  %6214 = vset.pattern.permute.xlu0 %v6468_v27 }
 0x1d8   : > { %6208 = vset.pattern.permute.xlu1 %v6468_v27  ;;  %1269 = vperm.xlu0 %6214, %v1098_v47   ;;  %v1138_v24 = vadd.f32 %v6760_v29, %v6781_v50 }
 0x1d9   : > { %v6785_v51 = vpop.f32.mrf.mxu1  ;;  %1261 = vperm.xlu1 %6208, %v1088_v49  }
 0x1da   : > { %v1153_v33 = vadd.f32 %v6785_v51, %v6760_v29 }
 0x1db   : > { %v6787_v52 = vpop.f32.mrf.mxu1 }
 0x1dc   : > { %6216 = vset.pattern.permute.xlu0 %v6470_v36  ;;  %v1148_v32 = vadd.f32 %v6760_v29, %v6787_v52 }
 0x1dd   : > { %v6790_v53 = vpop.f32.mrf.mxu1  ;;  %6209 = vset.pattern.permute.xlu1 %v6469_v28  ;;  %1429 = vperm.xlu0 %6216, %v1098_v47  }
 0x1de   : > { %8306 = vst [vmem:[#allocation4_spill] sm:$0xff] %v6790_v53  ;;  %1168 = vperm.xlu1 %6209, %v1088_v49  }
 0x1df   : > { %v6796_v55 = vpop.f32.mrf.mxu1 }
 0x1e0   : > { %8307 = vst [vmem:[#allocation5_spill] sm:$0xff] %v6796_v55 }
 0x1e1   : > { %v5877_v57 = vpop.f32.mrf.mxu1  ;;  %6220 = vset.pattern.permute.xlu0 %v6468_v27 }
 0x1e2   : > { %v6802_v58 = vadd.f32 %v5877_v57, %v5490_v56  ;;  %6210 = vset.pattern.permute.xlu1 %v6470_v36  ;;  %1277 = vperm.xlu0 %6220, %v6794_v54  }
 0x1e3   : > { %v2753_v59 = vpop.f32.mrf.mxu1  ;;  %1421 = vperm.xlu1 %6210, %v1088_v49  }
 0x1e4   : > { %8308 = vst [vmem:[#allocation6_spill] sm:$0xff] %v6802_v58  ;;  %v6806_v60 = vadd.f32 %v5490_v56, %v2753_v59 }
 0x1e5   : > { %v5880_v61 = vpop.f32.mrf.mxu1 }
 0x1e6   : > { %8309 = vst [vmem:[#allocation7_spill] sm:$0xff] %v6806_v60  ;;  %v6808_v62 = vadd.f32 %v5880_v61, %v5490_v56  ;;  %6221 = vset.pattern.permute.xlu0 %v6469_v28 }
 0x1e7   : > { %v2763_v0 = vpop.f32.mrf.mxu1  ;;  %6211 = vset.pattern.permute.xlu1 %v6468_v27  ;;  %1188 = vperm.xlu0 %6221, %v6794_v54  }
 0x1e8   : > { %8310 = vst [vmem:[#allocation8_spill] sm:$0xff] %v6808_v62  ;;  %v6814_v1 = vadd.f32 %v5490_v56, %v2763_v0  ;;  %1273 = vperm.xlu1 %6211, %v1103_v43  }
 0x1e9   : > { %v5883_v2 = vpop.f32.mrf.mxu1 }
 0x1ea   : > { %8311 = vst [vmem:[#allocation9_spill] sm:$0xff] %v6814_v1  ;;  %v6816_v3 = vadd.f32 %v5883_v2, %v5490_v56 }
 0x1eb   : > { %v2773_v4 = vpop.f32.mrf.mxu1  ;;  %1203 = vperm.xlu0 %6221, %v1123_v63  }
 0x1ec   : > { %8312 = vst [vmem:[#allocation10_spill] sm:$0xff] %v6816_v3  ;;  %v6819_v6 = vadd.f32 %v5490_v56, %v2773_v4  ;;  %6213 = vset.pattern.permute.xlu1 %v6470_v36 }
 0x1ed   : > { %1433 = vperm.xlu1 %6213, %v1103_v43   ;;  %v5886_v7 = vpop.f32.mrf.mxu1 }
 0x1ee   : > { %8313 = vst [vmem:[#allocation11_spill] sm:$0xff] %v6819_v6  ;;  %v6822_v8 = vadd.f32 %v5886_v7, %v5490_v56  ;;  %v6962_v7 = vld [vmem:[%s6858_s30 + $0x38] sm:$0xff] }
 0x1ef   : > { %6224 = vset.pattern.permute.xlu0 %v6468_v27  ;;  %v2783_v9 = vpop.f32.mrf.mxu1 }
 0x1f0   : > { %8314 = vst [vmem:[#allocation12_spill] sm:$0xff] %v6822_v8  ;;  %1285 = vperm.xlu0 %6224, %v1118_v5   ;;  %v6825_v10 = vadd.f32 %v5490_v56, %v2783_v9 }
 0x1f1   : > { %6215 = vset.pattern.permute.xlu1 %v6469_v28  ;;  %v5889_v11 = vpop.f32.mrf.mxu1 }
 0x1f2   : > { %8315 = vst [vmem:[#allocation13_spill] sm:$0xff] %v6825_v10  ;;  %1178 = vperm.xlu1 %6215, %v1098_v47   ;;  %v6828_v12 = vadd.f32 %v5889_v11, %v5490_v56 }
 0x1f3   : > { %v2793_v13 = vpop.f32.mrf.mxu1 }
 0x1f4   : > { %8316 = vst [vmem:[#allocation14_spill] sm:$0xff] %v6828_v12  ;;  %6226 = vset.pattern.permute.xlu0 %v6470_v36  ;;  %v6831_v14 = vadd.f32 %v5490_v56, %v2793_v13  ;;  %v6966_v13 = vld [vmem:[%s6858_s30 + $0x30] sm:$0xff] }
 0x1f5   : > { %1445 = vperm.xlu0 %6226, %v1118_v5   ;;  %v5892_v16 = vpop.f32.mrf.mxu1 }
 0x1f6   : > { %8317 = vst [vmem:[#allocation15_spill] sm:$0xff] %v6831_v14  ;;  %6217 = vset.pattern.permute.xlu1 %v6468_v27  ;;  %v6837_v18 = vadd.f32 %v5892_v16, %v5490_v56  ;;  %v7057_v14 = vld [vmem:[%s6858_s30 + $0x78] sm:$0xff] }
 0x1f7   : > { %1281 = vperm.xlu1 %6217, %v1113_v15   ;;  %v2803_v19 = vpop.f32.mrf.mxu1 }
 0x1f8   : > { %8318 = vst [vmem:[#allocation16_spill] sm:$0xff] %v6837_v18  ;;  %v6839_v20 = vadd.f32 %v5490_v56, %v2803_v19 }
 0x1f9   : > { %6230 = vset.pattern.permute.xlu0 %v6468_v27  ;;  %v5895_v21 = vpop.f32.mrf.mxu1 }
 0x1fa   : > { %8319 = vst [vmem:[#allocation17_spill] sm:$0xff] %v6839_v20  ;;  %1293 = vperm.xlu0 %6230, %v1128_v17   ;;  %v6842_v22 = vadd.f32 %v5895_v21, %v5490_v56 }
 0x1fb   : > { %6218 = vset.pattern.permute.xlu1 %v6469_v28 }
 0x1fc   : > { %8320 = vst [vmem:[#allocation18_spill] sm:$0xff] %v6842_v22  ;;  %1193 = vperm.xlu1 %6218, %v1113_v15  }
 0x1fe   : > { %6231 = vset.pattern.permute.xlu0 %v6469_v28 }
 0x1ff   : > { %1208 = vperm.xlu0 %6231, %v1128_v17  }
 0x200   : > { %6219 = vset.pattern.permute.xlu1 %v6470_v36 }
 0x201   : > { %1441 = vperm.xlu1 %6219, %v1113_v15  }
 0x203   : > { %1223 = vperm.xlu0 %6231, %v1143_v23  }
 0x205   : > { %1437 = vperm.xlu1 %6219, %v6794_v54  }
 0x207   : > { %6233 = vset.pattern.permute.xlu0 %v6468_v27 }
 0x208   : > { %1301 = vperm.xlu0 %6233, %v1138_v24  }
 0x209   : > { %6222 = vset.pattern.permute.xlu1 %v6468_v27 }
 0x20a   : > { %1289 = vperm.xlu1 %6222, %v1123_v63  }
 0x20c   : > { %6235 = vset.pattern.permute.xlu0 %v6470_v36 }
 0x20d   : > { %1461 = vperm.xlu0 %6235, %v1138_v24  }
 0x20e   : > { %6223 = vset.pattern.permute.xlu1 %v6470_v36 }
 0x20f   : > { %1449 = vperm.xlu1 %6223, %v1123_v63  }
 0x211   : > { %2202 = vrot.lane.b32.xlu0 %v6861_v25, %s6471_s16 }
 0x212   : > { %6240 = vset.pattern.permute.xlu0 %v6468_v27 }
 0x213   : > { %6225 = vset.pattern.permute.xlu1 %v6469_v28 }
 0x214   : > { %1198 = vperm.xlu1 %6225, %v1118_v5  }
 0x215   : > { %2314 = vrot.lane.b32.xlu0 %v6861_v25, %s6472_s18 }
 0x218   : > { %6227 = vset.pattern.permute.xlu1 %v6468_v27 }
 0x219   : > { %1297 = vperm.xlu1 %6227, %v1133_v30   ;;  %2206 = vrot.lane.b32.xlu0 %v6870_v26, %s6471_s16 }
 0x21d   : > { %6228 = vset.pattern.permute.xlu1 %v6469_v28  ;;  %2318 = vrot.lane.b32.xlu0 %v6870_v26, %s6472_s18 }
 0x21e   : > { %1213 = vperm.xlu1 %6228, %v1133_v30  }
 0x221   : > { %2210 = vrot.lane.b32.xlu0 %v6881_v31, %s6471_s16 }
 0x222   : > { %6229 = vset.pattern.permute.xlu1 %v6470_v36 }
 0x223   : > { %1457 = vperm.xlu1 %6229, %v1133_v30  }
 0x225   : > { %1309 = vperm.xlu0 %6240, %v1148_v32  }
 0x227   : > { %1453 = vperm.xlu1 %6229, %v1128_v17  }
 0x229   : > { %2322 = vrot.lane.b32.xlu0 %v6881_v31, %s6472_s18 }
 0x22a   : > { %6241 = vset.pattern.permute.xlu0 %v6469_v28 }
 0x22b   : > { %6232 = vset.pattern.permute.xlu1 %v6468_v27 }
 0x22c   : > { %1305 = vperm.xlu1 %6232, %v1143_v23  }
 0x22d   : > { %1228 = vperm.xlu0 %6241, %v1148_v32  }
 0x230   : > { %6234 = vset.pattern.permute.xlu1 %v6469_v28 }
 0x231   : > { %1218 = vperm.xlu1 %6234, %v1138_v24   ;;  %6242 = vset.pattern.permute.xlu0 %v6470_v36 }
 0x232   : > { %1469 = vperm.xlu0 %6242, %v1148_v32   ;;  %v6982_v32 = vld [vmem:[%s6858_s30 + $0x48] sm:$0xff] }
 0x235   : > { %6236 = vset.pattern.permute.xlu1 %v6468_v27 }
 0x236   : > { %1313 = vperm.xlu1 %6236, %v1153_v33  }
 0x23a   : > { %6237 = vset.pattern.permute.xlu1 %v6470_v36 }
 0x23b   : > { %v6901_v35 = vpop.permute.xlu1 %1163  ;;  %v1258_v37 = vpop.permute.xlu0 %1257  ;;  %1465 = vperm.xlu1 %6237, %v1143_v23  }
 0x23c   : > { %v1317_v38 = vmul.f32 %v1258_v37, %v6898_v34 }
 0x23e   : > { %1350 = vrot.lane.b32.xlu0 %v1317_v38, %s6473_s24  ;;  %v6986_v38 = vld [vmem:[%s6858_s30 + $0x40] sm:$0xff] }
 0x23f   : > { %2204 = vrot.lane.b32.xlu1 %v6898_v34, %s6471_s16  ;;  %v1254_v27 = vpop.permute.xlu0 %1253 }
 0x240   : > { %v1316_v29 = vmul.f32 %v1254_v27, %v6861_v25  ;;  %v6908_v39 = vpop.permute.xlu1 %1417  ;;  %6238 = vset.pattern.permute.xlu1 %v6469_v28  ;;  %v6928_v28 = vld [vmem:[%s6858_s30 + $0x28] sm:$0xff] }
 0x242   : > { %1348 = vrot.lane.b32.xlu0 %v1316_v29, %s6473_s24  ;;  %v6992_v29 = vld [vmem:[%s6858_s30 + $0x60] sm:$0xff] }
 0x243   : > { %2316 = vrot.lane.b32.xlu1 %v6898_v34, %s6472_s18 }
 0x244   : > { %v6914_v40 = vpop.permute.xlu0 %1158 }
 0x245   : > { %v1266_v42 = vpop.permute.xlu1 %1265  ;;  %v1236_v6 = vmul.f32 %v6914_v40, %v6861_v25 }
 0x246   : > { %v1319_v51 = vmul.f32 %v1266_v42, %v6917_v41 }
 0x247   : > { %2208 = vrot.lane.b32.xlu1 %v6917_v41, %s6471_s16 }
 0x249   : > { %v6921_v43 = vpop.permute.xlu0 %1413 }
 0x24a   : > { %v6923_v44 = vpop.permute.xlu1 %1173 }
 0x24b   : > { %2320 = vrot.lane.b32.xlu1 %v6917_v41, %s6472_s18  ;;  %v1239_v62 = vmul.f32 %v6923_v44, %v6917_v41 }
 0x24e   : > { %v6930_v45 = vpop.permute.xlu0 %1183 }
 0x24f   : > { %v6932_v46 = vpop.permute.xlu1 %1425  ;;  %2212 = vrot.lane.b32.xlu1 %v6928_v28, %s6471_s16  ;;  %v1241_v55 = vmul.f32 %v6930_v45, %v6928_v28 }
 0x253   : > { %1233 = vperm.xlu1 %6238, %v1153_v33   ;;  %v1270_v47 = vpop.permute.xlu0 %1269 }
 0x254   : > { %v1262_v48 = vpop.permute.xlu1 %1261  ;;  %v1320_v63 = vmul.f32 %v1270_v47, %v6881_v31 }
 0x255   : > { %v1318_v54 = vmul.f32 %v1262_v48, %v6870_v26 }
 0x257   : > { %6239 = vset.pattern.permute.xlu1 %v6470_v36 }
 0x258   : > { %1473 = vperm.xlu1 %6239, %v1153_v33   ;;  %v6937_v49 = vpop.permute.xlu0 %1429 }
 0x259   : > { %v6939_v50 = vpop.permute.xlu1 %1168 }
 0x25c   : > { %1354 = vrot.lane.b32.xlu1 %v1319_v51, %s6473_s24 }
 0x25d   : > { %v1278_v52 = vpop.permute.xlu0 %1277 }
 0x25e   : > { %v6944_v56 = vpop.permute.xlu1 %1421  ;;  %v1322_v16 = vmul.f32 %v1278_v52, %v6966_v13 }
 0x260   : > { %1352 = vrot.lane.b32.xlu1 %v1318_v54, %s6473_s24 }
 0x262   : > { %v6947_v57 = vpop.permute.xlu0 %1188 }
 0x263   : > { %v1274_v36 = vpop.permute.xlu1 %1273 }
 0x264   : > { %v1321_v59 = vmul.f32 %v1274_v36, %v6928_v28  ;;  %v7007_v36 = vld [vmem:[%s6858_s30 + $0x58] sm:$0xff] }
 0x266   : > { %1358 = vrot.lane.b32.xlu0 %v1321_v59, %s6473_s24  ;;  %v6951_v61 = vpop.permute.xlu0 %1203 }
 0x268   : > { %v6954_v0 = vpop.permute.xlu1 %1433 }
 0x26a   : > { %1356 = vrot.lane.b32.xlu0 %v1320_v63, %s6473_s24 }
 0x26b   : > { %v1286_v2 = vpop.permute.xlu0 %1285 }
 0x26c   : > { %v1324_v42 = vmul.f32 %v1286_v2, %v6986_v38 }
 0x26d   : > { %v6957_v4 = vpop.permute.xlu1 %1178 }
 0x26e   : > { %v1240_v41 = vmul.f32 %v6957_v4, %v6881_v31  ;;  %v1242_v31 = vmul.f32 %v6947_v57, %v6966_v13 }
 0x270   : > { %v6959_v5 = vpop.permute.xlu0 %1445 }
 0x272   : > { %v1282_v9 = vpop.permute.xlu1 %1281 }
 0x273   : > { %v1323_v11 = vmul.f32 %v1282_v9, %v6962_v7  ;;  %v7015_v9 = vld [vmem:[%s6858_s30 + $0x50] sm:$0xff] }
 0x275   : > { %1362 = vrot.lane.b32.xlu1 %v1323_v11, %s6473_s24  ;;  %v1294_v15 = vpop.permute.xlu0 %1293 }
 0x277   : > { %v6970_v17 = vpop.permute.xlu1 %1193 }
 0x279   : > { %1360 = vrot.lane.b32.xlu1 %v1322_v16, %s6473_s24  ;;  %v1326_v16 = vmul.f32 %v1294_v15, %v7015_v9  ;;  %v7040_v15 = vld [vmem:[%s6858_s30 + $0x68] sm:$0xff] }
 0x27a   : > { %v6973_v19 = vpop.permute.xlu0 %1208 }
 0x27c   : > { %v6975_v21 = vpop.permute.xlu1 %1441 }
 0x27e   : > { %v6977_v23 = vpop.permute.xlu0 %1223 }
 0x280   : > { %v6979_v24 = vpop.permute.xlu1 %1437 }
 0x283   : > { %v1302_v30 = vpop.permute.xlu0 %1301 }
 0x284   : > { %v1328_v48 = vmul.f32 %v1302_v30, %v6992_v29 }
 0x285   : > { %v1290_v33 = vpop.permute.xlu1 %1289 }
 0x286   : > { %v1325_v37 = vmul.f32 %v1290_v33, %v6982_v32 }
 0x288   : > { %1366 = vrot.lane.b32.xlu0 %v1325_v37, %s6473_s24  ;;  %v6989_v27 = vpop.permute.xlu0 %1461 }
 0x28a   : > { %v6995_v47 = vpop.permute.xlu1 %1449 }
 0x28c   : > { %1364 = vrot.lane.b32.xlu0 %v1324_v42, %s6473_s24  ;;  %v6999_v51 = vpop.permute.xlu0 %2202  ;;  %v7031_v42 = vld [vmem:[%s6858_s30 + $0x70] sm:$0xff] }
 0x28f   : > { %v7001_v52 = vpop.permute.xlu1 %1198 }
 0x290   : > { %1372 = vrot.lane.b32.xlu0 %v1328_v48, %s6473_s24  ;;  %v7004_v54 = vpop.permute.xlu0 %2314 }
 0x294   : > { %v1298_v59 = vpop.permute.xlu1 %1297  ;;  %v7009_v63 = vpop.permute.xlu0 %2206  ;;  %2214 = vrot.lane.b32.xlu0 %v6966_v13, %s6471_s16 }
 0x295   : > { %v1327_v2 = vmul.f32 %v1298_v59, %v7007_v36 }
 0x297   : > { %1370 = vrot.lane.b32.xlu1 %v1327_v2, %s6473_s24 }
 0x298   : > { %v7018_v11 = vpop.permute.xlu0 %2318  ;;  %2326 = vrot.lane.b32.xlu0 %v6966_v13, %s6472_s18 }
 0x299   : > { %v7023_v30 = vpop.permute.xlu1 %1213 }
 0x29b   : > { %1368 = vrot.lane.b32.xlu1 %v1326_v16, %s6473_s24 }
 0x29c   : > { %v7026_v33 = vpop.permute.xlu0 %2210 }
 0x29e   : > { %v7028_v37 = vpop.permute.xlu1 %1457 }
 0x2a0   : > { %v1310_v48 = vpop.permute.xlu0 %1309 }
 0x2a1   : > { %v1330_v59 = vmul.f32 %v1310_v48, %v7031_v42 }
 0x2a2   : > { %v7034_v2 = vpop.permute.xlu1 %1453 }
 0x2a3   : > { %1376 = vrot.lane.b32.xlu0 %v1330_v59, %s6473_s24 }
 0x2a4   : > { %v7037_v22 = vpop.permute.xlu0 %2322 }
 0x2a7   : > { %v1306_v20 = vpop.permute.xlu1 %1305  ;;  %2218 = vrot.lane.b32.xlu0 %v6986_v38, %s6471_s16 }
 0x2a8   : > { %v1329_v16 = vmul.f32 %v1306_v20, %v7040_v15  ;;  %v7045_v18 = vpop.permute.xlu0 %1228 }
 0x2aa   : > { %1374 = vrot.lane.b32.xlu1 %v1329_v16, %s6473_s24 }
 0x2ab   : > { %2330 = vrot.lane.b32.xlu0 %v6986_v38, %s6472_s18 }
 0x2ac   : > { %v7050_v48 = vpop.permute.xlu1 %1218 }
 0x2ad   : > { %v7052_v59 = vpop.permute.xlu0 %1469 }
 0x2af   : > { %2222 = vrot.lane.b32.xlu0 %v7015_v9, %s6471_s16 }
 0x2b1   : > { %v1314_v12 = vpop.permute.xlu1 %1313  ;;  %v1351_v10 = vpop.permute.xlu0 %1350 }
 0x2b2   : > { %v1331_v20 = vmul.f32 %v1314_v12, %v7057_v14 }
 0x2b3   : > { %2334 = vrot.lane.b32.xlu0 %v7015_v9, %s6472_s18 }
 0x2b4   : > { %1378 = vrot.lane.b32.xlu1 %v1331_v20, %s6473_s24  ;;  %s6482_s24 = smov 48  }
 0x2b5   : > { %v1349_v16 = vpop.permute.xlu0 %1348 }
 0x2b6   : > { %v7063_v8 = vpop.permute.xlu1 %1465  ;;  %v1396_v3 = vadd.f32 %v1349_v16, %v1236_v6 }
 0x2b7   : > { %2226 = vrot.lane.b32.xlu0 %v6992_v29, %s6471_s16 }
 0x2b8   : > { %2324 = vrot.lane.b32.xlu1 %v6928_v28, %s6472_s18  ;;  %v1476_v12 = vadd.f32 %v6921_v43, %v1396_v3  ;;  %v1237_v43 = vmul.f32 %v6901_v35, %v6898_v34 }
 0x2ba   : > { %v7071_v1 = vpop.permute.xlu1 %2204  ;;  %v1397_v16 = vadd.f32 %v1351_v10, %v1237_v43  ;;  %v1238_v10 = vmul.f32 %v6939_v50, %v6870_v26 }
 0x2bb   : > { %2338 = vrot.lane.b32.xlu0 %v6992_v29, %s6472_s18 }
 0x2bc   : > { %2216 = vrot.lane.b32.xlu1 %v6962_v7, %s6471_s16  ;;  %v1477_v60 = vadd.f32 %v6908_v39, %v1397_v16 }
 0x2be   : > { %v7078_v20 = vpop.permute.xlu1 %2316 }
 0x2bf   : > { %1945 = vrot.lane.b32.xlu0 %v1476_v12, %s6471_s16 }
 0x2c0   : > { %2328 = vrot.lane.b32.xlu1 %v6962_v7, %s6472_s18 }
 0x2c2   : > { %v7083_v25 = vpop.permute.xlu1 %2208 }
 0x2c4   : > { %2220 = vrot.lane.b32.xlu1 %v6982_v32, %s6471_s16 }
 0x2c6   : > { %v7087_v6 = vpop.permute.xlu1 %2320 }
 0x2c8   : > { %2332 = vrot.lane.b32.xlu1 %v6982_v32, %s6472_s18 }
 0x2ca   : > { %v7091_v40 = vpop.permute.xlu1 %2212 }
 0x2cb   : > { %8321 = vst [vmem:[#allocation19_spill] sm:$0xff] %v7091_v40 }
 0x2cc   : > { %2224 = vrot.lane.b32.xlu1 %v7007_v36, %s6471_s16 }
 0x2ce   : > { %v7095_v3 = vpop.permute.xlu1 %1233 }
 0x2d0   : > { %2336 = vrot.lane.b32.xlu1 %v7007_v36, %s6472_s18 }
 0x2d3   : > { %v7101_v12 = vpop.permute.xlu1 %1473 }
 0x2d4   : > { %2228 = vrot.lane.b32.xlu1 %v7040_v15, %s6471_s16 }
 0x2d7   : > { %v1355_v58 = vpop.permute.xlu1 %1354 }
 0x2d8   : > { %v1399_v53 = vadd.f32 %v1355_v58, %v1239_v62  ;;  %1947 = vrot.lane.b32.xlu1 %v1477_v60, %s6471_s16  ;;  %v1359_v34 = vpop.permute.xlu0 %1358 }
 0x2d9   : > { %v1401_v43 = vadd.f32 %v1359_v34, %v1241_v55  ;;  %v1243_v55 = vmul.f32 %v6970_v17, %v6962_v7  ;;  %v1244_v7 = vmul.f32 %v7001_v52, %v6986_v38 }
 0x2da   : > { %v1479_v35 = vadd.f32 %v6932_v46, %v1399_v53 }
 0x2db   : > { %v1353_v40 = vpop.permute.xlu1 %1352  ;;  %v1481_v28 = vadd.f32 %v6954_v0, %v1401_v43  ;;  %v7157_v43 = vstv %s5455_s26 }
 0x2dc   : > { %v1398_v44 = vadd.f32 %v1353_v40, %v1238_v10  ;;  %1951 = vrot.lane.b32.xlu1 %v1479_v35, %s6471_s16  ;;  %v1357_v39 = vpop.permute.xlu0 %1356  ;;  %v1492_v40 = vlaneseq  ;;  %v1248_v10 = vmul.f32 %v7050_v48, %v6992_v29 }
 0x2dd   : > { %v1400_v60 = vadd.f32 %v1357_v39, %v1240_v41 }
 0x2de   : > { %v1478_v58 = vadd.f32 %v6944_v56, %v1398_v44  ;;  %v7144_v52 = vshrl.u32 %v1492_v40, 7 }
 0x2df   : > { %v1480_v53 = vadd.f32 %v6937_v49, %v1400_v60  ;;  %v1245_v49 = vmul.f32 %v6951_v61, %v6982_v32  ;;  %v1247_v61 = vmul.f32 %v7023_v30, %v7007_v36  ;;  %v1249_v60 = vmul.f32 %v6977_v23, %v7040_v15 }
 0x2e0   : > { %1949 = vrot.lane.b32.xlu0 %v1478_v58, %s6471_s16  ;;  %1955 = vrot.lane.b32.xlu1 %v1481_v28, %s6471_s16  ;;  %v1513_v36 = vand.u32 15, %v7144_v52  ;;  %v1251_v23 = vmul.f32 %v7095_v3, %v7057_v14  ;;  %v1498_v3 = vadd.s32 40, %v7144_v52 }
 0x2e4   : > { %1953 = vrot.lane.b32.xlu0 %v1480_v53, %s6471_s16 }
 0x2e7   : > { %v1363_v62 = vpop.permute.xlu1 %1362 }
 0x2e8   : > { %v1403_v26 = vadd.f32 %v1363_v62, %v1243_v55 }
 0x2ea   : > { %v1483_v45 = vadd.f32 %v6975_v21, %v1403_v26 }
 0x2eb   : > { %v1361_v46 = vpop.permute.xlu1 %1360 }
 0x2ec   : > { %v1402_v50 = vadd.f32 %v1361_v46, %v1242_v31  ;;  %1959 = vrot.lane.b32.xlu1 %v1483_v45, %s6471_s16  ;;  %v1494_v31 = vadd.s32 8, %v7144_v52  ;;  %v1496_v45 = vadd.s32 24, %v7144_v52 }
 0x2ee   : > { %v1482_v56 = vadd.f32 %v6979_v24, %v1402_v50 }
 0x2f0   : > { %1957 = vrot.lane.b32.xlu0 %v1482_v56, %s6471_s16 }
 0x2fa   : > { %v1367_v0 = vpop.permute.xlu0 %1366 }
 0x2fb   : > { %v1405_v4 = vadd.f32 %v1367_v0, %v1245_v49  ;;  %v1520_v49 = vand.u32 15, %v1494_v31  ;;  %v1499_v31 = vadd.s32 48, %v7144_v52 }
 0x2fd   : > { %v1485_v57 = vadd.f32 %v6995_v47, %v1405_v4  ;;  %v1246_v47 = vmul.f32 %v6973_v19, %v7015_v9  ;;  %v1703_v9 = vadd.s32 %v7157_v43, %v1513_v36  ;;  %v1495_v4 = vadd.s32 16, %v7144_v52 }
 0x2fe   : > { %v1365_v13 = vpop.permute.xlu0 %1364 }
 0x2ff   : > { %v1404_v17 = vadd.f32 %v1365_v13, %v1244_v7  ;;  %1963 = vrot.lane.b32.xlu1 %v1485_v57, %s6471_s16  ;;  %v1720_v39 = vsub.s32 0, %v1703_v9  ;;  %vm1719_vm1 = vcmp.lt.s32.totalorder %v1703_v9, 0 }
 0x301   : > { %v1484_v21 = vadd.f32 %v6959_v5, %v1404_v17  ;;  %v1704_v17 = vadd.s32 %v7157_v43, %v1520_v49 }
 0x302   : > { %v1373_v24 = vpop.permute.xlu0 %1372 }
 0x303   : > { %1961 = vrot.lane.b32.xlu0 %v1484_v21, %s6471_s16  ;;  %v1408_v41 = vadd.f32 %v1373_v24, %v1248_v10  ;;  %vm1726_vm7 = vcmp.lt.s32.totalorder %v1704_v17, 0 }
 0x305   : > { %v1488_v29 = vadd.f32 %v6989_v27, %v1408_v41 }
 0x306   : > { %v7141_v16 = vpop.permute.xlu0 %2214 }
 0x309   : > { %v1371_v32 = vpop.permute.xlu1 %1370 }
 0x30a   : > { %v1407_v38 = vadd.f32 %v1371_v32, %v1247_v61  ;;  %v7155_v30 = vpop.permute.xlu0 %2326  ;;  %v1527_v61 = vand.u32 15, %v1495_v4  ;;  %v1497_v32 = vadd.s32 32, %v7144_v52  ;;  %v1555_v4 = vand.u32 15, %v1499_v31 }
 0x30c   : > { %v1487_v34 = vadd.f32 %v7028_v37, %v1407_v38  ;;  %v1250_v37 = vmul.f32 %v7045_v18, %v7031_v42  ;;  %v1705_v36 = vadd.s32 %v7157_v43, %v1527_v61  ;;  %v1541_v41 = vand.u32 15, %v1497_v32 }
 0x30d   : > { %v1369_v5 = vpop.permute.xlu1 %1368 }
 0x30e   : > { %v1406_v35 = vadd.f32 %v1369_v5, %v1246_v47  ;;  %1967 = vrot.lane.b32.xlu1 %v1487_v34, %s6471_s16  ;;  %v7200_v47 = vand.u32 127, %v1492_v40  ;;  %v1727_v34 = vsub.s32 0, %v1704_v17  ;;  %v1548_v5 = vand.u32 15, %v1498_v3 }
 0x30f   : > { %vm1733_vm11 = vcmp.lt.s32.totalorder %v1705_v36, 0 }
 0x310   : > { %v1486_v19 = vadd.f32 %v7034_v2, %v1406_v35  ;;  %v5456_v2 = vmin.u32 %v1720_v39, %v1703_v9  ;;  %v1500_v39 = vadd.s32 56, %v7144_v52 }
 0x312   : > { %1965 = vrot.lane.b32.xlu0 %v1486_v19, %s6471_s16  ;;  %v1723_v27 = vand.u32 3, %v5456_v2 }
 0x315   : > { %v1377_v48 = vpop.permute.xlu0 %1376 }
 0x316   : > { %v1410_v44 = vadd.f32 %v1377_v48, %v1250_v37  ;;  %1969 = vrot.lane.b32.xlu0 %v1488_v29, %s6471_s16  ;;  %v5457_v37 = vmin.u32 %v1727_v34, %v1704_v17  ;;  %v1708_v29 = vadd.s32 %v7157_v43, %v1548_v5  ;;  %v1734_v48 = vsub.s32 0, %v1705_v36 }
 0x318   : > { %v1490_v28 = vadd.f32 %v7052_v59, %v1410_v44  ;;  %v1724_v59 = vsub.s32 0, %v1723_v27  ;;  %v1707_v44 = vadd.s32 %v7157_v43, %v1541_v41  ;;  %v1730_v2 = vand.u32 3, %v5457_v37 }
 0x319   : > { %v7167_v58 = vpop.permute.xlu0 %2218  ;;  %vm1754_vm14 = vcmp.lt.s32.totalorder %v1708_v29, 0 }
 0x31a   : > { %1973 = vrot.lane.b32.xlu0 %v1490_v28, %s6471_s16  ;;  %v1725_v56 = vsel %vm1719_vm1, %v1724_v59, %v1723_v27  ;;  %v1562_v59 = vand.u32 15, %v1500_v39 }
 0x31b   : > { %vm1831_vm2 = vcmp.ne.s32.totalorder %v1725_v56, 0  ;;  %vm1847_vm3 = vcmp.lt.s32.totalorder %v1725_v56, 0  ;;  %v1879_v21 = vadd.s32 4, %v1725_v56 }
 0x31c   : > { %v1375_v53 = vpop.permute.xlu1 %1374  ;;  %vm1863_vm4 = vmand %vm1847_vm3, %vm1831_vm2  ;;  %vm1747_vm2 = vcmp.lt.s32.totalorder %v1707_v44, 0 }
 0x31d   : > { %v1409_v55 = vadd.f32 %v1375_v53, %v1249_v60  ;;  %v7172_v18 = vpop.permute.xlu0 %2330  ;;  %v1895_v10 = vsel %vm1863_vm4, %v1879_v21, %v1725_v56  ;;  %v1755_v60 = vsub.s32 0, %v1708_v29 }
 0x31e   : > { %vm1913_vm5 = vcmp.eq.s32.totalorder %v7200_v47, %v1895_v10  ;;  %v7227_v10 = vadd.s32 %v7157_v43, %v1555_v4 }
 0x31f   : > { %v1489_v62 = vadd.f32 %v7063_v8, %v1409_v55  ;;  %v1534_v8 = vand.u32 15, %v1496_v45  ;;  %v5458_v55 = vmin.u32 %v1734_v48, %v1705_v36 }
 0x320   : > { %v1762_v39 = vsub.s32 0, %v7227_v10 }
 0x321   : > { %1971 = vrot.lane.b32.xlu1 %v1489_v62, %s6471_s16  ;;  %v7176_v26 = vpop.permute.xlu0 %2222  ;;  %v1706_v24 = vadd.s32 %v7157_v43, %v1534_v8  ;;  %v1748_v62 = vsub.s32 0, %v1707_v44  ;;  %v1737_v49 = vand.u32 3, %v5458_v55  ;;  %v7221_v8 = vadd.s32 %v7157_v43, %v1562_v59 }
 0x322   : > { %v5462_v59 = vmin.u32 %v1762_v39, %v7227_v10 }
 0x323   : > { %v1741_v35 = vsub.s32 0, %v1706_v24  ;;  %vm1740_vm8 = vcmp.lt.s32.totalorder %v1706_v24, 0  ;;  %v1738_v32 = vsub.s32 0, %v1737_v49  ;;  %v1769_v5 = vsub.s32 0, %v7221_v8 }
 0x325   : > { %v7182_v46 = vpop.permute.xlu0 %2334  ;;  %v5459_v40 = vmin.u32 %v1741_v35, %v1706_v24  ;;  %v1739_v37 = vsel %vm1733_vm11, %v1738_v32, %v1737_v49  ;;  %v5463_v48 = vmin.u32 %v1769_v5, %v7221_v8 }
 0x326   : > { %v1379_v50 = vpop.permute.xlu1 %1378  ;;  %vm1833_vm3 = vcmp.ne.s32.totalorder %v1739_v37, 0  ;;  %vm1849_vm4 = vcmp.lt.s32.totalorder %v1739_v37, 0 }
 0x327   : > { %v1411_v0 = vadd.f32 %v1379_v50, %v1251_v23  ;;  %v1744_v53 = vand.u32 3, %v5459_v40  ;;  %v1731_v23 = vsub.s32 0, %v1730_v2  ;;  %v5461_v50 = vmin.u32 %v1755_v60, %v1708_v29 }
 0x329   : > { %v1491_v7 = vadd.f32 %v7101_v12, %v1411_v0  ;;  %v7186_v57 = vpop.permute.xlu0 %2226  ;;  %v1745_v56 = vsub.s32 0, %v1744_v53  ;;  %v5460_v0 = vmin.u32 %v1748_v62, %v1707_v44  ;;  %v1732_v3 = vsel %vm1726_vm7, %v1731_v23, %v1730_v2 }
 0x32a   : > { %v7188_v13 = vpop.permute.xlu1 %2324  ;;  %v1758_v21 = vand.u32 3, %v5461_v50  ;;  %vm1832_vm9 = vcmp.ne.s32.totalorder %v1732_v3, 0  ;;  %vm1848_vm10 = vcmp.lt.s32.totalorder %v1732_v3, 0  ;;  %v1880_v35 = vadd.s32 4, %v1732_v3 }
 0x32b   : > { %1975 = vrot.lane.b32.xlu1 %v1491_v7, %s6471_s16  ;;  %v1746_v61 = vsel %vm1740_vm8, %v1745_v56, %v1744_v53  ;;  %v1751_v34 = vand.u32 3, %v5460_v0  ;;  %vm7231_vm15 = vmand %vm1848_vm10, %vm1832_vm9  ;;  %v1502_v2 = vadd.s32 72, %v7144_v52  ;;  %v1772_v62 = vand.u32 3, %v5463_v48 }
 0x32c   : > { %vm1834_vm12 = vcmp.ne.s32.totalorder %v1746_v61, 0  ;;  %vm1850_vm13 = vcmp.lt.s32.totalorder %v1746_v61, 0  ;;  %v1759_v24 = vsub.s32 0, %v1758_v21  ;;  %v1882_v41 = vadd.s32 4, %v1746_v61  ;;  %vm7249_vm8 = vmand %vm1849_vm4, %vm1833_vm3 }
 0x32d   : > { %v7195_v12 = vpop.permute.xlu0 %2338  ;;  %v1752_v40 = vsub.s32 0, %v1751_v34  ;;  %vm7237_vm1 = vmand %vm1850_vm13, %vm1834_vm12  ;;  %v1896_v53 = vsel %vm7231_vm15, %v1880_v35, %v1732_v3  ;;  %v1881_v44 = vadd.s32 4, %v1739_v37  ;;  %v1576_v31 = vand.u32 15, %v1502_v2 }
 0x32e   : > { %v7197_v38 = vpop.permute.xlu1 %2216  ;;  %v1760_v29 = vsel %vm1754_vm14, %v1759_v24, %v1758_v21  ;;  %v1898_v55 = vsel %vm7237_vm1, %v1882_v41, %v1746_v61  ;;  %v1501_v56 = vadd.s32 64, %v7144_v52  ;;  %vm1914_vm11 = vcmp.eq.s32.totalorder %v7200_v47, %v1896_v53 }
 0x32f   : > { %2340 = vrot.lane.b32.xlu1 %v7040_v15, %s6472_s18  ;;  %vm1852_vm7 = vcmp.lt.s32.totalorder %v1760_v29, 0  ;;  %v1884_v49 = vadd.s32 4, %v1760_v29  ;;  %vm1916_vm12 = vcmp.eq.s32.totalorder %v7200_v47, %v1898_v55  ;;  %v1773_v4 = vsub.s32 0, %v1772_v62 }
 0x330   : > { %v1765_v3 = vand.u32 3, %v5462_v59  ;;  %v1897_v21 = vsel %vm7249_vm8, %v1881_v44, %v1739_v37  ;;  %vm1768_vm14 = vcmp.lt.s32.totalorder %v7221_v8, 0  ;;  %v7264_v32 = vadd.s32 %v7157_v43, %v1576_v31 }
 0x331   : > { %v1946_v19 = vpop.permute.xlu0 %1945  ;;  %v1569_v24 = vand.u32 15, %v1501_v56  ;;  %vm1915_vm1 = vcmp.eq.s32.totalorder %v7200_v47, %v1897_v21  ;;  %v1774_v8 = vsel %vm1768_vm14, %v1773_v4, %v1772_v62  ;;  %v1504_v31 = vadd.s32 88, %v7144_v52 }
 0x332   : > { %v7206_v9 = vpop.permute.xlu1 %2328  ;;  %v7211_v15 = vsel %vm1913_vm5, -1e+30, %v1946_v19  ;;  %vm1836_vm5 = vcmp.ne.s32.totalorder %v1760_v29, 0  ;;  %v1783_v39 = vsub.s32 0, %v7264_v32  ;;  %vm1838_vm4 = vcmp.ne.s32.totalorder %v1774_v8, 0 }
 0x333   : > { %v2010_v27 = vsel %vm2009_vm6, %v7211_v15, -inf  ;;  %vm7256_vm13 = vmand %vm1852_vm7, %vm1836_vm5  ;;  %v1711_v53 = vadd.s32 %v7157_v43, %v1569_v24  ;;  %vm1854_vm5 = vcmp.lt.s32.totalorder %v1774_v8, 0  ;;  %v1886_v59 = vadd.s32 4, %v1774_v8 }
 0x334   : > { %v1900_v19 = vsel %vm7256_vm13, %v1884_v49, %v1760_v29  ;;  %v5465_v44 = vmin.u32 %v1783_v39, %v7264_v32  ;;  %vm7296_vm8 = vmand %vm1854_vm5, %vm1838_vm4  ;;  %v1503_v24 = vadd.s32 80, %v7144_v52  ;;  %vm1782_vm13 = vcmp.lt.s32.totalorder %v7264_v32, 0 }
 0x335   : > { %vm1918_vm3 = vcmp.eq.s32.totalorder %v7200_v47, %v1900_v19  ;;  %v1776_v56 = vsub.s32 0, %v1711_v53  ;;  %v1507_v32 = vadd.s32 112, %v7144_v52 }
 0x336   : > { %v7213_v28 = vpop.permute.xlu1 %2220 }
 0x337   : > { %v5464_v5 = vmin.u32 %v1776_v56, %v1711_v53 }
 0x339   : > { %2011 = vmax.xlane.f32.xlu0 %v2010_v27  ;;  %v1753_v27 = vsel %vm1747_vm2, %v1752_v40, %v1751_v34  ;;  %v1766_v40 = vsub.s32 0, %v1765_v3  ;;  %vm1761_vm2 = vcmp.lt.s32.totalorder %v7227_v10, 0  ;;  %v1779_v39 = vand.u32 3, %v5464_v5 }
 0x33a   : > { %v7218_v45 = vpop.permute.xlu1 %2332  ;;  %vm1835_vm9 = vcmp.ne.s32.totalorder %v1753_v27, 0  ;;  %vm1851_vm10 = vcmp.lt.s32.totalorder %v1753_v27, 0  ;;  %v1883_v61 = vadd.s32 4, %v1753_v27 }
 0x33b   : > { %vm7266_vm15 = vmand %vm1851_vm10, %vm1835_vm9  ;;  %v1767_v10 = vsel %vm1761_vm2, %v1766_v40, %v1765_v3  ;;  %v1902_v3 = vsel %vm7296_vm8, %v1886_v59, %v1774_v8  ;;  %v1505_v8 = vadd.s32 96, %v7144_v52 }
 0x33c   : > { %v1899_v48 = vsel %vm7266_vm15, %v1883_v61, %v1753_v27  ;;  %vm1837_vm9 = vcmp.ne.s32.totalorder %v1767_v10, 0  ;;  %vm1853_vm10 = vcmp.lt.s32.totalorder %v1767_v10, 0  ;;  %v1885_v21 = vadd.s32 4, %v1767_v10 }
 0x33d   : > { %vm1917_vm7 = vcmp.eq.s32.totalorder %v7200_v47, %v1899_v48  ;;  %v1786_v61 = vand.u32 3, %v5465_v44  ;;  %v1780_v44 = vsub.s32 0, %v1779_v39  ;;  %vm1775_vm15 = vcmp.lt.s32.totalorder %v1711_v53, 0 }
 0x33e   : > { %v7223_v7 = vpop.permute.xlu1 %2224  ;;  %v1506_v53 = vadd.s32 104, %v7144_v52 }
 0x342   : > { %v7229_v17 = vpop.permute.xlu1 %2336 }
 0x346   : > { %v7242_v60 = vpop.permute.xlu1 %2228 }
 0x34a   : > { %v1948_v23 = vpop.permute.xlu1 %1947 }
 0x34b   : > { %v7270_v35 = vsel %vm1914_vm11, -1e+30, %v1948_v23  ;;  %vm1869_vm11 = vmand %vm1853_vm10, %vm1837_vm9 }
 0x34c   : > { %v2013_v29 = vsel %vm2009_vm6, %v7270_v35, -inf  ;;  %v1901_v19 = vsel %vm1869_vm11, %v1885_v21, %v1767_v10 }
 0x34d   : > { %vm1919_vm14 = vcmp.eq.s32.totalorder %v7200_v47, %v1901_v19 }
 0x34e   : > { %v1952_v34 = vpop.permute.xlu1 %1951 }
 0x34f   : > { %v7272_v41 = vsel %vm1916_vm12, -1e+30, %v1952_v34  ;;  %v1590_v34 = vand.u32 15, %v1504_v31  ;;  %vm1920_vm12 = vcmp.eq.s32.totalorder %v7200_v47, %v1902_v3 }
 0x350   : > { %v2019_v37 = vsel %vm2009_vm6, %v7272_v41, -inf }
 0x351   : > { %2020 = vmax.xlane.f32.xlu0 %v2019_v37  ;;  %v1787_v37 = vsub.s32 0, %v1786_v61  ;;  %v1714_v40 = vadd.s32 %v7157_v43, %v1590_v34 }
 0x352   : > { %v1956_v36 = vpop.permute.xlu1 %1955  ;;  %v1950_v2 = vpop.permute.xlu0 %1949 }
 0x353   : > { %v7287_v55 = vsel %vm1915_vm1, -1e+30, %v1950_v2  ;;  %2014 = vmax.xlane.f32.xlu1 %v2013_v29  ;;  %v7292_v62 = vsel %vm1918_vm3, -1e+30, %v1956_v36  ;;  %v1583_v36 = vand.u32 15, %v1503_v24  ;;  %v1797_v10 = vsub.s32 0, %v1714_v40 }
 0x354   : > { %v2016_v27 = vsel %vm2009_vm6, %v7287_v55, -inf  ;;  %v2025_v0 = vsel %vm2009_vm6, %v7292_v62, -inf  ;;  %vm1796_vm8 = vcmp.lt.s32.totalorder %v1714_v40, 0 }
 0x355   : > { %2017 = vmax.xlane.f32.xlu0 %v2016_v27  ;;  %v1788_v27 = vsel %vm1782_vm13, %v1787_v37, %v1786_v61  ;;  %v1713_v31 = vadd.s32 %v7157_v43, %v1583_v36  ;;  %v1611_v61 = vand.u32 15, %v1507_v32 }
 0x356   : > { %v1954_v23 = vpop.permute.xlu0 %1953  ;;  %vm1840_vm1 = vcmp.ne.s32.totalorder %v1788_v27, 0  ;;  %vm1856_vm2 = vcmp.lt.s32.totalorder %v1788_v27, 0  ;;  %v1888_v34 = vadd.s32 4, %v1788_v27 }
 0x357   : > { %v7300_v49 = vsel %vm1917_vm7, -1e+30, %v1954_v23  ;;  %v1597_v23 = vand.u32 15, %v1505_v8  ;;  %v1790_v3 = vsub.s32 0, %v1713_v31  ;;  %vm7325_vm3 = vmand %vm1856_vm2, %vm1840_vm1  ;;  %vm1789_vm11 = vcmp.lt.s32.totalorder %v1713_v31, 0 }
 0x358   : > { %v2022_v4 = vsel %vm2009_vm6, %v7300_v49, -inf }
 0x359   : > { %2026 = vmax.xlane.f32.xlu0 %v2025_v0  ;;  %2023 = vmax.xlane.f32.xlu1 %v2022_v4  ;;  %v5467_v0 = vmin.u32 %v1797_v10, %v1714_v40  ;;  %v1781_v4 = vsel %vm1775_vm15, %v1780_v44, %v1779_v39  ;;  %v1715_v21 = vadd.s32 %v7157_v43, %v1597_v23  ;;  %v1604_v10 = vand.u32 15, %v1506_v53 }
 0x35a   : > { %vm1839_vm4 = vcmp.ne.s32.totalorder %v1781_v4, 0  ;;  %vm1855_vm5 = vcmp.lt.s32.totalorder %v1781_v4, 0  ;;  %v5466_v19 = vmin.u32 %v1790_v3, %v1713_v31  ;;  %v1904_v39 = vsel %vm7325_vm3, %v1888_v34, %v1788_v27 }
 0x35b   : > { %v1800_v24 = vand.u32 3, %v5467_v0  ;;  %v1804_v37 = vsub.s32 0, %v1715_v21  ;;  %v1887_v36 = vadd.s32 4, %v1781_v4  ;;  %vm7333_vm7 = vmand %vm1855_vm5, %vm1839_vm4  ;;  %vm1922_vm9 = vcmp.eq.s32.totalorder %v7200_v47, %v1904_v39 }
 0x35c   : > { %v1716_v27 = vadd.s32 %v7157_v43, %v1604_v10  ;;  %v1508_v53 = vadd.s32 120, %v7144_v52 }
 0x35d   : > { %v5468_v44 = vmin.u32 %v1804_v37, %v1715_v21  ;;  %v1903_v32 = vsel %vm7333_vm7, %v1887_v36, %v1781_v4 }
 0x35e   : > { %v1960_v48 = vpop.permute.xlu1 %1959  ;;  %vm1921_vm10 = vcmp.eq.s32.totalorder %v7200_v47, %v1903_v32  ;;  %v1811_v4 = vsub.s32 0, %v1716_v27  ;;  %v1618_v10 = vand.u32 15, %v1508_v53 }
 0x35f   : > { %v7313_v2 = vsel %vm1920_vm12, -1e+30, %v1960_v48  ;;  %v1717_v48 = vadd.s32 %v7157_v43, %v1611_v61  ;;  %v1807_v34 = vand.u32 3, %v5468_v44 }
 0x360   : > { %v2031_v29 = vsel %vm2009_vm6, %v7313_v2, -inf  ;;  %v5469_v52 = vmin.u32 %v1811_v4, %v1716_v27 }
 0x361   : > { %2032 = vmax.xlane.f32.xlu0 %v2031_v29  ;;  %v1801_v29 = vsub.s32 0, %v1800_v24  ;;  %v1818_v23 = vsub.s32 0, %v1717_v48  ;;  %v1808_v39 = vsub.s32 0, %v1807_v34  ;;  %vm1817_vm3 = vcmp.lt.s32.totalorder %v1717_v48, 0 }
 0x362   : > { %v1958_v59 = vpop.permute.xlu0 %1957 }
 0x363   : > { %v7320_v50 = vsel %vm1919_vm14, -1e+30, %v1958_v59  ;;  %v1793_v59 = vand.u32 3, %v5466_v19  ;;  %v1802_v0 = vsel %vm1796_vm8, %v1801_v29, %v1800_v24  ;;  %v5470_v5 = vmin.u32 %v1818_v23, %v1717_v48 }
 0x364   : > { %v2028_v56 = vsel %vm2009_vm6, %v7320_v50, -inf  ;;  %vm1842_vm12 = vcmp.ne.s32.totalorder %v1802_v0, 0  ;;  %vm1858_vm13 = vcmp.lt.s32.totalorder %v1802_v0, 0  ;;  %v1890_v29 = vadd.s32 4, %v1802_v0 }
 0x365   : > { %2029 = vmax.xlane.f32.xlu1 %v2028_v56  ;;  %v1794_v61 = vsub.s32 0, %v1793_v59  ;;  %v1821_v36 = vand.u32 3, %v5470_v5  ;;  %vm1803_vm14 = vcmp.lt.s32.totalorder %v1715_v21, 0  ;;  %vm1874_vm15 = vmand %vm1858_vm13, %vm1842_vm12  ;;  %v1814_v21 = vand.u32 3, %v5469_v52 }
 0x366   : > { %v1809_v31 = vsel %vm1803_vm14, %v1808_v39, %v1807_v34  ;;  %v1906_v23 = vsel %vm1874_vm15, %v1890_v29, %v1802_v0  ;;  %vm1810_vm13 = vcmp.lt.s32.totalorder %v1716_v27, 0 }
 0x367   : > { %v1795_v37 = vsel %vm1789_vm11, %v1794_v61, %v1793_v59  ;;  %v1822_v44 = vsub.s32 0, %v1821_v36  ;;  %v1718_v59 = vadd.s32 %v7157_v43, %v1618_v10  ;;  %vm1843_vm5 = vcmp.ne.s32.totalorder %v1809_v31, 0 }
 0x368   : > { %vm1841_vm1 = vcmp.ne.s32.totalorder %v1795_v37, 0  ;;  %vm1857_vm2 = vcmp.lt.s32.totalorder %v1795_v37, 0  ;;  %v1889_v32 = vadd.s32 4, %v1795_v37  ;;  %vm1859_vm7 = vcmp.lt.s32.totalorder %v1809_v31, 0 }
 0x369   : > { %vm7352_vm4 = vmand %vm1857_vm2, %vm1841_vm1  ;;  %vm1924_vm8 = vcmp.eq.s32.totalorder %v7200_v47, %v1906_v23  ;;  %v1823_v61 = vsel %vm1817_vm3, %v1822_v44, %v1821_v36  ;;  %v1891_v34 = vadd.s32 4, %v1809_v31  ;;  %v1815_v53 = vsub.s32 0, %v1814_v21 }
 0x36a   : > { %v1905_v5 = vsel %vm7352_vm4, %v1889_v32, %v1795_v37  ;;  %vm1861_vm11 = vcmp.lt.s32.totalorder %v1823_v61, 0  ;;  %v1893_v37 = vadd.s32 4, %v1823_v61 }
 0x36b   : > { %vm1923_vm12 = vcmp.eq.s32.totalorder %v7200_v47, %v1905_v5  ;;  %v1816_v29 = vsel %vm1810_vm13, %v1815_v53, %v1814_v21  ;;  %vm2426_vm13 = vcmask 7168  }
 0x36c   : > { %vm1844_vm1 = vcmp.ne.s32.totalorder %v1816_v29, 0  ;;  %vm1860_vm2 = vcmp.lt.s32.totalorder %v1816_v29, 0  ;;  %v1892_v32 = vadd.s32 4, %v1816_v29 }
 0x36d   : > { %vm1876_vm4 = vmand %vm1860_vm2, %vm1844_vm1  ;;  %vm5304_vm1 = vcmask 130048   ;;  %vm5307_vm2 = vcmask 195584  }
 0x371   : > { %v1964_v56 = vpop.permute.xlu1 %1963 }
 0x372   : > { %v7341_v3 = vsel %vm1922_vm9, -1e+30, %v1964_v56  ;;  %vm7359_vm9 = vmand %vm1859_vm7, %vm1843_vm5  ;;  %vm1824_vm5 = vcmp.lt.s32.totalorder %v1718_v59, 0 }
 0x373   : > { %v2037_v40 = vsel %vm2009_vm6, %v7341_v3, -inf  ;;  %v1907_v4 = vsel %vm7359_vm9, %v1891_v34, %v1809_v31  ;;  %v1908_v34 = vsel %vm1876_vm4, %v1892_v32, %v1816_v29  ;;  %vm5315_vm4 = vcmask 392192  }
 0x374   : > { %2038 = vmax.xlane.f32.xlu0 %v2037_v40  ;;  %v1825_v40 = vsub.s32 0, %v1718_v59  ;;  %vm1925_vm15 = vcmp.eq.s32.totalorder %v7200_v47, %v1907_v4  ;;  %vm1926_vm7 = vcmp.eq.s32.totalorder %v7200_v47, %v1908_v34 }
 0x375   : > { %v1962_v19 = vpop.permute.xlu0 %1961 }
 0x376   : > { %v7347_v24 = vsel %vm1921_vm10, -1e+30, %v1962_v19  ;;  %vm1845_vm10 = vcmp.ne.s32.totalorder %v1823_v61, 0  ;;  %v5471_v39 = vmin.u32 %v1825_v40, %v1718_v59 }
 0x377   : > { %v2034_v8 = vsel %vm2009_vm6, %v7347_v24, -inf  ;;  %vm1877_vm14 = vmand %vm1861_vm11, %vm1845_vm10 }
 0x378   : > { %2035 = vmax.xlane.f32.xlu1 %v2034_v8  ;;  %v1909_v52 = vsel %vm1877_vm14, %v1893_v37, %v1823_v61  ;;  %v1828_v44 = vand.u32 3, %v5471_v39  ;;  %vm2443_vm14 = vcmask 15360  }
 0x379   : > { %vm1927_vm3 = vcmp.eq.s32.totalorder %v7200_v47, %v1909_v52 }
 0x37a   : > { %v1829_v56 = vsub.s32 0, %v1828_v44 }
 0x37c   : > { %v1830_v40 = vsel %vm1824_vm5, %v1829_v56, %v1828_v44  ;;  %vm5318_vm5 = vcmask 457728  }
 0x37d   : > { %vm1862_vm9 = vcmp.lt.s32.totalorder %v1830_v40, 0  ;;  %v1894_v53 = vadd.s32 4, %v1830_v40 }
 0x380   : > { %v1968_v0 = vpop.permute.xlu1 %1967 }
 0x381   : > { %v7363_v43 = vsel %vm1924_vm8, -1e+30, %v1968_v0  ;;  %vm1846_vm8 = vcmp.ne.s32.totalorder %v1830_v40, 0 }
 0x382   : > { %v2043_v19 = vsel %vm2009_vm6, %v7363_v43, -inf  ;;  %vm1878_vm10 = vmand %vm1862_vm9, %vm1846_vm8 }
 0x383   : > { %2044 = vmax.xlane.f32.xlu0 %v2043_v19  ;;  %v1910_v59 = vsel %vm1878_vm10, %v1894_v53, %v1830_v40 }
 0x384   : > { %v1966_v36 = vpop.permute.xlu0 %1965  ;;  %vm1928_vm11 = vcmp.eq.s32.totalorder %v7200_v47, %v1910_v59 }
 0x385   : > { %v7370_v8 = vsel %vm1923_vm12, -1e+30, %v1966_v36  ;;  %vm2517_vm12 = vcmask 1042432  }
 0x386   : > { %v2040_v10 = vsel %vm2009_vm6, %v7370_v8, -inf }
 0x387   : > { %2041 = vmax.xlane.f32.xlu1 %v2040_v10 }
 0x388   : > { %v1970_v27 = vpop.permute.xlu0 %1969 }
 0x389   : > { %v7375_v23 = vsel %vm1925_vm15, -1e+30, %v1970_v27  ;;  %vm2468_vm15 = vcmask 23552  }
 0x38a   : > { %v2046_v31 = vsel %vm2009_vm6, %v7375_v23, -inf }
 0x38b   : > { %2047 = vmax.xlane.f32.xlu1 %v2046_v31 }
 0x38c   : > { %v1974_v21 = vpop.permute.xlu0 %1973 }
 0x38d   : > { %v7380_v5 = vsel %vm1927_vm3, -1e+30, %v1974_v21  ;;  %vm5312_vm3 = vcmask 326656  }
 0x38e   : > { %v2052_v61 = vsel %vm2009_vm6, %v7380_v5, -inf }
 0x38f   : > { %2053 = vmax.xlane.f32.xlu1 %v2052_v61 }
 0x393   : > { %v1972_v0 = vpop.permute.xlu1 %1971 }
 0x394   : > { %v7385_v48 = vsel %vm1926_vm7, -1e+30, %v1972_v0  ;;  %vm5321_vm7 = vcmask 523264  }
 0x395   : > { %v2049_v19 = vsel %vm2009_vm6, %v7385_v48, -inf }
 0x396   : > { %2050 = vmax.xlane.f32.xlu0 %v2049_v19 }
 0x39d   : > { %v1976_v4 = vpop.permute.xlu1 %1975 }
 0x39e   : > { %v7390_v37 = vsel %vm1928_vm11, -1e+30, %v1976_v4 }
 0x39f   : > { %v2055_v39 = vsel %vm2009_vm6, %v7390_v37, -inf }
 0x3a0   : > { %2056 = vmax.xlane.f32.xlu0 %v2055_v39  ;;  %2232 = vrot.lane.b32.xlu1 %v7057_v14, %s6471_s16 }
 0x3a1   : > { %v7403_v44 = vpop.permute.xlu1 %2340 }
 0x3b6   : > { %2230 = vrot.lane.b32.xlu0 %v7031_v42, %s6471_s16  ;;  %s6481_s16 = smov 40  }
 0x3c2   : > { %v2012_v36 = vpop.xlane.xlu0 %2011 }
 0x3c3   : > { %v2058_v29 = vsub.f32 %v7211_v15, %v2012_v36 }
 0x3c5   : > { %v2074_v10 = vmul.f32 1.442695, %v2058_v29 }
 0x3c7   : > { %6253 = vpow2.f32 %v2074_v10 }
 0x3d4   : > { %v7399_v52 = vpop.eup %6253 }
 0x3d5   : > { %v2106_v47 = vsel %vm2009_vm6, %v7399_v52, 0.0 }
 0x3d6   : > { %2107 = vadd.xlane.f32.xlu1 %v2106_v47 }
 0x3da   : > { %v2021_v27 = vpop.xlane.xlu0 %2020 }
 0x3db   : > { %v2061_v31 = vsub.f32 %v7272_v41, %v2021_v27 }
 0x3dc   : > { %v2015_v14 = vpop.xlane.xlu1 %2014 }
 0x3dd   : > { %v2059_v32 = vsub.f32 %v7270_v35, %v2015_v14  ;;  %v2080_v42 = vmul.f32 1.442695, %v2061_v31 }
 0x3de   : > { %v2018_v56 = vpop.xlane.xlu0 %2017 }
 0x3df   : > { %v2076_v21 = vmul.f32 1.442695, %v2059_v32  ;;  %v2060_v15 = vsub.f32 %v7287_v55, %v2018_v56 }
 0x3e1   : > { %6255 = vpow2.f32 %v2076_v21  ;;  %v2078_v61 = vmul.f32 1.442695, %v2060_v15 }
 0x3e2   : > { %6257 = vpow2.f32 %v2080_v42  ;;  %v2024_v34 = vpop.xlane.xlu1 %2023  ;;  %v2027_v40 = vpop.xlane.xlu0 %2026 }
 0x3e3   : > { %6259 = vpow2.f32 %v2078_v61  ;;  %v2062_v0 = vsub.f32 %v7300_v49, %v2024_v34  ;;  %v2063_v53 = vsub.f32 %v7292_v62, %v2027_v40 }
 0x3e5   : > { %v2082_v19 = vmul.f32 1.442695, %v2062_v0  ;;  %v2084_v41 = vmul.f32 1.442695, %v2063_v53 }
 0x3e7   : > { %6261 = vpow2.f32 %v2082_v19 }
 0x3e8   : > { %6263 = vpow2.f32 %v2084_v41 }
 0x3ea   : > { %v2033_v35 = vpop.xlane.xlu0 %2032 }
 0x3eb   : > { %v2065_v59 = vsub.f32 %v7313_v2, %v2033_v35 }
 0x3ed   : > { %v2088_v4 = vmul.f32 1.442695, %v2065_v59 }
 0x3ee   : > { %v7411_v39 = vpop.eup %6255  ;;  %v2030_v55 = vpop.xlane.xlu1 %2029 }
 0x3ef   : > { %v7413_v36 = vpop.eup %6257  ;;  %6265 = vpow2.f32 %v2088_v4  ;;  %v2064_v29 = vsub.f32 %v7320_v50, %v2030_v55  ;;  %v2109_v49 = vsel %vm2009_vm6, %v7411_v39, 0.0 }
 0x3f0   : > { %v7418_v62 = vpop.eup %6259  ;;  %2110 = vadd.xlane.f32.xlu0 %v2109_v49  ;;  %v2115_v2 = vsel %vm2009_vm6, %v7413_v36, 0.0 }
 0x3f1   : > { %v2086_v10 = vmul.f32 1.442695, %v2064_v29  ;;  %v2112_v47 = vsel %vm2009_vm6, %v7418_v62, 0.0 }
 0x3f2   : > { %2113 = vadd.xlane.f32.xlu1 %v2112_v47 }
 0x3f3   : > { %6267 = vpow2.f32 %v2086_v10 }
 0x3f4   : > { %v7424_v27 = vpop.eup %6261  ;;  %2116 = vadd.xlane.f32.xlu0 %v2115_v2 }
 0x3f5   : > { %v7426_v31 = vpop.eup %6263  ;;  %v2118_v50 = vsel %vm2009_vm6, %v7424_v27, 0.0 }
 0x3f6   : > { %2119 = vadd.xlane.f32.xlu1 %v2118_v50  ;;  %v2121_v14 = vsel %vm2009_vm6, %v7426_v31, 0.0 }
 0x3f8   : > { %2122 = vadd.xlane.f32.xlu0 %v2121_v14 }
 0x3fc   : > { %v7432_v32 = vpop.eup %6265 }
 0x3fd   : > { %v2039_v42 = vpop.xlane.xlu0 %2038  ;;  %v2127_v56 = vsel %vm2009_vm6, %v7432_v32, 0.0 }
 0x3fe   : > { %v2067_v21 = vsub.f32 %v7341_v3, %v2039_v42  ;;  %2128 = vadd.xlane.f32.xlu0 %v2127_v56 }
 0x400   : > { %v7437_v15 = vpop.eup %6267  ;;  %v2092_v61 = vmul.f32 1.442695, %v2067_v21 }
 0x401   : > { %v2036_v34 = vpop.xlane.xlu1 %2035  ;;  %v2124_v40 = vsel %vm2009_vm6, %v7437_v15, 0.0 }
 0x402   : > { %6269 = vpow2.f32 %v2092_v61  ;;  %v2066_v0 = vsub.f32 %v7347_v24, %v2036_v34  ;;  %2125 = vadd.xlane.f32.xlu1 %v2124_v40 }
 0x404   : > { %v2090_v53 = vmul.f32 1.442695, %v2066_v0 }
 0x406   : > { %6271 = vpow2.f32 %v2090_v53 }
 0x40c   : > { %v2045_v19 = vpop.xlane.xlu0 %2044 }
 0x40d   : > { %v2069_v41 = vsub.f32 %v7363_v43, %v2045_v19 }
 0x40f   : > { %v7443_v35 = vpop.eup %6269  ;;  %v2096_v3 = vmul.f32 1.442695, %v2069_v41 }
 0x410   : > { %v2042_v59 = vpop.xlane.xlu1 %2041  ;;  %v2133_v4 = vsel %vm2009_vm6, %v7443_v35, 0.0 }
 0x411   : > { %6273 = vpow2.f32 %v2096_v3  ;;  %v2068_v55 = vsub.f32 %v7370_v8, %v2042_v59  ;;  %2134 = vadd.xlane.f32.xlu0 %v2133_v4 }
 0x413   : > { %v7448_v29 = vpop.eup %6271  ;;  %v2094_v24 = vmul.f32 1.442695, %v2068_v55  ;;  %v7481_v55 = vld [vmem:[%s6858_s30 + $0x70] sm:$0xff] }
 0x414   : > { %v2048_v49 = vpop.xlane.xlu1 %2047  ;;  %v2130_v10 = vsel %vm2009_vm6, %v7448_v29, 0.0 }
 0x415   : > { %6275 = vpow2.f32 %v2094_v24  ;;  %v2070_v43 = vsub.f32 %v7375_v23, %v2048_v49  ;;  %2131 = vadd.xlane.f32.xlu1 %v2130_v10  ;;  %v7486_v24 = vld [vmem:[%s6858_s30 + $0x78] sm:$0xff] }
 0x417   : > { %v2098_v47 = vmul.f32 1.442695, %v2070_v43 }
 0x418   : > { %v2054_v23 = vpop.xlane.xlu1 %2053 }
 0x419   : > { %6277 = vpow2.f32 %v2098_v47  ;;  %v2072_v40 = vsub.f32 %v7380_v5, %v2054_v23 }
 0x41b   : > { %v2102_v53 = vmul.f32 1.442695, %v2072_v40 }
 0x41c   : > { %v7490_v49 = vpop.permute.xlu1 %2232 }
 0x41e   : > { %v7453_v2 = vpop.eup %6273 }
 0x41f   : > { %v2051_v50 = vpop.xlane.xlu0 %2050  ;;  %v2139_v8 = vsel %vm2009_vm6, %v7453_v2, 0.0 }
 0x420   : > { %v2071_v14 = vsub.f32 %v7385_v48, %v2051_v50  ;;  %2140 = vadd.xlane.f32.xlu0 %v2139_v8 }
 0x422   : > { %v7458_v42 = vpop.eup %6275  ;;  %v2100_v56 = vmul.f32 1.442695, %v2071_v14 }
 0x423   : > { %v2136_v21 = vsel %vm2009_vm6, %v7458_v42, 0.0 }
 0x424   : > { %6279 = vpow2.f32 %v2100_v56  ;;  %2137 = vadd.xlane.f32.xlu1 %v2136_v21 }
 0x426   : > { %v7462_v61 = vpop.eup %6277 }
 0x427   : > { %v2142_v34 = vsel %vm2009_vm6, %v7462_v61, 0.0 }
 0x428   : > { %2143 = vadd.xlane.f32.xlu1 %v2142_v34 }
 0x429   : > { %v2057_v48 = vpop.xlane.xlu0 %2056 }
 0x42a   : > { %v2073_v0 = vsub.f32 %v7390_v37, %v2057_v48 }
 0x42c   : > { %v2104_v19 = vmul.f32 1.442695, %v2073_v0 }
 0x42d   : > { %v7492_v43 = vpop.permute.xlu0 %2230 }
 0x42e   : > { %6281 = vpow2.f32 %v2104_v19 }
 0x42f   : > { %6283 = vpow2.f32 %v2102_v53 }
 0x431   : > { %v7468_v41 = vpop.eup %6279 }
 0x432   : > { %v2145_v3 = vsel %vm2009_vm6, %v7468_v41, 0.0 }
 0x433   : > { %2146 = vadd.xlane.f32.xlu0 %v2145_v3 }
 0x43b   : > { %v7472_v59 = vpop.eup %6281 }
 0x43c   : > { %v2151_v5 = vsel %vm2009_vm6, %v7472_v59, 0.0  ;;  %v7476_v4 = vpop.eup %6283 }
 0x43d   : > { %2152 = vadd.xlane.f32.xlu1 %v2151_v5  ;;  %v2148_v37 = vsel %vm2009_vm6, %v7476_v4, 0.0 }
 0x441   : > { %2149 = vadd.xlane.f32.xlu1 %v2148_v37 }
 0x449   : > { %2342 = vrot.lane.b32.xlu0 %v7481_v55, %s6472_s18 }
 0x452   : > { %2344 = vrot.lane.b32.xlu1 %v7486_v24, %s6472_s18  ;;  %s6474_s18 = smov 64  }
 0x45f   : > { %v2108_v10 = vpop.xlane.xlu1 %2107 }
 0x460   : > { %6285 = vrcp.f32 %v2108_v10 }
 0x46d   : > { %v6286_v56 = vpop.eup %6285 }
 0x46e   : > { %v2170_v34 = vmul.f32 %v6286_v56, %v7399_v52 }
 0x470   : > { %v2250_v5 = vmul.f32 %v6999_v51, %v2170_v34 }
 0x479   : > { %v2111_v47 = vpop.xlane.xlu0 %2110 }
 0x47a   : > { %6287 = vrcp.f32 %v2111_v47 }
 0x47b   : > { %v2114_v50 = vpop.xlane.xlu1 %2113 }
 0x47c   : > { %6289 = vrcp.f32 %v2114_v50 }
 0x47d   : > { %v2117_v8 = vpop.xlane.xlu0 %2116 }
 0x47e   : > { %6291 = vrcp.f32 %v2117_v8 }
 0x47f   : > { %v2120_v14 = vpop.xlane.xlu1 %2119 }
 0x480   : > { %6293 = vrcp.f32 %v2120_v14 }
 0x481   : > { %v2123_v21 = vpop.xlane.xlu0 %2122 }
 0x482   : > { %6295 = vrcp.f32 %v2123_v21 }
 0x487   : > { %v6288_v23 = vpop.eup %6287  ;;  %v2129_v10 = vpop.xlane.xlu0 %2128 }
 0x488   : > { %v2171_v40 = vmul.f32 %v6288_v23, %v7411_v39 }
 0x489   : > { %v6290_v48 = vpop.eup %6289 }
 0x48a   : > { %v2363_v0 = vmul.f32 %v7078_v20, %v2171_v40  ;;  %v2251_v53 = vmul.f32 %v7071_v1, %v2171_v40  ;;  %v2172_v19 = vmul.f32 %v6290_v48, %v7418_v62  ;;  %v2266_v1 = vsel %vm2009_vm6, %v2250_v5, 0.0 }
 0x48b   : > { %v2126_v3 = vpop.xlane.xlu1 %2125  ;;  %v6292_v37 = vpop.eup %6291  ;;  %v2362_v20 = vmul.f32 %v7004_v54, %v2170_v34 }
 0x48c   : > { %6297 = vrcp.f32 %v2126_v3  ;;  %v2381_v47 = vsel %vm2009_vm6, %v2363_v0, 0.0  ;;  %v2269_v52 = vsel %vm2009_vm6, %v2251_v53, 0.0  ;;  %v2252_v50 = vmul.f32 %v7009_v63, %v2172_v19  ;;  %v8342_v3 = vld [vmem:[#allocation19_spill] sm:$0xff] }
 0x48d   : > { %v6294_v39 = vpop.eup %6293  ;;  %2382 = vadd.xlane.f32.xlu0 %v2381_v47  ;;  %2270 = vadd.xlane.f32.xlu1 %v2269_v52  ;;  %6299 = vrcp.f32 %v2129_v10  ;;  %v2364_v51 = vmul.f32 %v7018_v11, %v2172_v19  ;;  %v2173_v14 = vmul.f32 %v6292_v37, %v7413_v36  ;;  %v2378_v63 = vsel %vm2009_vm6, %v2362_v20, 0.0 }
 0x48e   : > { %v2272_v62 = vsel %vm2009_vm6, %v2252_v50, 0.0  ;;  %v2174_v8 = vmul.f32 %v6294_v39, %v7424_v27 }
 0x48f   : > { %v2384_v56 = vsel %vm2009_vm6, %v2364_v51, 0.0  ;;  %v2253_v23 = vmul.f32 %v7083_v25, %v2173_v14  ;;  %v6296_v40 = vpop.eup %6295  ;;  %v2365_v54 = vmul.f32 %v7087_v6, %v2173_v14 }
 0x490   : > { %v2254_v21 = vmul.f32 %v7026_v33, %v2174_v8  ;;  %v2366_v36 = vmul.f32 %v7037_v22, %v2174_v8  ;;  %v2175_v34 = vmul.f32 %v6296_v40, %v7426_v31 }
 0x491   : > { %2267 = vadd.xlane.f32.xlu0 %v2266_v1  ;;  %2273 = vadd.xlane.f32.xlu1 %v2272_v62  ;;  %v2275_v27 = vsel %vm2009_vm6, %v2253_v23, 0.0  ;;  %v2387_v6 = vsel %vm2009_vm6, %v2365_v54, 0.0 }
 0x492   : > { %v2278_v11 = vsel %vm2009_vm6, %v2254_v21, 0.0  ;;  %v2390_v53 = vsel %vm2009_vm6, %v2366_v36, 0.0  ;;  %v2255_v5 = vmul.f32 %v8342_v3, %v2175_v34  ;;  %v2367_v31 = vmul.f32 %v7188_v13, %v2175_v34 }
 0x494   : > { %v2281_v10 = vsel %vm2009_vm6, %v2255_v5, 0.0  ;;  %v2393_v13 = vsel %vm2009_vm6, %v2367_v31, 0.0 }
 0x495   : > { %2379 = vadd.xlane.f32.xlu0 %v2378_v63  ;;  %2385 = vadd.xlane.f32.xlu1 %v2384_v56 }
 0x499   : > { %v6298_v48 = vpop.eup %6297  ;;  %2279 = vadd.xlane.f32.xlu1 %v2278_v11  ;;  %2276 = vadd.xlane.f32.xlu0 %v2275_v27 }
 0x49a   : > { %v2135_v0 = vpop.xlane.xlu0 %2134  ;;  %v2176_v33 = vmul.f32 %v6298_v48, %v7437_v15  ;;  %v6300_v25 = vpop.eup %6299  ;;  %v2460_v15 = vld [vmem:[%s8295_s6] sm:$0x7] }
 0x49b   : > { %6301 = vrcp.f32 %v2135_v0  ;;  %5838 = vmatprep.subr.msk.mxu0 %vm2517_vm12, %v2460_v15 }
 0x49c   : > { %v2256_v19 = vmul.f32 %v7141_v16, %v2176_v33  ;;  %v2368_v47 = vmul.f32 %v7155_v30, %v2176_v33  ;;  %v2177_v16 = vmul.f32 %v6300_v25, %v7432_v32  ;;  %5839 = vmatpush3.msk.msra.mxu0 %vm2517_vm12, %v2460_v15 }
 0x49d   : > { %2391 = vadd.xlane.f32.xlu1 %v2390_v53  ;;  %2388 = vadd.xlane.f32.xlu0 %v2387_v6 }
 0x49e   : > { %v2132_v22 = vpop.xlane.xlu1 %2131  ;;  %v2284_v37 = vsel %vm2009_vm6, %v2256_v19, 0.0  ;;  %v2396_v52 = vsel %vm2009_vm6, %v2368_v47, 0.0  ;;  %v2257_v50 = vmul.f32 %v7197_v38, %v2177_v16  ;;  %v2369_v20 = vmul.f32 %v7206_v9, %v2177_v16 }
 0x49f   : > { %6303 = vrcp.f32 %v2132_v22 }
 0x4a0   : > { %v2287_v1 = vsel %vm2009_vm6, %v2257_v50, 0.0  ;;  %v2399_v51 = vsel %vm2009_vm6, %v2369_v20, 0.0 }
 0x4a1   : > { %2285 = vadd.xlane.f32.xlu1 %v2284_v37  ;;  %2282 = vadd.xlane.f32.xlu0 %v2281_v10 }
 0x4a5   : > { %2397 = vadd.xlane.f32.xlu1 %v2396_v52  ;;  %2394 = vadd.xlane.f32.xlu0 %v2393_v13 }
 0x4a8   : > { %v6302_v39 = vpop.eup %6301 }
 0x4a9   : > { %2288 = vadd.xlane.f32.xlu0 %v2287_v1  ;;  %v2141_v30 = vpop.xlane.xlu0 %2140  ;;  %v2179_v32 = vmul.f32 %v6302_v39, %v7443_v35 }
 0x4aa   : > { %6305 = vrcp.f32 %v2141_v30  ;;  %v6415_v30 = vld [vmem:[%s6858_s30 + $0x8] sm:$0xff] }
 0x4ab   : > { %v2259_v8 = vmul.f32 %v7213_v28, %v2179_v32  ;;  %v2371_v9 = vmul.f32 %v7218_v45, %v2179_v32 }
 0x4ac   : > { %v6304_v62 = vpop.eup %6303 }
 0x4ad   : > { %v2138_v14 = vpop.xlane.xlu1 %2137  ;;  %2400 = vadd.xlane.f32.xlu0 %v2399_v51  ;;  %v2178_v38 = vmul.f32 %v6304_v62, %v7448_v29  ;;  %v2293_v56 = vsel %vm2009_vm6, %v2259_v8, 0.0  ;;  %v2405_v28 = vsel %vm2009_vm6, %v2371_v9, 0.0  ;;  %v6416_v62 = vld [vmem:[%s6858_s30] sm:$0xff] }
 0x4ae   : > { %6307 = vrcp.f32 %v2138_v14 }
 0x4af   : > { %v2258_v63 = vmul.f32 %v7167_v58, %v2178_v38  ;;  %v2370_v23 = vmul.f32 %v7172_v18, %v2178_v38 }
 0x4b1   : > { %v2144_v21 = vpop.xlane.xlu1 %2143  ;;  %2294 = vadd.xlane.f32.xlu0 %v2293_v56  ;;  %v2290_v35 = vsel %vm2009_vm6, %v2258_v63, 0.0  ;;  %v2402_v29 = vsel %vm2009_vm6, %v2370_v23, 0.0  ;;  %v6417_v56 = vld [vmem:[%s6858_s30 + $0x10] sm:$0xff] }
 0x4b2   : > { %6309 = vrcp.f32 %v2144_v21  ;;  %2291 = vadd.xlane.f32.xlu1 %v2290_v35  ;;  %v7597_v21 = vld [vmem:[%s8297_s8 + $0x10] sm:$0xff] }
 0x4b5   : > { %2406 = vadd.xlane.f32.xlu0 %v2405_v28 }
 0x4b6   : > { %2403 = vadd.xlane.f32.xlu1 %v2402_v29  ;;  %v7606_v29 = vld [vmem:[%s8297_s8 + $0x8] sm:$0xff] }
 0x4b7   : > { %v6306_v40 = vpop.eup %6305 }
 0x4b8   : > { %v2181_v58 = vmul.f32 %v6306_v40, %v7453_v2  ;;  %v7613_v40 = vld [vmem:[%s8297_s8] sm:$0xff] }
 0x4ba   : > { %v2261_v54 = vmul.f32 %v7223_v7, %v2181_v58  ;;  %v2373_v18 = vmul.f32 %v7229_v17, %v2181_v58  ;;  %v6418_v58 = vld [vmem:[%s6858_s30 + $0x20] sm:$0xff] }
 0x4bb   : > { %v6308_v45 = vpop.eup %6307 }
 0x4bc   : > { %v2147_v11 = vpop.xlane.xlu0 %2146  ;;  %v2299_v27 = vsel %vm2009_vm6, %v2261_v54, 0.0  ;;  %v2180_v36 = vmul.f32 %v6308_v45, %v7458_v42  ;;  %v2411_v33 = vsel %vm2009_vm6, %v2373_v18, 0.0  ;;  %v6419_v45 = vld [vmem:[%s6858_s30 + $0x18] sm:$0xff] }
 0x4bd   : > { %6311 = vrcp.f32 %v2147_v11  ;;  %2300 = vadd.xlane.f32.xlu0 %v2299_v27 }
 0x4be   : > { %v2260_v34 = vmul.f32 %v7176_v26, %v2180_v36  ;;  %v2372_v2 = vmul.f32 %v7182_v46, %v2180_v36 }
 0x4bf   : > { %v6310_v48 = vpop.eup %6309 }
 0x4c0   : > { %v2296_v0 = vsel %vm2009_vm6, %v2260_v34, 0.0  ;;  %v2182_v7 = vmul.f32 %v6310_v48, %v7462_v61  ;;  %v2408_v25 = vsel %vm2009_vm6, %v2372_v2, 0.0  ;;  %v2343_v16 = vpop.permute.xlu0 %2342 }
 0x4c1   : > { %2297 = vadd.xlane.f32.xlu1 %v2296_v0  ;;  %2412 = vadd.xlane.f32.xlu0 %v2411_v33  ;;  %v6420_v33 = vld [vmem:[%s6858_s30 + $0x30] sm:$0xff] }
 0x4c2   : > { %v2262_v42 = vmul.f32 %v7186_v57, %v2182_v7  ;;  %v2374_v53 = vmul.f32 %v7195_v12, %v2182_v7  ;;  %v7569_v12 = vld [vmem:[%s8297_s8 + $0x18] sm:$0xff]  ;;  %v6421_v7 = vld [vmem:[%s6858_s30 + $0x28] sm:$0xff] }
 0x4c3   : > { %5896 = vmatprep.subr.mxu0 %v7569_v12 }
 0x4c4   : > { %v2302_v26 = vsel %vm2009_vm6, %v2262_v42, 0.0  ;;  %v2414_v61 = vsel %vm2009_vm6, %v2374_v53, 0.0 }
 0x4c5   : > { %2409 = vadd.xlane.f32.xlu1 %v2408_v25 }
 0x4c6   : > { %v2153_v17 = vpop.xlane.xlu1 %2152 }
 0x4c7   : > { %6313 = vrcp.f32 %v2153_v17 }
 0x4c9   : > { %2303 = vadd.xlane.f32.xlu1 %v2302_v26 }
 0x4ca   : > { %v6312_v6 = vpop.eup %6311  ;;  %v2150_v19 = vpop.xlane.xlu1 %2149 }
 0x4cb   : > { %6315 = vrcp.f32 %v2150_v19  ;;  %v2183_v46 = vmul.f32 %v6312_v6, %v7468_v41  ;;  %v6422_v19 = vld [vmem:[%s6858_s30 + $0x38] sm:$0xff] }
 0x4cd   : > { %2415 = vadd.xlane.f32.xlu1 %v2414_v61  ;;  %v2263_v3 = vmul.f32 %v7242_v60, %v2183_v46  ;;  %v2375_v5 = vmul.f32 %v7403_v44, %v2183_v46 }
 0x4ce   : > { %v2345_v15 = vpop.permute.xlu1 %2344 }
 0x4cf   : > { %v2305_v57 = vsel %vm2009_vm6, %v2263_v3, 0.0  ;;  %v2417_v22 = vsel %vm2009_vm6, %v2375_v5, 0.0 }
 0x4d0   : > { %2306 = vadd.xlane.f32.xlu0 %v2305_v57 }
 0x4d4   : > { %v6314_v41 = vpop.eup %6313  ;;  %2418 = vadd.xlane.f32.xlu0 %v2417_v22 }
 0x4d5   : > { %v2185_v31 = vmul.f32 %v6314_v41, %v7472_v59  ;;  %v6423_v41 = vld [vmem:[%s6858_s30 + $0x40] sm:$0xff] }
 0x4d7   : > { %v2265_v60 = vmul.f32 %v7490_v49, %v2185_v31  ;;  %v2377_v10 = vmul.f32 %v2345_v15, %v2185_v31 }
 0x4d8   : > { %v6316_v37 = vpop.eup %6315 }
 0x4d9   : > { %v2311_v44 = vsel %vm2009_vm6, %v2265_v60, 0.0  ;;  %v2184_v47 = vmul.f32 %v6316_v37, %v7476_v4  ;;  %v2423_v39 = vsel %vm2009_vm6, %v2377_v10, 0.0  ;;  %v5507_v4 = vld [vmem:[%s8298_s9] ss:$0 sm:$0xff]  ;;  %v6424_v60 = vld [vmem:[%s6858_s30 + $0x48] sm:$0xff] }
 0x4da   : > { %2312 = vadd.xlane.f32.xlu0 %v2311_v44 }
 0x4db   : > { %v2264_v52 = vmul.f32 %v7492_v43, %v2184_v47  ;;  %v2376_v13 = vmul.f32 %v2343_v16, %v2184_v47 }
 0x4dd   : > { %v2308_v50 = vsel %vm2009_vm6, %v2264_v52, 0.0  ;;  %v2420_v59 = vsel %vm2009_vm6, %v2376_v13, 0.0  ;;  %v6425_v13 = vld [vmem:[%s6858_s30 + $0x50] sm:$0xff]  ;;  %vm5301_vm6 = vcmask 64512  }
 0x4de   : > { %2309 = vadd.xlane.f32.xlu1 %v2308_v50  ;;  %2424 = vadd.xlane.f32.xlu0 %v2423_v39 }
 0x4e2   : > { %2421 = vadd.xlane.f32.xlu1 %v2420_v59  ;;  %v6426_v59 = vld [vmem:[%s6858_s30 + $0x58] sm:$0xff] }
 0x4f3   : > { %2933 = vrot.lane.b32.xlu1 %v5507_v4, %s6474_s18 }
 0x516   : > { %v2271_v49 = vpop.xlane.xlu1 %2270  ;;  %v2383_v43 = vpop.xlane.xlu0 %2382 }
 0x517   : > { %v2428_v32 = vsel %vm2426_vm13, %v6415_v30, %v2271_v49 }
 0x518   : > { %v2445_v63 = vsel %vm2443_vm14, %v2428_v32, %v2383_v43 }
 0x51a   : > { %v2274_v1 = vpop.xlane.xlu1 %2273  ;;  %v2268_v20 = vpop.xlane.xlu0 %2267 }
 0x51b   : > { %v2427_v51 = vsel %vm2426_vm13, %v6416_v62, %v2268_v20  ;;  %v2429_v9 = vsel %vm2426_vm13, %v6417_v56, %v2274_v1  ;;  %v6427_v20 = vld [vmem:[%s6858_s30 + $0x60] sm:$0xff] }
 0x51e   : > { %v2386_v8 = vpop.xlane.xlu1 %2385  ;;  %v2380_v14 = vpop.xlane.xlu0 %2379 }
 0x51f   : > { %v2444_v38 = vsel %vm2443_vm14, %v2427_v51, %v2380_v14  ;;  %v2446_v35 = vsel %vm2443_vm14, %v2429_v9, %v2386_v8  ;;  %v6428_v8 = vld [vmem:[%s6858_s30 + $0x68] sm:$0xff]  ;;  %s6480_s30 = smov 32  }
 0x520   : > { %5840 = vmatprep.mubr.msk.f32.mxu0 %vm2468_vm15, %v2444_v38 }
 0x521   : > { %5841 = vmatmul.mubr.msk.f32.vlgmr.msra.gmra.mxu0 %vm2468_vm15, %v2445_v63 }
 0x522   : > { %v2280_v23 = vpop.xlane.xlu1 %2279  ;;  %5843 = vmatprep.mubr.msk.f32.mxu0 %vm2468_vm15, %v2446_v35  ;;  %v2277_v28 = vpop.xlane.xlu0 %2276  ;;  %5897 = vmatpush3.msra.mxu0 %v7569_v12 }
 0x523   : > { %5898 = vmatprep.subr.mxu0 %v7597_v21  ;;  %v2431_v54 = vsel %vm2426_vm13, %v6418_v58, %v2280_v23  ;;  %v2430_v11 = vsel %vm2426_vm13, %v6419_v45, %v2277_v28 }
 0x524   : > { %5899 = vmatpush3.msra.mxu0 %v7597_v21 }
 0x525   : > { %5900 = vmatprep.subr.mxu0 %v7606_v29 }
 0x526   : > { %v2392_v27 = vpop.xlane.xlu1 %2391  ;;  %v2389_v36 = vpop.xlane.xlu0 %2388  ;;  %5901 = vmatpush3.msra.mxu0 %v7606_v29 }
 0x527   : > { %v2448_v18 = vsel %vm2443_vm14, %v2431_v54, %v2392_v27  ;;  %v2447_v34 = vsel %vm2443_vm14, %v2430_v11, %v2389_v36  ;;  %5902 = vmatprep.subr.mxu0 %v7613_v40  ;;  %v6475_v11 = vmov 0.0  }
 0x528   : > { %5844 = vmatmul.mubr.msk.f32.gmra.mxu0 %vm2468_vm15, %v2447_v34 }
 0x529   : > { %5846 = vmatprep.mubr.msk.f32.mxu0 %vm2468_vm15, %v2448_v18  ;;  %5903 = vmatpush3.msra.mxu0 %v7613_v40 }
 0x52a   : > { %v2286_v48 = vpop.xlane.xlu1 %2285  ;;  %v2283_v0 = vpop.xlane.xlu0 %2282 }
 0x52b   : > { %v2433_v2 = vsel %vm2426_vm13, %v6420_v33, %v2286_v48  ;;  %v2432_v25 = vsel %vm2426_vm13, %v6421_v7, %v2283_v0 }
 0x52e   : > { %v2398_v42 = vpop.xlane.xlu1 %2397  ;;  %v2395_v17 = vpop.xlane.xlu0 %2394 }
 0x52f   : > { %v2450_v26 = vsel %vm2443_vm14, %v2433_v2, %v2398_v42  ;;  %v2449_v53 = vsel %vm2443_vm14, %v2432_v25, %v2395_v17 }
 0x530   : > { %5847 = vmatmul.mubr.msk.f32.gmra.mxu0 %vm2468_vm15, %v2449_v53 }
 0x531   : > { %5849 = vmatprep.mubr.msk.f32.mxu0 %vm2468_vm15, %v2450_v26 }
 0x532   : > { %v2289_v6 = vpop.xlane.xlu0 %2288 }
 0x533   : > { %v2434_v46 = vsel %vm2426_vm13, %v6422_v19, %v2289_v6 }
 0x536   : > { %v2401_v61 = vpop.xlane.xlu0 %2400 }
 0x537   : > { %v2451_v3 = vsel %vm2443_vm14, %v2434_v46, %v2401_v61 }
 0x538   : > { %5850 = vmatmul.mubr.msk.f32.gmra.mxu0 %vm2468_vm15, %v2451_v3 }
 0x53a   : > { %v2295_v57 = vpop.xlane.xlu0 %2294 }
 0x53b   : > { %v2292_v5 = vpop.xlane.xlu1 %2291  ;;  %v2436_v37 = vsel %vm2426_vm13, %v6424_v60, %v2295_v57  ;;  %v7708_v57 = vld [vmem:[%s8296_s7] ss:$0 sm:$0xff] }
 0x53c   : > { %v2435_v31 = vsel %vm2426_vm13, %v6423_v41, %v2292_v5 }
 0x53e   : > { %v2407_v22 = vpop.xlane.xlu0 %2406 }
 0x53f   : > { %v2404_v15 = vpop.xlane.xlu1 %2403  ;;  %v2453_v44 = vsel %vm2443_vm14, %v2436_v37, %v2407_v22 }
 0x540   : > { %v2452_v10 = vsel %vm2443_vm14, %v2435_v31, %v2404_v15 }
 0x541   : > { %5852 = vmatprep.mubr.msk.f32.mxu0 %vm2468_vm15, %v2452_v10 }
 0x542   : > { %5853 = vmatmul.mubr.msk.f32.gmra.mxu0 %vm2468_vm15, %v2453_v44 }
 0x546   : > { %v2301_v47 = vpop.xlane.xlu0 %2300 }
 0x547   : > { %v2438_v4 = vsel %vm2426_vm13, %v6426_v59, %v2301_v47 }
 0x54a   : > { %v2298_v16 = vpop.xlane.xlu1 %2297  ;;  %v2413_v52 = vpop.xlane.xlu0 %2412 }
 0x54b   : > { %v2437_v50 = vsel %vm2426_vm13, %v6425_v13, %v2298_v16  ;;  %v2455_v43 = vsel %vm2443_vm14, %v2438_v4, %v2413_v52 }
 0x54e   : > { %v2410_v39 = vpop.xlane.xlu1 %2409 }
 0x54f   : > { %v2454_v49 = vsel %vm2443_vm14, %v2437_v50, %v2410_v39 }
 0x550   : > { %5855 = vmatprep.mubr.msk.f32.mxu0 %vm2468_vm15, %v2454_v49 }
 0x551   : > { %5856 = vmatmul.mubr.msk.f32.gmra.mxu0 %vm2468_vm15, %v2455_v43 }
 0x552   : > { %v2304_v1 = vpop.xlane.xlu1 %2303 }
 0x553   : > { %v2439_v30 = vsel %vm2426_vm13, %v6427_v20, %v2304_v1  ;;  %v7717_v20 = vld [vmem:[%s8300_s11 + $0x18] sm:$0xff] }
 0x554   : > { %5907 = vmatprep.subr.mxu1 %v7717_v20 }
 0x555   : > { %5908 = vmatpush3.msra.mxu1 %v7717_v20 }
 0x556   : > { %v2416_v32 = vpop.xlane.xlu1 %2415 }
 0x557   : > { %v2456_v62 = vsel %vm2443_vm14, %v2439_v30, %v2416_v32  ;;  %v7722_v30 = vld [vmem:[%s8300_s11 + $0x10] sm:$0xff]  ;;  %v7729_v32 = vld [vmem:[%s8300_s11 + $0x8] sm:$0xff] }
 0x558   : > { %5858 = vmatprep.mubr.msk.f32.mxu0 %vm2468_vm15, %v2456_v62  ;;  %5909 = vmatprep.subr.mxu1 %v7722_v30  ;;  %v7736_v62 = vld [vmem:[%s8300_s11] sm:$0xff] }
 0x559   : > { %v2307_v51 = vpop.xlane.xlu0 %2306  ;;  %5910 = vmatpush3.msra.mxu1 %v7722_v30 }
 0x55a   : > { %v2440_v14 = vsel %vm2426_vm13, %v6428_v8, %v2307_v51  ;;  %5911 = vmatprep.subr.mxu1 %v7729_v32 }
 0x55b   : > { %5912 = vmatpush3.msra.mxu1 %v7729_v32 }
 0x55c   : > { %5913 = vmatprep.subr.mxu1 %v7736_v62 }
 0x55d   : > { %v2419_v38 = vpop.xlane.xlu0 %2418  ;;  %5914 = vmatpush3.msra.mxu1 %v7736_v62 }
 0x55e   : > { %v2457_v63 = vsel %vm2443_vm14, %v2440_v14, %v2419_v38  ;;  %5929 = vmatprep.subr.mxu1 %v7569_v12 }
 0x55f   : > { %5859 = vmatmul.mubr.msk.f32.gmra.mxu0 %vm2468_vm15, %v2457_v63 }
 0x563   : > { %v2313_v56 = vpop.xlane.xlu0 %2312 }
 0x564   : > { %v2442_v58 = vsel %vm2426_vm13, %v7486_v24, %v2313_v56 }
 0x567   : > { %v2310_v9 = vpop.xlane.xlu1 %2309  ;;  %v2425_v35 = vpop.xlane.xlu0 %2424 }
 0x568   : > { %v2441_v23 = vsel %vm2426_vm13, %v7481_v55, %v2310_v9  ;;  %v2459_v45 = vsel %vm2443_vm14, %v2442_v58, %v2425_v35 }
 0x56b   : > { %v2422_v28 = vpop.xlane.xlu1 %2421 }
 0x56c   : > { %v2458_v54 = vsel %vm2443_vm14, %v2441_v23, %v2422_v28 }
 0x56d   : > { %5861 = vmatprep.mubr.msk.f32.mxu0 %vm2468_vm15, %v2458_v54 }
 0x56e   : > { %5862 = vmatmul.mubr.msk.f32.gmra.mxu0 %vm2468_vm15, %v2459_v45 }
 0x56f   : > { %5904 = vmatprep.mubr.f32.mxu0 %v6475_v11  ;;  %v7699_v6 = vpop.permute.xlu1 %2933 }
 0x572   : > { %5905 = vmatmul.mubr.f32.vlgmr.msra.gmra.mxu0 %v6475_v11 }
 0x5e1   : > { %v5842_v27 = vpop.f32.mrf.mxu0 }
 0x5e2   : > { %v2593_v5 = vadd.f32 %v5842_v27, %v7708_v57  ;;  %v7767_v27 = vld [vmem:[%s8302_s13 + $0x18] sm:$0xff] }
 0x5e3   : > { %v2587_v36 = vpop.f32.mrf.mxu0  ;;  %5918 = vmatprep.subr.mxu0 %v7767_v27 }
 0x5e4   : > { %v2588_v22 = vadd.f32 %v7708_v57, %v2587_v36  ;;  %5919 = vmatpush3.msra.mxu0 %v7767_v27  ;;  %v7775_v36 = vld [vmem:[%s8302_s13 + $0x10] sm:$0xff] }
 0x5e5   : > { %5920 = vmatprep.subr.mxu0 %v7775_v36 }
 0x5e6   : > { %5921 = vmatpush3.msra.mxu0 %v7775_v36 }
 0x5e8   : > { %v7671_v18 = vpop.f32.mrf.mxu0 }
 0x5ea   : > { %v7673_v55 = vpop.f32.mrf.mxu0 }
 0x5f0   : > { %v7675_v34 = vpop.f32.mrf.mxu0 }
 0x5f2   : > { %v7677_v24 = vpop.f32.mrf.mxu0 }
 0x5f8   : > { %v7679_v48 = vpop.f32.mrf.mxu0 }
 0x5fa   : > { %v7681_v0 = vpop.f32.mrf.mxu0 }
 0x602   : > { %v7683_v33 = vpop.f32.mrf.mxu0 }
 0x604   : > { %v7685_v2 = vpop.f32.mrf.mxu0 }
 0x611   : > { %v7687_v7 = vpop.f32.mrf.mxu0 }
 0x613   : > { %v7689_v25 = vpop.f32.mrf.mxu0 }
 0x61f   : > { %v7691_v42 = vpop.f32.mrf.mxu0 }
 0x621   : > { %v7693_v17 = vpop.f32.mrf.mxu0 }
 0x62e   : > { %v7695_v26 = vpop.f32.mrf.mxu0 }
 0x630   : > { %v7697_v53 = vpop.f32.mrf.mxu0 }
 0x632   : > { %v5906_v19 = vpop.f32.mrf.mxu0 }
 0x633   : > { %v2937_v46 = vadd.f32 %v5906_v19, %v7699_v6  ;;  %v2920_v41 = vadd.f32 %v5906_v19, %v2593_v5  ;;  %v7784_v19 = vld [vmem:[%s8302_s13 + $0x8] sm:$0xff] }
 0x634   : > { %v2910_v61 = vpop.f32.mrf.mxu0  ;;  %5922 = vmatprep.subr.mxu0 %v7784_v19 }
 0x635   : > { %v2936_v3 = vadd.f32 %v7699_v6, %v2910_v61  ;;  %2942 = vrot.lane.b32.xlu1 %v2937_v46, %s6474_s18  ;;  %v2919_v31 = vadd.f32 %v2910_v61, %v2588_v22  ;;  %v5509_v15 = vmul.f32 -1.442695, %v2920_v41  ;;  %v7791_v46 = vld [vmem:[%s8302_s13] sm:$0xff]  ;;  %5923 = vmatpush3.msra.mxu0 %v7784_v19  ;;  %v7802_v61 = vpop.f32.mrf.mxu1 }
 0x636   : > { %5924 = vmatprep.subr.mxu0 %v7791_v46 }
 0x637   : > { %2940 = vrot.lane.b32.xlu0 %v2936_v3, %s6474_s18  ;;  %v5508_v60 = vmul.f32 -1.442695, %v2919_v31  ;;  %6317 = vpow2.f32 %v5509_v15  ;;  %5925 = vmatpush3.msra.mxu0 %v7791_v46  ;;  %v6429_v3 = vld [vmem:[%s8301_s12] ss:$0 sm:$0xff]  ;;  %v8344_v31 = vld [vmem:[#allocation5_spill] sm:$0xff] }
 0x638   : > { %5940 = vmatprep.subr.mxu0 %v7717_v20  ;;  %v2744_v15 = vadd.f32 %v6429_v3, %v8344_v31 }
 0x639   : > { %6319 = vpow2.f32 %v5508_v60 }
 0x644   : > { %v6318_v37 = vpop.eup %6317 }
 0x645   : > { %v2928_v44 = vadd.f32 1.0, %v6318_v37 }
 0x646   : > { %v6320_v10 = vpop.eup %6319 }
 0x647   : > { %v2927_v47 = vadd.f32 1.0, %v6320_v10  ;;  %6321 = vrcp.f32 %v2928_v44 }
 0x649   : > { %6323 = vrcp.f32 %v2927_v47 }
 0x654   : > { %v6322_v16 = vpop.eup %6321 }
 0x655   : > { %v2961_v14 = vsub.f32 1.0, %v6322_v16  ;;  %v2973_v63 = vmul.f32 0.0, %v6322_v16 }
 0x656   : > { %v6324_v50 = vpop.eup %6323 }
 0x657   : > { %v2960_v9 = vsub.f32 1.0, %v6324_v50  ;;  %v2972_v28 = vmul.f32 0.0, %v6324_v50 }
 0x6a7   : > { %v2943_v52 = vpop.permute.xlu1 %2942 }
 0x6a8   : > { %v2947_v13 = vmul.f32 %v6322_v16, %v2943_v52 }
 0x6a9   : > { %v2941_v39 = vpop.permute.xlu0 %2940 }
 0x6aa   : > { %v2946_v59 = vmul.f32 %v6324_v50, %v2941_v39  ;;  %2952 = vrot.lane.b32.xlu0 %v2947_v13, %s6474_s18  ;;  %v2603_v39 = vadd.f32 %v7671_v18, %v7708_v57 }
 0x6ac   : > { %2950 = vrot.lane.b32.xlu1 %v2946_v59, %s6474_s18  ;;  %v2598_v59 = vadd.f32 %v7708_v57, %v7673_v55 }
 0x71c   : > { %v2953_v4 = vpop.permute.xlu0 %2952 }
 0x71d   : > { %v2957_v49 = vadd.f32 %v2953_v4, %v2593_v5  ;;  %v8343_v5 = vld [vmem:[#allocation4_spill] sm:$0xff] }
 0x71e   : > { %v2951_v43 = vpop.permute.xlu1 %2950 }
 0x71f   : > { %6325 = vtanh.f32 %v2957_v49  ;;  %v2956_v1 = vadd.f32 %v2951_v43, %v2588_v22  ;;  %v2749_v22 = vadd.f32 %v6429_v3, %v8343_v5 }
 0x721   : > { %6327 = vtanh.f32 %v2956_v1 }
 0x72c   : > { %v6326_v51 = vpop.eup %6325 }
 0x72d   : > { %2966 = vrot.lane.b32.xlu0 %v6326_v51, %s6476_s29 }
 0x72e   : > { %v6328_v8 = vpop.eup %6327 }
 0x72f   : > { %2964 = vrot.lane.b32.xlu1 %v6328_v8, %s6476_s29 }
 0x79f   : > { %v2967_v38 = vpop.permute.xlu0 %2966 }
 0x7a0   : > { %v2971_v56 = vmul.f32 %v2967_v38, %v2961_v14 }
 0x7a1   : > { %v2965_v35 = vpop.permute.xlu1 %2964 }
 0x7a2   : > { %v7745_v23 = vadd.f32 %v2973_v63, %v2971_v56  ;;  %v2970_v58 = vmul.f32 %v2965_v35, %v2960_v9 }
 0x7a4   : > { %v7747_v54 = vadd.f32 %v2972_v28, %v2970_v58  ;;  %2980 = vrot.lane.b32.xlu0 %v7745_v23, %s6476_s29 }
 0x7a6   : > { %2978 = vrot.lane.b32.xlu1 %v7747_v54, %s6476_s29 }
 0x816   : > { %v2981_v11 = vpop.permute.xlu0 %2980 }
 0x818   : > { %v2979_v45 = vpop.permute.xlu1 %2978 }
 0x819   : > { %5915 = vmatprep.mubr.msk.f32.mxu1 %vm798_vm0, %v2979_v45 }
 0x81a   : > { %5916 = vmatmul.mubr.msk.f32.vlgmr.msra.gmra.mxu1 %vm798_vm0, %v2981_v11 }
 0x81b   : > { %5930 = vmatpush3.msra.mxu1 %v7569_v12  ;;  %5937 = vmatprep.mubr.msk.f32.mxu1 %vm798_vm0, %v2979_v45 }
 0x81c   : > { %5931 = vmatprep.subr.mxu1 %v7597_v21 }
 0x81d   : > { %5932 = vmatpush3.msra.mxu1 %v7597_v21 }
 0x81e   : > { %5933 = vmatprep.subr.mxu1 %v7606_v29 }
 0x81f   : > { %5934 = vmatpush3.msra.mxu1 %v7606_v29 }
 0x820   : > { %5935 = vmatprep.subr.mxu1 %v7613_v40 }
 0x821   : > { %5936 = vmatpush3.msra.mxu1 %v7613_v40 }
 0x822   : > { %5938 = vmatmul.mubr.msk.f32.vlgmr.msra.gmra.mxu1 %vm798_vm0, %v2981_v11  ;;  %5951 = vmatprep.subr.mxu1 %v7767_v27 }
 0x823   : > { %5952 = vmatpush3.msra.mxu1 %v7767_v27 }
 0x824   : > { %5953 = vmatprep.subr.mxu1 %v7775_v36 }
 0x825   : > { %5954 = vmatpush3.msra.mxu1 %v7775_v36 }
 0x826   : > { %5955 = vmatprep.subr.mxu1 %v7784_v19 }
 0x827   : > { %5956 = vmatpush3.msra.mxu1 %v7784_v19 }
 0x828   : > { %5957 = vmatprep.subr.mxu1 %v7791_v46 }
 0x829   : > { %5958 = vmatpush3.msra.mxu1 %v7791_v46 }
 0x82a   : > { %5973 = vmatprep.subr.mxu1 %v7717_v20 }
 0x8da   : > { %v5917_v41 = vpop.f32.mrf.mxu1 }
 0x8db   : > { %v3062_v60 = vadd.f32 %v5917_v41, %v2749_v22 }
 0x8dc   : > { %v3052_v37 = vpop.f32.mrf.mxu1 }
 0x8dd   : > { %v3061_v10 = vadd.f32 %v3052_v37, %v2744_v15  ;;  %v3064_v47 = vmax.f32 %v3062_v60, 0.0 }
 0x8df   : > { %v3063_v44 = vmax.f32 %v3061_v10, 0.0 }
 0x8e1   : > { %5926 = vmatprep.mubr.msk.f32.mxu0 %vm798_vm0, %v3063_v44 }
 0x8e2   : > { %v5939_v16 = vpop.f32.mrf.mxu1  ;;  %5927 = vmatmul.mubr.msk.f32.vlgmr.msra.gmra.mxu0 %vm798_vm0, %v3064_v47 }
 0x8e3   : > { %v3242_v52 = vadd.f32 %v5939_v16, %v7699_v6  ;;  %5941 = vmatpush3.msra.mxu0 %v7717_v20  ;;  %v3228_v4 = vadd.f32 %v5939_v16, %v2603_v39 }
 0x8e4   : > { %v3218_v13 = vpop.f32.mrf.mxu1  ;;  %5942 = vmatprep.subr.mxu0 %v7722_v30 }
 0x8e5   : > { %v3241_v50 = vadd.f32 %v3218_v13, %v7699_v6  ;;  %3247 = vrot.lane.b32.xlu0 %v3242_v52, %s6474_s18  ;;  %5943 = vmatpush3.msra.mxu0 %v7722_v30  ;;  %v3227_v49 = vadd.f32 %v3218_v13, %v2598_v59  ;;  %v5518_v43 = vmul.f32 -1.442695, %v3228_v4 }
 0x8e6   : > { %5944 = vmatprep.subr.mxu0 %v7729_v32 }
 0x8e7   : > { %3245 = vrot.lane.b32.xlu1 %v3241_v50, %s6474_s18  ;;  %5945 = vmatpush3.msra.mxu0 %v7729_v32  ;;  %v5517_v1 = vmul.f32 -1.442695, %v3227_v49  ;;  %6329 = vpow2.f32 %v5518_v43  ;;  %v8346_v49 = vld [vmem:[#allocation7_spill] sm:$0xff] }
 0x8e8   : > { %5946 = vmatprep.subr.mxu0 %v7736_v62 }
 0x8e9   : > { %5947 = vmatpush3.msra.mxu0 %v7736_v62  ;;  %6331 = vpow2.f32 %v5517_v1 }
 0x8ea   : > { %5962 = vmatprep.subr.mxu0 %v7569_v12 }
 0x8f4   : > { %v6330_v51 = vpop.eup %6329 }
 0x8f5   : > { %v3236_v14 = vadd.f32 1.0, %v6330_v51 }
 0x8f6   : > { %v6332_v8 = vpop.eup %6331 }
 0x8f7   : > { %v3235_v38 = vadd.f32 1.0, %v6332_v8  ;;  %6333 = vrcp.f32 %v3236_v14 }
 0x8f9   : > { %6335 = vrcp.f32 %v3235_v38 }
 0x904   : > { %v6334_v63 = vpop.eup %6333 }
 0x905   : > { %v3266_v22 = vsub.f32 1.0, %v6334_v63  ;;  %v3278_v31 = vmul.f32 %v6334_v63, %v7745_v23 }
 0x906   : > { %v6336_v35 = vpop.eup %6335 }
 0x907   : > { %v3265_v60 = vsub.f32 1.0, %v6336_v35  ;;  %v3277_v44 = vmul.f32 %v6336_v35, %v7747_v54 }
 0x957   : > { %v3248_v56 = vpop.permute.xlu0 %3247 }
 0x958   : > { %v3252_v9 = vmul.f32 %v6334_v63, %v3248_v56  ;;  %v2613_v56 = vadd.f32 %v7675_v34, %v7708_v57 }
 0x959   : > { %v3246_v18 = vpop.permute.xlu1 %3245 }
 0x95a   : > { %v3251_v28 = vmul.f32 %v6336_v35, %v3246_v18  ;;  %3257 = vrot.lane.b32.xlu0 %v3252_v9, %s6474_s18  ;;  %v2608_v9 = vadd.f32 %v7708_v57, %v7677_v24 }
 0x95c   : > { %3255 = vrot.lane.b32.xlu1 %v3251_v28, %s6474_s18 }
 0x9a2   : > { %v7861_v23 = vpop.f32.mrf.mxu0 }
 0x9a4   : > { %v7863_v54 = vpop.f32.mrf.mxu0 }
 0x9cc   : > { %v3258_v55 = vpop.permute.xlu0 %3257 }
 0x9cd   : > { %v3262_v58 = vadd.f32 %v3258_v55, %v2603_v39  ;;  %v8345_v39 = vld [vmem:[#allocation6_spill] sm:$0xff] }
 0x9ce   : > { %v3256_v45 = vpop.permute.xlu1 %3255 }
 0x9cf   : > { %6337 = vtanh.f32 %v3262_v58  ;;  %v3261_v11 = vadd.f32 %v3256_v45, %v2598_v59 }
 0x9d1   : > { %6339 = vtanh.f32 %v3261_v11 }
 0x9dc   : > { %v6338_v3 = vpop.eup %6337 }
 0x9dd   : > { %3271 = vrot.lane.b32.xlu0 %v6338_v3, %s6476_s29 }
 0x9de   : > { %v6340_v5 = vpop.eup %6339 }
 0x9df   : > { %3269 = vrot.lane.b32.xlu1 %v6340_v5, %s6476_s29 }
 0xa4f   : > { %v3272_v41 = vpop.permute.xlu0 %3271 }
 0xa50   : > { %v3276_v15 = vmul.f32 %v3272_v41, %v3266_v22 }
 0xa51   : > { %v3270_v37 = vpop.permute.xlu1 %3269 }
 0xa52   : > { %v7832_v10 = vadd.f32 %v3278_v31, %v3276_v15  ;;  %v3275_v47 = vmul.f32 %v3270_v37, %v3265_v60 }
 0xa54   : > { %v7835_v16 = vadd.f32 %v3277_v44, %v3275_v47  ;;  %3285 = vrot.lane.b32.xlu0 %v7832_v10, %s6476_s29 }
 0xa56   : > { %3283 = vrot.lane.b32.xlu1 %v7835_v16, %s6476_s29 }
 0xac6   : > { %v3286_v13 = vpop.permute.xlu0 %3285 }
 0xac8   : > { %v3284_v52 = vpop.permute.xlu1 %3283 }
 0xac9   : > { %5948 = vmatprep.mubr.msk.f32.mxu0 %vm798_vm0, %v3284_v52 }
 0xaca   : > { %5949 = vmatmul.mubr.msk.f32.vlgmr.msra.gmra.mxu0 %vm798_vm0, %v3286_v13 }
 0xacb   : > { %5963 = vmatpush3.msra.mxu0 %v7569_v12  ;;  %5970 = vmatprep.mubr.msk.f32.mxu0 %vm798_vm0, %v3284_v52 }
 0xacc   : > { %5964 = vmatprep.subr.mxu0 %v7597_v21 }
 0xacd   : > { %5965 = vmatpush3.msra.mxu0 %v7597_v21 }
 0xace   : > { %5966 = vmatprep.subr.mxu0 %v7606_v29 }
 0xacf   : > { %5967 = vmatpush3.msra.mxu0 %v7606_v29 }
 0xad0   : > { %5968 = vmatprep.subr.mxu0 %v7613_v40 }
 0xad1   : > { %5969 = vmatpush3.msra.mxu0 %v7613_v40 }
 0xad2   : > { %5971 = vmatmul.mubr.msk.f32.vlgmr.msra.gmra.mxu0 %vm798_vm0, %v3286_v13  ;;  %5984 = vmatprep.subr.mxu0 %v7767_v27 }
 0xad3   : > { %5985 = vmatpush3.msra.mxu0 %v7767_v27 }
 0xad4   : > { %5986 = vmatprep.subr.mxu0 %v7775_v36 }
 0xad5   : > { %5987 = vmatpush3.msra.mxu0 %v7775_v36 }
 0xad6   : > { %5988 = vmatprep.subr.mxu0 %v7784_v19 }
 0xad7   : > { %5989 = vmatpush3.msra.mxu0 %v7784_v19 }
 0xad8   : > { %5990 = vmatprep.subr.mxu0 %v7791_v46 }
 0xad9   : > { %5991 = vmatpush3.msra.mxu0 %v7791_v46 }
 0xada   : > { %6006 = vmatprep.subr.mxu0 %v7717_v20 }
 0xb8a   : > { %v5950_v50 = vpop.f32.mrf.mxu0 }
 0xb8b   : > { %v3367_v59 = vadd.f32 %v5950_v50, %v8345_v39 }
 0xb8c   : > { %v3357_v4 = vpop.f32.mrf.mxu0 }
 0xb8d   : > { %v3366_v43 = vadd.f32 %v3357_v4, %v8346_v49  ;;  %v3369_v51 = vmax.f32 %v3367_v59, 0.0 }
 0xb8f   : > { %v3368_v1 = vmax.f32 %v3366_v43, 0.0 }
 0xb91   : > { %5959 = vmatprep.mubr.msk.f32.mxu1 %vm798_vm0, %v3368_v1 }
 0xb92   : > { %v5972_v8 = vpop.f32.mrf.mxu0  ;;  %5960 = vmatmul.mubr.msk.f32.vlgmr.msra.gmra.mxu1 %vm798_vm0, %v3369_v51 }
 0xb93   : > { %v3541_v14 = vadd.f32 %v5972_v8, %v7699_v6  ;;  %5974 = vmatpush3.msra.mxu1 %v7717_v20  ;;  %v3527_v35 = vadd.f32 %v5972_v8, %v2613_v56 }
 0xb94   : > { %v3517_v38 = vpop.f32.mrf.mxu0  ;;  %5975 = vmatprep.subr.mxu1 %v7722_v30 }
 0xb95   : > { %v3540_v63 = vadd.f32 %v3517_v38, %v7699_v6  ;;  %3546 = vrot.lane.b32.xlu0 %v3541_v14, %s6474_s18  ;;  %5976 = vmatpush3.msra.mxu1 %v7722_v30  ;;  %v3526_v18 = vadd.f32 %v3517_v38, %v2608_v9  ;;  %v5526_v28 = vmul.f32 -1.442695, %v3527_v35 }
 0xb96   : > { %5977 = vmatprep.subr.mxu1 %v7729_v32 }
 0xb97   : > { %3544 = vrot.lane.b32.xlu1 %v3540_v63, %s6474_s18  ;;  %5978 = vmatpush3.msra.mxu1 %v7729_v32  ;;  %v5525_v55 = vmul.f32 -1.442695, %v3526_v18  ;;  %6341 = vpow2.f32 %v5526_v28  ;;  %v8348_v18 = vld [vmem:[#allocation9_spill] sm:$0xff] }
 0xb98   : > { %5979 = vmatprep.subr.mxu1 %v7736_v62 }
 0xb99   : > { %5980 = vmatpush3.msra.mxu1 %v7736_v62  ;;  %6343 = vpow2.f32 %v5525_v55 }
 0xb9a   : > { %5995 = vmatprep.subr.mxu1 %v7569_v12 }
 0xba4   : > { %v6342_v58 = vpop.eup %6341 }
 0xba5   : > { %v3535_v11 = vadd.f32 1.0, %v6342_v58 }
 0xba6   : > { %v6344_v45 = vpop.eup %6343 }
 0xba7   : > { %v3534_v3 = vadd.f32 1.0, %v6344_v45  ;;  %6345 = vrcp.f32 %v3535_v11 }
 0xba9   : > { %6347 = vrcp.f32 %v3534_v3 }
 0xbb4   : > { %v6346_v5 = vpop.eup %6345 }
 0xbb5   : > { %v3565_v13 = vsub.f32 1.0, %v6346_v5  ;;  %v3577_v39 = vmul.f32 %v6346_v5, %v7832_v10 }
 0xbb6   : > { %v6348_v31 = vpop.eup %6347 }
 0xbb7   : > { %v3564_v4 = vsub.f32 1.0, %v6348_v31  ;;  %v3576_v1 = vmul.f32 %v6348_v31, %v7835_v16 }
 0xc07   : > { %v3547_v22 = vpop.permute.xlu0 %3546 }
 0xc08   : > { %v3551_v41 = vmul.f32 %v6346_v5, %v3547_v22  ;;  %v2623_v22 = vadd.f32 %v7679_v48, %v7708_v57 }
 0xc09   : > { %v3545_v34 = vpop.permute.xlu1 %3544 }
 0xc0a   : > { %v3550_v15 = vmul.f32 %v6348_v31, %v3545_v34  ;;  %3556 = vrot.lane.b32.xlu0 %v3551_v41, %s6474_s18  ;;  %v2618_v41 = vadd.f32 %v7708_v57, %v7681_v0 }
 0xc0c   : > { %3554 = vrot.lane.b32.xlu1 %v3550_v15, %s6474_s18 }
 0xc52   : > { %v7919_v10 = vpop.f32.mrf.mxu1 }
 0xc54   : > { %v7921_v16 = vpop.f32.mrf.mxu1 }
 0xc7c   : > { %v3557_v24 = vpop.permute.xlu0 %3556 }
 0xc7d   : > { %v3561_v60 = vadd.f32 %v3557_v24, %v2613_v56  ;;  %v8347_v56 = vld [vmem:[#allocation8_spill] sm:$0xff] }
 0xc7e   : > { %v3555_v37 = vpop.permute.xlu1 %3554 }
 0xc7f   : > { %6349 = vtanh.f32 %v3561_v60  ;;  %v3560_v44 = vadd.f32 %v3555_v37, %v2608_v9 }
 0xc81   : > { %6351 = vtanh.f32 %v3560_v44 }
 0xc8c   : > { %v6350_v47 = vpop.eup %6349 }
 0xc8d   : > { %3570 = vrot.lane.b32.xlu0 %v6350_v47, %s6476_s29 }
 0xc8e   : > { %v6352_v52 = vpop.eup %6351 }
 0xc8f   : > { %3568 = vrot.lane.b32.xlu1 %v6352_v52, %s6476_s29 }
 0xcff   : > { %v3571_v50 = vpop.permute.xlu0 %3570 }
 0xd00   : > { %v3575_v59 = vmul.f32 %v3571_v50, %v3565_v13 }
 0xd01   : > { %v3569_v49 = vpop.permute.xlu1 %3568 }
 0xd02   : > { %v7890_v43 = vadd.f32 %v3577_v39, %v3575_v59  ;;  %v3574_v51 = vmul.f32 %v3569_v49, %v3564_v4 }
 0xd04   : > { %v7893_v8 = vadd.f32 %v3576_v1, %v3574_v51  ;;  %3584 = vrot.lane.b32.xlu0 %v7890_v43, %s6476_s29 }
 0xd06   : > { %3582 = vrot.lane.b32.xlu1 %v7893_v8, %s6476_s29 }
 0xd76   : > { %v3585_v38 = vpop.permute.xlu0 %3584 }
 0xd78   : > { %v3583_v14 = vpop.permute.xlu1 %3582 }
 0xd79   : > { %5981 = vmatprep.mubr.msk.f32.mxu1 %vm798_vm0, %v3583_v14 }
 0xd7a   : > { %5982 = vmatmul.mubr.msk.f32.vlgmr.msra.gmra.mxu1 %vm798_vm0, %v3585_v38 }
 0xd7b   : > { %5996 = vmatpush3.msra.mxu1 %v7569_v12  ;;  %6003 = vmatprep.mubr.msk.f32.mxu1 %vm798_vm0, %v3583_v14 }
 0xd7c   : > { %5997 = vmatprep.subr.mxu1 %v7597_v21 }
 0xd7d   : > { %5998 = vmatpush3.msra.mxu1 %v7597_v21 }
 0xd7e   : > { %5999 = vmatprep.subr.mxu1 %v7606_v29 }
 0xd7f   : > { %6000 = vmatpush3.msra.mxu1 %v7606_v29 }
 0xd80   : > { %6001 = vmatprep.subr.mxu1 %v7613_v40 }
 0xd81   : > { %6002 = vmatpush3.msra.mxu1 %v7613_v40 }
 0xd82   : > { %6004 = vmatmul.mubr.msk.f32.vlgmr.msra.gmra.mxu1 %vm798_vm0, %v3585_v38  ;;  %6017 = vmatprep.subr.mxu1 %v7767_v27 }
 0xd83   : > { %6018 = vmatpush3.msra.mxu1 %v7767_v27 }
 0xd84   : > { %6019 = vmatprep.subr.mxu1 %v7775_v36 }
 0xd85   : > { %6020 = vmatpush3.msra.mxu1 %v7775_v36 }
 0xd86   : > { %6021 = vmatprep.subr.mxu1 %v7784_v19 }
 0xd87   : > { %6022 = vmatpush3.msra.mxu1 %v7784_v19 }
 0xd88   : > { %6023 = vmatprep.subr.mxu1 %v7791_v46 }
 0xd89   : > { %6024 = vmatpush3.msra.mxu1 %v7791_v46 }
 0xd8a   : > { %6039 = vmatprep.subr.mxu1 %v7717_v20 }
 0xe3a   : > { %v5983_v63 = vpop.f32.mrf.mxu1 }
 0xe3b   : > { %v3666_v9 = vadd.f32 %v5983_v63, %v8347_v56 }
 0xe3c   : > { %v3656_v35 = vpop.f32.mrf.mxu1 }
 0xe3d   : > { %v3665_v28 = vadd.f32 %v3656_v35, %v8348_v18  ;;  %v3668_v58 = vmax.f32 %v3666_v9, 0.0 }
 0xe3f   : > { %v3667_v55 = vmax.f32 %v3665_v28, 0.0 }
 0xe41   : > { %5992 = vmatprep.mubr.msk.f32.mxu0 %vm798_vm0, %v3667_v55 }
 0xe42   : > { %v6005_v45 = vpop.f32.mrf.mxu1  ;;  %5993 = vmatmul.mubr.msk.f32.vlgmr.msra.gmra.mxu0 %vm798_vm0, %v3668_v58 }
 0xe43   : > { %v3840_v11 = vadd.f32 %v6005_v45, %v7699_v6  ;;  %6007 = vmatpush3.msra.mxu0 %v7717_v20  ;;  %v3826_v31 = vadd.f32 %v6005_v45, %v2623_v22 }
 0xe44   : > { %v3816_v3 = vpop.f32.mrf.mxu1  ;;  %6008 = vmatprep.subr.mxu0 %v7722_v30 }
 0xe45   : > { %v3839_v5 = vadd.f32 %v3816_v3, %v7699_v6  ;;  %3845 = vrot.lane.b32.xlu0 %v3840_v11, %s6474_s18  ;;  %6009 = vmatpush3.msra.mxu0 %v7722_v30  ;;  %v3825_v34 = vadd.f32 %v3816_v3, %v2618_v41  ;;  %v5534_v15 = vmul.f32 -1.442695, %v3826_v31 }
 0xe46   : > { %6010 = vmatprep.subr.mxu0 %v7729_v32 }
 0xe47   : > { %3843 = vrot.lane.b32.xlu1 %v3839_v5, %s6474_s18  ;;  %6011 = vmatpush3.msra.mxu0 %v7729_v32  ;;  %v5533_v24 = vmul.f32 -1.442695, %v3825_v34  ;;  %6353 = vpow2.f32 %v5534_v15  ;;  %v8350_v5 = vld [vmem:[#allocation11_spill] sm:$0xff] }
 0xe48   : > { %6012 = vmatprep.subr.mxu0 %v7736_v62 }
 0xe49   : > { %6013 = vmatpush3.msra.mxu0 %v7736_v62  ;;  %6355 = vpow2.f32 %v5533_v24 }
 0xe4a   : > { %6028 = vmatprep.subr.mxu0 %v7569_v12 }
 0xe54   : > { %v6354_v60 = vpop.eup %6353 }
 0xe55   : > { %v3834_v44 = vadd.f32 1.0, %v6354_v60 }
 0xe56   : > { %v6356_v37 = vpop.eup %6355 }
 0xe57   : > { %v3833_v47 = vadd.f32 1.0, %v6356_v37  ;;  %6357 = vrcp.f32 %v3834_v44  ;;  %v7999_v37 = vld [vmem:[%s8297_s8 + $0x18] sm:$0xff]  ;;  %v2633_v44 = vadd.f32 %v7683_v33, %v7708_v57 }
 0xe59   : > { %6359 = vrcp.f32 %v3833_v47  ;;  %v2628_v47 = vadd.f32 %v7708_v57, %v7685_v2 }
 0xe64   : > { %v6358_v52 = vpop.eup %6357 }
 0xe65   : > { %v3864_v38 = vsub.f32 1.0, %v6358_v52  ;;  %v3876_v56 = vmul.f32 %v6358_v52, %v7890_v43 }
 0xe66   : > { %v6360_v39 = vpop.eup %6359 }
 0xe67   : > { %v3863_v35 = vsub.f32 1.0, %v6360_v39  ;;  %v3875_v55 = vmul.f32 %v6360_v39, %v7893_v8 }
 0xeb7   : > { %v3846_v13 = vpop.permute.xlu0 %3845 }
 0xeb8   : > { %v3850_v50 = vmul.f32 %v6358_v52, %v3846_v13 }
 0xeb9   : > { %v3844_v48 = vpop.permute.xlu1 %3843 }
 0xeba   : > { %v3849_v59 = vmul.f32 %v6360_v39, %v3844_v48  ;;  %3855 = vrot.lane.b32.xlu0 %v3850_v50, %s6474_s18 }
 0xebc   : > { %3853 = vrot.lane.b32.xlu1 %v3849_v59, %s6474_s18 }
 0xf2c   : > { %v3856_v0 = vpop.permute.xlu0 %3855 }
 0xf2d   : > { %v3860_v4 = vadd.f32 %v3856_v0, %v2623_v22 }
 0xf2e   : > { %v3854_v49 = vpop.permute.xlu1 %3853 }
 0xf2f   : > { %6361 = vtanh.f32 %v3860_v4  ;;  %v3859_v1 = vadd.f32 %v3854_v49, %v2618_v41 }
 0xf31   : > { %6363 = vtanh.f32 %v3859_v1 }
 0xf3c   : > { %v6362_v51 = vpop.eup %6361 }
 0xf3d   : > { %3869 = vrot.lane.b32.xlu0 %v6362_v51, %s6476_s29 }
 0xf3e   : > { %v6364_v14 = vpop.eup %6363 }
 0xf3f   : > { %3867 = vrot.lane.b32.xlu1 %v6364_v14, %s6476_s29 }
 0xfaf   : > { %v3870_v63 = vpop.permute.xlu0 %3869 }
 0xfb0   : > { %v3874_v9 = vmul.f32 %v3870_v63, %v3864_v38 }
 0xfb1   : > { %v3868_v18 = vpop.permute.xlu1 %3867 }
 0xfb2   : > { %v7948_v28 = vadd.f32 %v3876_v56, %v3874_v9  ;;  %v3873_v58 = vmul.f32 %v3868_v18, %v3863_v35 }
 0xfb4   : > { %v7951_v45 = vadd.f32 %v3875_v55, %v3873_v58  ;;  %3883 = vrot.lane.b32.xlu0 %v7948_v28, %s6476_s29 }
 0xfb6   : > { %3881 = vrot.lane.b32.xlu1 %v7951_v45, %s6476_s29 }
0x1026   : > { %v3884_v3 = vpop.permute.xlu0 %3883 }
0x1028   : > { %v3882_v11 = vpop.permute.xlu1 %3881 }
0x1029   : > { %6014 = vmatprep.mubr.msk.f32.mxu0 %vm798_vm0, %v3882_v11 }
0x102a   : > { %6015 = vmatmul.mubr.msk.f32.vlgmr.msra.gmra.mxu0 %vm798_vm0, %v3884_v3 }
0x102b   : > { %6029 = vmatpush3.msra.mxu0 %v7569_v12  ;;  %6036 = vmatprep.mubr.msk.f32.mxu0 %vm798_vm0, %v3882_v11  ;;  %v7977_v12 = vpop.f32.mrf.mxu0 }
0x102c   : > { %6030 = vmatprep.subr.mxu0 %v7597_v21 }
0x102d   : > { %6031 = vmatpush3.msra.mxu0 %v7597_v21  ;;  %v7979_v21 = vpop.f32.mrf.mxu0 }
0x102e   : > { %6032 = vmatprep.subr.mxu0 %v7606_v29 }
0x102f   : > { %6033 = vmatpush3.msra.mxu0 %v7606_v29 }
0x1030   : > { %6034 = vmatprep.subr.mxu0 %v7613_v40 }
0x1031   : > { %6035 = vmatpush3.msra.mxu0 %v7613_v40  ;;  %v8349_v40 = vld [vmem:[#allocation10_spill] sm:$0xff] }
0x1032   : > { %6037 = vmatmul.mubr.msk.f32.vlgmr.msra.gmra.mxu0 %vm798_vm0, %v3884_v3  ;;  %6050 = vmatprep.subr.mxu0 %v7767_v27 }
0x1033   : > { %6051 = vmatpush3.msra.mxu0 %v7767_v27 }
0x1034   : > { %6052 = vmatprep.subr.mxu0 %v7775_v36 }
0x1035   : > { %6053 = vmatpush3.msra.mxu0 %v7775_v36 }
0x1036   : > { %6054 = vmatprep.subr.mxu0 %v7784_v19 }
0x1037   : > { %6055 = vmatpush3.msra.mxu0 %v7784_v19 }
0x1038   : > { %6056 = vmatprep.subr.mxu0 %v7791_v46 }
0x1039   : > { %6057 = vmatpush3.msra.mxu0 %v7791_v46 }
0x103a   : > { %6072 = vmatprep.subr.mxu0 %v7717_v20 }
0x10ea   : > { %v6016_v29 = vpop.f32.mrf.mxu0 }
0x10eb   : > { %v3965_v43 = vadd.f32 %v6016_v29, %v8349_v40 }
0x10ec   : > { %v3955_v8 = vpop.f32.mrf.mxu0 }
0x10ed   : > { %v3964_v22 = vadd.f32 %v3955_v8, %v8350_v5  ;;  %v3967_v31 = vmax.f32 %v3965_v43, 0.0 }
0x10ef   : > { %v3966_v41 = vmax.f32 %v3964_v22, 0.0 }
0x10f1   : > { %6025 = vmatprep.mubr.msk.f32.mxu1 %vm798_vm0, %v3966_v41 }
0x10f2   : > { %v6038_v34 = vpop.f32.mrf.mxu0  ;;  %6026 = vmatmul.mubr.msk.f32.vlgmr.msra.gmra.mxu1 %vm798_vm0, %v3967_v31 }
0x10f3   : > { %v4139_v15 = vadd.f32 %v6038_v34, %v7699_v6  ;;  %6040 = vmatpush3.msra.mxu1 %v7717_v20  ;;  %v4125_v52 = vadd.f32 %v6038_v34, %v2633_v44  ;;  %v8041_v34 = vld [vmem:[%s8297_s8] sm:$0xff] }
0x10f4   : > { %v4115_v24 = vpop.f32.mrf.mxu0  ;;  %6041 = vmatprep.subr.mxu1 %v7722_v30 }
0x10f5   : > { %v4138_v60 = vadd.f32 %v4115_v24, %v7699_v6  ;;  %4144 = vrot.lane.b32.xlu0 %v4139_v15, %s6474_s18  ;;  %6042 = vmatpush3.msra.mxu1 %v7722_v30  ;;  %v4124_v13 = vadd.f32 %v4115_v24, %v2628_v47  ;;  %v5542_v50 = vmul.f32 -1.442695, %v4125_v52 }
0x10f6   : > { %6043 = vmatprep.subr.mxu1 %v7729_v32 }
0x10f7   : > { %4142 = vrot.lane.b32.xlu1 %v4138_v60, %s6474_s18  ;;  %6044 = vmatpush3.msra.mxu1 %v7729_v32  ;;  %v5541_v39 = vmul.f32 -1.442695, %v4124_v13  ;;  %6365 = vpow2.f32 %v5542_v50  ;;  %v8352_v13 = vld [vmem:[#allocation13_spill] sm:$0xff] }
0x10f8   : > { %6045 = vmatprep.subr.mxu1 %v7736_v62 }
0x10f9   : > { %6046 = vmatpush3.msra.mxu1 %v7736_v62  ;;  %6367 = vpow2.f32 %v5541_v39 }
0x10fa   : > { %6061 = vmatprep.subr.mxu1 %v7999_v37 }
0x1104   : > { %v6366_v48 = vpop.eup %6365 }
0x1105   : > { %v4133_v0 = vadd.f32 1.0, %v6366_v48 }
0x1106   : > { %v6368_v59 = vpop.eup %6367 }
0x1107   : > { %v4132_v4 = vadd.f32 1.0, %v6368_v59  ;;  %6369 = vrcp.f32 %v4133_v0 }
0x1109   : > { %6371 = vrcp.f32 %v4132_v4 }
0x1114   : > { %v6370_v49 = vpop.eup %6369 }
0x1115   : > { %v4163_v55 = vsub.f32 1.0, %v6370_v49  ;;  %v4175_v11 = vmul.f32 %v6370_v49, %v7948_v28  ;;  %v8027_v28 = vld [vmem:[%s8297_s8 + $0x10] sm:$0xff] }
0x1116   : > { %v6372_v14 = vpop.eup %6371 }
0x1117   : > { %v4162_v29 = vsub.f32 1.0, %v6372_v14  ;;  %v4174_v8 = vmul.f32 %v6372_v14, %v7951_v45  ;;  %v8034_v45 = vld [vmem:[%s8297_s8 + $0x8] sm:$0xff] }
0x1167   : > { %v4145_v1 = vpop.permute.xlu0 %4144 }
0x1168   : > { %v4149_v51 = vmul.f32 %v6370_v49, %v4145_v1  ;;  %v2638_v1 = vadd.f32 %v7708_v57, %v7689_v25 }
0x1169   : > { %v4143_v33 = vpop.permute.xlu1 %4142 }
0x116a   : > { %v4148_v38 = vmul.f32 %v6372_v14, %v4143_v33  ;;  %4154 = vrot.lane.b32.xlu0 %v4149_v51, %s6474_s18 }
0x116c   : > { %4152 = vrot.lane.b32.xlu1 %v4148_v38, %s6474_s18 }
0x11b2   : > { %v8055_v15 = vpop.f32.mrf.mxu1 }
0x11b4   : > { %v8057_v24 = vpop.f32.mrf.mxu1 }
0x11dc   : > { %v4155_v2 = vpop.permute.xlu0 %4154 }
0x11dd   : > { %v4159_v63 = vadd.f32 %v4155_v2, %v2633_v44  ;;  %v8351_v44 = vld [vmem:[#allocation12_spill] sm:$0xff] }
0x11de   : > { %v4153_v56 = vpop.permute.xlu1 %4152 }
0x11df   : > { %6373 = vtanh.f32 %v4159_v63  ;;  %v4158_v9 = vadd.f32 %v4153_v56, %v2628_v47 }
0x11e1   : > { %6375 = vtanh.f32 %v4158_v9 }
0x11ec   : > { %v6374_v35 = vpop.eup %6373 }
0x11ed   : > { %4168 = vrot.lane.b32.xlu0 %v6374_v35, %s6476_s29 }
0x11ee   : > { %v6376_v18 = vpop.eup %6375 }
0x11ef   : > { %4166 = vrot.lane.b32.xlu1 %v6376_v18, %s6476_s29 }
0x125f   : > { %v4169_v58 = vpop.permute.xlu0 %4168 }
0x1260   : > { %v4173_v3 = vmul.f32 %v4169_v58, %v4163_v55 }
0x1261   : > { %v4167_v40 = vpop.permute.xlu1 %4166 }
0x1262   : > { %v8011_v43 = vadd.f32 %v4175_v11, %v4173_v3  ;;  %v4172_v5 = vmul.f32 %v4167_v40, %v4162_v29 }
0x1264   : > { %v8014_v22 = vadd.f32 %v4174_v8, %v4172_v5  ;;  %4182 = vrot.lane.b32.xlu0 %v8011_v43, %s6476_s29 }
0x1266   : > { %4180 = vrot.lane.b32.xlu1 %v8014_v22, %s6476_s29 }
0x12d6   : > { %v4183_v31 = vpop.permute.xlu0 %4182 }
0x12d8   : > { %v4181_v41 = vpop.permute.xlu1 %4180 }
0x12d9   : > { %6047 = vmatprep.mubr.msk.f32.mxu1 %vm798_vm0, %v4181_v41 }
0x12da   : > { %6048 = vmatmul.mubr.msk.f32.vlgmr.msra.gmra.mxu1 %vm798_vm0, %v4183_v31 }
0x12db   : > { %6062 = vmatpush3.msra.mxu1 %v7999_v37  ;;  %6069 = vmatprep.mubr.msk.f32.mxu1 %vm798_vm0, %v4181_v41 }
0x12dc   : > { %6063 = vmatprep.subr.mxu1 %v8027_v28 }
0x12dd   : > { %6064 = vmatpush3.msra.mxu1 %v8027_v28 }
0x12de   : > { %6065 = vmatprep.subr.mxu1 %v8034_v45 }
0x12df   : > { %6066 = vmatpush3.msra.mxu1 %v8034_v45 }
0x12e0   : > { %6067 = vmatprep.subr.mxu1 %v8041_v34 }
0x12e1   : > { %6068 = vmatpush3.msra.mxu1 %v8041_v34 }
0x12e2   : > { %6070 = vmatmul.mubr.msk.f32.vlgmr.msra.gmra.mxu1 %vm798_vm0, %v4183_v31  ;;  %6083 = vmatprep.subr.mxu1 %v7767_v27 }
0x12e3   : > { %6084 = vmatpush3.msra.mxu1 %v7767_v27 }
0x12e4   : > { %6085 = vmatprep.subr.mxu1 %v7775_v36 }
0x12e5   : > { %6086 = vmatpush3.msra.mxu1 %v7775_v36 }
0x12e6   : > { %6087 = vmatprep.subr.mxu1 %v7784_v19 }
0x12e7   : > { %6088 = vmatpush3.msra.mxu1 %v7784_v19 }
0x12e8   : > { %6089 = vmatprep.subr.mxu1 %v7791_v46 }
0x12e9   : > { %6090 = vmatpush3.msra.mxu1 %v7791_v46 }
0x12ea   : > { %6105 = vmatprep.subr.mxu1 %v7717_v20 }
0x139a   : > { %v6049_v60 = vpop.f32.mrf.mxu1 }
0x139b   : > { %v4264_v47 = vadd.f32 %v6049_v60, %v8351_v44 }
0x139c   : > { %v4254_v52 = vpop.f32.mrf.mxu1 }
0x139d   : > { %v4263_v50 = vadd.f32 %v4254_v52, %v8352_v13  ;;  %v4266_v48 = vmax.f32 %v4264_v47, 0.0 }
0x139f   : > { %v4265_v39 = vmax.f32 %v4263_v50, 0.0 }
0x13a1   : > { %6058 = vmatprep.mubr.msk.f32.mxu0 %vm798_vm0, %v4265_v39  ;;  %v8353_v39 = vld [vmem:[#allocation14_spill] sm:$0xff] }
0x13a2   : > { %v6071_v59 = vpop.f32.mrf.mxu1  ;;  %6059 = vmatmul.mubr.msk.f32.vlgmr.msra.gmra.mxu0 %vm798_vm0, %v4266_v48 }
0x13a3   : > { %v4438_v0 = vadd.f32 %v6071_v59, %v7699_v6  ;;  %6073 = vmatpush3.msra.mxu0 %v7717_v20  ;;  %v2643_v20 = vadd.f32 %v7687_v7, %v7708_v57 }
0x13a4   : > { %v4414_v4 = vpop.f32.mrf.mxu1  ;;  %6074 = vmatprep.subr.mxu0 %v7722_v30 }
0x13a5   : > { %v4437_v49 = vadd.f32 %v4414_v4, %v7699_v6  ;;  %4443 = vrot.lane.b32.xlu0 %v4438_v0, %s6474_s18  ;;  %6075 = vmatpush3.msra.mxu0 %v7722_v30  ;;  %v4424_v51 = vadd.f32 %v6071_v59, %v2643_v20  ;;  %v4423_v30 = vadd.f32 %v4414_v4, %v2638_v1 }
0x13a6   : > { %6076 = vmatprep.subr.mxu0 %v7729_v32 }
0x13a7   : > { %4441 = vrot.lane.b32.xlu1 %v4437_v49, %s6474_s18  ;;  %6077 = vmatpush3.msra.mxu0 %v7729_v32  ;;  %v5550_v14 = vmul.f32 -1.442695, %v4424_v51  ;;  %v5549_v33 = vmul.f32 -1.442695, %v4423_v30  ;;  %v8131_v51 = vld [vmem:[%s8300_s11 + $0x10] sm:$0xff] }
0x13a8   : > { %6078 = vmatprep.subr.mxu0 %v7736_v62 }
0x13a9   : > { %6079 = vmatpush3.msra.mxu0 %v7736_v62  ;;  %6377 = vpow2.f32 %v5550_v14  ;;  %v8140_v14 = vld [vmem:[%s8300_s11 + $0x8] sm:$0xff] }
0x13aa   : > { %6094 = vmatprep.subr.mxu0 %v7999_v37  ;;  %6379 = vpow2.f32 %v5549_v33  ;;  %v8148_v33 = vld [vmem:[%s8300_s11] sm:$0xff] }
0x13b6   : > { %v6378_v38 = vpop.eup %6377 }
0x13b7   : > { %v6380_v32 = vpop.eup %6379  ;;  %v4432_v2 = vadd.f32 1.0, %v6378_v38  ;;  %v8156_v38 = vld [vmem:[%s8296_s7] ss:$0 sm:$0xff] }
0x13b8   : > { %v4431_v63 = vadd.f32 1.0, %v6380_v32  ;;  %v2653_v32 = vadd.f32 %v8156_v38, %v7691_v42 }
0x13b9   : > { %6381 = vrcp.f32 %v4432_v2  ;;  %v2648_v2 = vadd.f32 %v8156_v38, %v7693_v17 }
0x13ba   : > { %6383 = vrcp.f32 %v4431_v63 }
0x13c6   : > { %v6382_v62 = vpop.eup %6381 }
0x13c7   : > { %v6384_v35 = vpop.eup %6383  ;;  %v4462_v29 = vsub.f32 1.0, %v6382_v62  ;;  %v4474_v8 = vmul.f32 %v6382_v62, %v8011_v43  ;;  %v8115_v43 = vld [vmem:[%s8300_s11 + $0x18] sm:$0xff] }
0x13c8   : > { %v4461_v41 = vsub.f32 1.0, %v6384_v35  ;;  %v4473_v44 = vmul.f32 %v6384_v35, %v8014_v22 }
0x1417   : > { %v4444_v56 = vpop.permute.xlu0 %4443 }
0x1418   : > { %v4448_v9 = vmul.f32 %v6382_v62, %v4444_v56 }
0x1419   : > { %v4442_v7 = vpop.permute.xlu1 %4441 }
0x141a   : > { %v4447_v18 = vmul.f32 %v6384_v35, %v4442_v7  ;;  %4453 = vrot.lane.b32.xlu0 %v4448_v9, %s6474_s18 }
0x141c   : > { %4451 = vrot.lane.b32.xlu1 %v4447_v18, %s6474_s18 }
0x148c   : > { %v4454_v25 = vpop.permute.xlu0 %4453 }
0x148d   : > { %v4458_v57 = vadd.f32 %v4454_v25, %v2643_v20 }
0x148e   : > { %v4452_v55 = vpop.permute.xlu1 %4451 }
0x148f   : > { %6385 = vtanh.f32 %v4458_v57  ;;  %v4457_v58 = vadd.f32 %v4452_v55, %v2638_v1 }
0x1491   : > { %6387 = vtanh.f32 %v4457_v58 }
0x149c   : > { %v6386_v11 = vpop.eup %6385 }
0x149d   : > { %4467 = vrot.lane.b32.xlu0 %v6386_v11, %s6476_s29 }
0x149e   : > { %v6388_v3 = vpop.eup %6387 }
0x149f   : > { %4465 = vrot.lane.b32.xlu1 %v6388_v3, %s6476_s29 }
0x150f   : > { %v4468_v40 = vpop.permute.xlu0 %4467 }
0x1510   : > { %v4472_v5 = vmul.f32 %v4468_v40, %v4462_v29 }
0x1511   : > { %v4466_v31 = vpop.permute.xlu1 %4465 }
0x1512   : > { %v8084_v60 = vadd.f32 %v4474_v8, %v4472_v5  ;;  %v4471_v47 = vmul.f32 %v4466_v31, %v4461_v41 }
0x1514   : > { %v8087_v52 = vadd.f32 %v4473_v44, %v4471_v47  ;;  %4481 = vrot.lane.b32.xlu0 %v8084_v60, %s6476_s29 }
0x1516   : > { %4479 = vrot.lane.b32.xlu1 %v8087_v52, %s6476_s29 }
0x1586   : > { %v4482_v50 = vpop.permute.xlu0 %4481 }
0x1588   : > { %v4480_v13 = vpop.permute.xlu1 %4479 }
0x1589   : > { %6080 = vmatprep.mubr.msk.f32.mxu0 %vm798_vm0, %v4480_v13 }
0x158a   : > { %6081 = vmatmul.mubr.msk.f32.vlgmr.msra.gmra.mxu0 %vm798_vm0, %v4482_v50 }
0x158b   : > { %6095 = vmatpush3.msra.mxu0 %v7999_v37  ;;  %6102 = vmatprep.mubr.msk.f32.mxu0 %vm798_vm0, %v4480_v13 }
0x158c   : > { %6096 = vmatprep.subr.mxu0 %v8027_v28 }
0x158d   : > { %6097 = vmatpush3.msra.mxu0 %v8027_v28 }
0x158e   : > { %6098 = vmatprep.subr.mxu0 %v8034_v45 }
0x158f   : > { %6099 = vmatpush3.msra.mxu0 %v8034_v45 }
0x1590   : > { %6100 = vmatprep.subr.mxu0 %v8041_v34 }
0x1591   : > { %6101 = vmatpush3.msra.mxu0 %v8041_v34 }
0x1592   : > { %6103 = vmatmul.mubr.msk.f32.vlgmr.msra.gmra.mxu0 %vm798_vm0, %v4482_v50  ;;  %6116 = vmatprep.subr.mxu0 %v7767_v27 }
0x1593   : > { %6117 = vmatpush3.msra.mxu0 %v7767_v27  ;;  %v8118_v27 = vpop.f32.mrf.mxu0 }
0x1594   : > { %6118 = vmatprep.subr.mxu0 %v7775_v36 }
0x1595   : > { %6119 = vmatpush3.msra.mxu0 %v7775_v36  ;;  %v8120_v22 = vpop.f32.mrf.mxu0 }
0x1596   : > { %6120 = vmatprep.subr.mxu0 %v7784_v19 }
0x1597   : > { %6121 = vmatpush3.msra.mxu0 %v7784_v19  ;;  %v8354_v19 = vld [vmem:[#allocation15_spill] sm:$0xff] }
0x1598   : > { %6122 = vmatprep.subr.mxu0 %v7791_v46 }
0x1599   : > { %6123 = vmatpush3.msra.mxu0 %v7791_v46 }
0x159a   : > { %6138 = vmatprep.subr.mxu0 %v8115_v43 }
0x164a   : > { %v6082_v36 = vpop.f32.mrf.mxu0 }
0x164b   : > { %v4563_v48 = vadd.f32 %v6082_v36, %v8353_v39 }
0x164c   : > { %v4553_v59 = vpop.f32.mrf.mxu0 }
0x164d   : > { %v4562_v0 = vadd.f32 %v4553_v59, %v8354_v19  ;;  %v4565_v49 = vmax.f32 %v4563_v48, 0.0 }
0x164f   : > { %v4564_v4 = vmax.f32 %v4562_v0, 0.0 }
0x1651   : > { %6091 = vmatprep.mubr.msk.f32.mxu1 %vm798_vm0, %v4564_v4 }
0x1652   : > { %v6104_v46 = vpop.f32.mrf.mxu0  ;;  %6092 = vmatmul.mubr.msk.f32.vlgmr.msra.gmra.mxu1 %vm798_vm0, %v4565_v49 }
0x1653   : > { %v4737_v20 = vadd.f32 %v6104_v46, %v7699_v6  ;;  %6106 = vmatpush3.msra.mxu1 %v8115_v43  ;;  %v4723_v63 = vadd.f32 %v6104_v46, %v2653_v32  ;;  %v8355_v46 = vld [vmem:[#allocation16_spill] sm:$0xff] }
0x1654   : > { %v4713_v1 = vpop.f32.mrf.mxu0  ;;  %6107 = vmatprep.subr.mxu1 %v8131_v51 }
0x1655   : > { %v4736_v30 = vadd.f32 %v4713_v1, %v7699_v6  ;;  %4742 = vrot.lane.b32.xlu0 %v4737_v20, %s6474_s18  ;;  %6108 = vmatpush3.msra.mxu1 %v8131_v51  ;;  %v4722_v62 = vadd.f32 %v4713_v1, %v2648_v2  ;;  %v5558_v56 = vmul.f32 -1.442695, %v4723_v63 }
0x1656   : > { %6109 = vmatprep.subr.mxu1 %v8140_v14 }
0x1657   : > { %4740 = vrot.lane.b32.xlu1 %v4736_v30, %s6474_s18  ;;  %6110 = vmatpush3.msra.mxu1 %v8140_v14  ;;  %v5557_v9 = vmul.f32 -1.442695, %v4722_v62  ;;  %6389 = vpow2.f32 %v5558_v56  ;;  %v8356_v30 = vld [vmem:[#allocation17_spill] sm:$0xff] }
0x1658   : > { %6111 = vmatprep.subr.mxu1 %v8148_v33 }
0x1659   : > { %6112 = vmatpush3.msra.mxu1 %v8148_v33  ;;  %6391 = vpow2.f32 %v5557_v9 }
0x165a   : > { %6127 = vmatprep.subr.mxu1 %v7999_v37 }
0x1664   : > { %v6390_v35 = vpop.eup %6389 }
0x1665   : > { %v4731_v18 = vadd.f32 1.0, %v6390_v35 }
0x1666   : > { %v6392_v7 = vpop.eup %6391 }
0x1667   : > { %v4730_v25 = vadd.f32 1.0, %v6392_v7  ;;  %6393 = vrcp.f32 %v4731_v18 }
0x1669   : > { %6395 = vrcp.f32 %v4730_v25 }
0x1674   : > { %v6394_v57 = vpop.eup %6393 }
0x1675   : > { %v4761_v31 = vsub.f32 1.0, %v6394_v57  ;;  %v4773_v47 = vmul.f32 %v6394_v57, %v8084_v60 }
0x1676   : > { %v6396_v11 = vpop.eup %6395 }
0x1677   : > { %v4760_v50 = vsub.f32 1.0, %v6396_v11  ;;  %v4772_v48 = vmul.f32 %v6396_v11, %v8087_v52 }
0x16c7   : > { %v4743_v55 = vpop.permute.xlu0 %4742 }
0x16c8   : > { %v4747_v58 = vmul.f32 %v6394_v57, %v4743_v55 }
0x16c9   : > { %v4741_v42 = vpop.permute.xlu1 %4740 }
0x16ca   : > { %v4746_v3 = vmul.f32 %v6396_v11, %v4741_v42  ;;  %4752 = vrot.lane.b32.xlu0 %v4747_v58, %s6474_s18 }
0x16cc   : > { %4750 = vrot.lane.b32.xlu1 %v4746_v3, %s6474_s18 }
0x1712   : > { %v8199_v60 = vpop.f32.mrf.mxu1 }
0x1714   : > { %v8201_v52 = vpop.f32.mrf.mxu1 }
0x173c   : > { %v4753_v17 = vpop.permute.xlu0 %4752 }
0x173d   : > { %v4757_v29 = vadd.f32 %v4753_v17, %v2653_v32 }
0x173e   : > { %v4751_v40 = vpop.permute.xlu1 %4750 }
0x173f   : > { %6397 = vtanh.f32 %v4757_v29  ;;  %v4756_v8 = vadd.f32 %v4751_v40, %v2648_v2 }
0x1741   : > { %6399 = vtanh.f32 %v4756_v8 }
0x174c   : > { %v6398_v5 = vpop.eup %6397 }
0x174d   : > { %4766 = vrot.lane.b32.xlu0 %v6398_v5, %s6476_s29 }
0x174e   : > { %v6400_v41 = vpop.eup %6399 }
0x174f   : > { %4764 = vrot.lane.b32.xlu1 %v6400_v41, %s6476_s29 }
0x17bf   : > { %v4767_v44 = vpop.permute.xlu0 %4766 }
0x17c0   : > { %v4771_v13 = vmul.f32 %v4767_v44, %v4761_v31 }
0x17c1   : > { %v4765_v36 = vpop.permute.xlu1 %4764 }
0x17c2   : > { %v8167_v39 = vadd.f32 %v4773_v47, %v4771_v13  ;;  %v4770_v59 = vmul.f32 %v4765_v36, %v4760_v50 }
0x17c4   : > { %v8170_v19 = vadd.f32 %v4772_v48, %v4770_v59  ;;  %4780 = vrot.lane.b32.xlu0 %v8167_v39, %s6476_s29 }
0x17c6   : > { %4778 = vrot.lane.b32.xlu1 %v8170_v19, %s6476_s29 }
0x1836   : > { %v4781_v4 = vpop.permute.xlu0 %4780 }
0x1838   : > { %v4779_v0 = vpop.permute.xlu1 %4778 }
0x1839   : > { %6113 = vmatprep.mubr.msk.f32.mxu1 %vm798_vm0, %v4779_v0 }
0x183a   : > { %6114 = vmatmul.mubr.msk.f32.vlgmr.msra.gmra.mxu1 %vm798_vm0, %v4781_v4 }
0x183b   : > { %6128 = vmatpush3.msra.mxu1 %v7999_v37  ;;  %6135 = vmatprep.mubr.msk.f32.mxu1 %vm798_vm0, %v4779_v0  ;;  %v6439_v37 = vld [vmem:[%s8302_s13 + $0x18] sm:$0xff] }
0x183c   : > { %6129 = vmatprep.subr.mxu1 %v8027_v28 }
0x183d   : > { %6130 = vmatpush3.msra.mxu1 %v8027_v28  ;;  %v6440_v28 = vld [vmem:[%s8302_s13 + $0x10] sm:$0xff] }
0x183e   : > { %6131 = vmatprep.subr.mxu1 %v8034_v45 }
0x183f   : > { %6132 = vmatpush3.msra.mxu1 %v8034_v45  ;;  %v6441_v45 = vld [vmem:[%s8302_s13 + $0x8] sm:$0xff] }
0x1840   : > { %6133 = vmatprep.subr.mxu1 %v8041_v34 }
0x1841   : > { %6134 = vmatpush3.msra.mxu1 %v8041_v34  ;;  %v6442_v34 = vld [vmem:[%s8302_s13] sm:$0xff] }
0x1842   : > { %6136 = vmatmul.mubr.msk.f32.vlgmr.msra.gmra.mxu1 %vm798_vm0, %v4781_v4  ;;  %6149 = vmatprep.subr.mxu1 %v6439_v37  ;;  %v8232_v4 = vld [vmem:[%s8303_s14] ss:$0 sm:$0xff] }
0x1843   : > { %6150 = vmatpush3.msra.mxu1 %v6439_v37  ;;  %v3448_v37 = vadd.f32 %v7919_v10, %v8232_v4  ;;  %v4041_v10 = vadd.f32 %v8232_v4, %v8057_v24 }
0x1844   : > { %6151 = vmatprep.subr.mxu1 %v6440_v28 }
0x1845   : > { %6152 = vmatpush3.msra.mxu1 %v6440_v28  ;;  %v3742_v28 = vadd.f32 %v8232_v4, %v7979_v21 }
0x1846   : > { %6153 = vmatprep.subr.mxu1 %v6441_v45 }
0x1847   : > { %6154 = vmatpush3.msra.mxu1 %v6441_v45  ;;  %v4046_v45 = vadd.f32 %v8055_v15, %v8232_v4  ;;  %v4639_v15 = vadd.f32 %v8232_v4, %v8201_v52  ;;  %v6443_v52 = vld [vmem:[%s8301_s12] ss:$0 sm:$0xff] }
0x1848   : > { %6155 = vmatprep.subr.mxu1 %v6442_v34 }
0x1849   : > { %6156 = vmatpush3.msra.mxu1 %v6442_v34  ;;  %v4644_v34 = vadd.f32 %v8199_v60, %v8232_v4 }
0x18fa   : > { %v6115_v49 = vpop.f32.mrf.mxu1 }
0x18fb   : > { %v4862_v20 = vadd.f32 %v6115_v49, %v8355_v46 }
0x18fc   : > { %v4852_v1 = vpop.f32.mrf.mxu1 }
0x18fd   : > { %v4861_v32 = vadd.f32 %v4852_v1, %v8356_v30  ;;  %v4864_v63 = vmax.f32 %v4862_v20, 0.0  ;;  %v2814_v20 = vadd.f32 %v6443_v52, %v7802_v61  ;;  %v8357_v1 = vld [vmem:[#allocation18_spill] sm:$0xff] }
0x18ff   : > { %v4863_v2 = vmax.f32 %v4861_v32, 0.0 }
0x1901   : > { %6124 = vmatprep.mubr.msk.f32.mxu0 %vm798_vm0, %v4863_v2 }
0x1902   : > { %v6137_v62 = vpop.f32.mrf.mxu1  ;;  %6125 = vmatmul.mubr.msk.f32.vlgmr.msra.gmra.mxu0 %vm798_vm0, %v4864_v63 }
0x1903   : > { %v5036_v56 = vadd.f32 %v6137_v62, %v7699_v6  ;;  %6139 = vmatpush3.msra.mxu0 %v8115_v43  ;;  %v2663_v43 = vadd.f32 %v8156_v38, %v7695_v26 }
0x1904   : > { %v5012_v9 = vpop.f32.mrf.mxu1  ;;  %6140 = vmatprep.subr.mxu0 %v8131_v51 }
0x1905   : > { %v5035_v35 = vadd.f32 %v5012_v9, %v7699_v6  ;;  %5041 = vrot.lane.b32.xlu0 %v5036_v56, %s6474_s18  ;;  %6141 = vmatpush3.msra.mxu0 %v8131_v51  ;;  %v2658_v6 = vadd.f32 %v8156_v38, %v7697_v53  ;;  %v5022_v7 = vadd.f32 %v6137_v62, %v2663_v43 }
0x1906   : > { %6142 = vmatprep.subr.mxu0 %v8140_v14 }
0x1907   : > { %5039 = vrot.lane.b32.xlu1 %v5035_v35, %s6474_s18  ;;  %6143 = vmatpush3.msra.mxu0 %v8140_v14  ;;  %v5021_v18 = vadd.f32 %v5012_v9, %v2658_v6  ;;  %v5566_v25 = vmul.f32 -1.442695, %v5022_v7 }
0x1908   : > { %6144 = vmatprep.subr.mxu0 %v8148_v33 }
0x1909   : > { %6145 = vmatpush3.msra.mxu0 %v8148_v33  ;;  %v5565_v51 = vmul.f32 -1.442695, %v5021_v18  ;;  %6401 = vpow2.f32 %v5566_v25 }
0x190b   : > { %6403 = vpow2.f32 %v5565_v51 }
0x1916   : > { %v6402_v57 = vpop.eup %6401 }
0x1917   : > { %v5030_v58 = vadd.f32 1.0, %v6402_v57 }
0x1918   : > { %v6404_v55 = vpop.eup %6403 }
0x1919   : > { %v5029_v14 = vadd.f32 1.0, %v6404_v55  ;;  %6405 = vrcp.f32 %v5030_v58 }
0x191b   : > { %6407 = vrcp.f32 %v5029_v14 }
0x1926   : > { %v6406_v11 = vpop.eup %6405 }
0x1927   : > { %v5060_v41 = vsub.f32 1.0, %v6406_v11  ;;  %v5072_v44 = vmul.f32 %v6406_v11, %v8167_v39  ;;  %v3443_v39 = vadd.f32 %v8232_v4, %v7921_v16  ;;  %v4345_v16 = vadd.f32 %v8118_v27, %v8232_v4 }
0x1928   : > { %v6408_v3 = vpop.eup %6407 }
0x1929   : > { %v5059_v13 = vsub.f32 1.0, %v6408_v3  ;;  %v5071_v48 = vmul.f32 %v6408_v3, %v8170_v19  ;;  %v3747_v19 = vadd.f32 %v7977_v12, %v8232_v4  ;;  %v4340_v12 = vadd.f32 %v8232_v4, %v8120_v22 }
0x1977   : > { %v5042_v33 = vpop.permute.xlu0 %5041 }
0x1978   : > { %v5046_v42 = vmul.f32 %v6406_v11, %v5042_v33  ;;  %v3144_v11 = vadd.f32 %v8232_v4, %v7863_v54  ;;  %v3149_v33 = vadd.f32 %v7861_v23, %v8232_v4 }
0x1979   : > { %v5040_v26 = vpop.permute.xlu1 %5039 }
0x197a   : > { %v5045_v17 = vmul.f32 %v6408_v3, %v5040_v26  ;;  %5051 = vrot.lane.b32.xlu0 %v5046_v42, %s6474_s18 }
0x197c   : > { %5049 = vrot.lane.b32.xlu1 %v5045_v17, %s6474_s18  ;;  %s6483_s18 = smov 56  }
0x19c2   : > { %v6126_v21 = vpop.f32.mrf.mxu0 }
0x19c3   : > { %v4943_v49 = vadd.f32 %v6126_v21, %v8232_v4 }
0x19c4   : > { %v4937_v24 = vpop.f32.mrf.mxu0 }
0x19c5   : > { %v4938_v27 = vadd.f32 %v8232_v4, %v4937_v24 }
0x19ec   : > { %v5052_v53 = vpop.permute.xlu0 %5051 }
0x19ed   : > { %v5056_v38 = vadd.f32 %v5052_v53, %v2663_v43 }
0x19ee   : > { %v5050_v29 = vpop.permute.xlu1 %5049 }
0x19ef   : > { %6409 = vtanh.f32 %v5056_v38  ;;  %v5055_v40 = vadd.f32 %v5050_v29, %v2658_v6 }
0x19f1   : > { %6411 = vtanh.f32 %v5055_v40 }
0x19fc   : > { %v6410_v8 = vpop.eup %6409 }
0x19fd   : > { %5065 = vrot.lane.b32.xlu0 %v6410_v8, %s6476_s29 }
0x19fe   : > { %v6412_v5 = vpop.eup %6411 }
0x19ff   : > { %5063 = vrot.lane.b32.xlu1 %v6412_v5, %s6476_s29 }
0x1a6f   : > { %v5066_v31 = vpop.permute.xlu0 %5065 }
0x1a70   : > { %v5070_v47 = vmul.f32 %v5066_v31, %v5060_v41 }
0x1a71   : > { %v5064_v50 = vpop.permute.xlu1 %5063 }
0x1a72   : > { %v5074_v36 = vadd.f32 %v5072_v44, %v5070_v47  ;;  %v5069_v59 = vmul.f32 %v5064_v50, %v5059_v13 }
0x1a74   : > { %v5073_v0 = vadd.f32 %v5071_v48, %v5069_v59  ;;  %5079 = vrot.lane.b32.xlu0 %v5074_v36, %s6476_s29 }
0x1a76   : > { %5077 = vrot.lane.b32.xlu1 %v5073_v0, %s6476_s29  ;;  %s6479_s29 = smov 24  }
0x1a78   : > { %5249 = vrot.lane.b32.xlu0 %v3448_v37, %s6477_s27 }
0x1a7a   : > { %5247 = vrot.lane.b32.xlu1 %v3443_v39, %s6477_s27 }
0x1a7c   : > { %5257 = vrot.lane.b32.xlu0 %v3747_v19, %s6478_s28 }
0x1a7e   : > { %5255 = vrot.lane.b32.xlu1 %v3742_v28, %s6478_s28  ;;  %s716_s28 = scalar_lea.vmem %s8304_s15, %s5418_s20 }
0x1a80   : > { %5265 = vrot.lane.b32.xlu0 %v4046_v45, %s6479_s29 }
0x1a82   : > { %5263 = vrot.lane.b32.xlu1 %v4041_v10, %s6479_s29 }
0x1a84   : > { %5273 = vrot.lane.b32.xlu0 %v4345_v16, %s6480_s30 }
0x1a86   : > { %5271 = vrot.lane.b32.xlu1 %v4340_v12, %s6480_s30 }
0x1a88   : > { %5281 = vrot.lane.b32.xlu0 %v4644_v34, %s6481_s16 }
0x1a8a   : > { %5279 = vrot.lane.b32.xlu1 %v4639_v15, %s6481_s16 }
0x1a8c   : > { %5289 = vrot.lane.b32.xlu0 %v4943_v49, %s6482_s24 }
0x1a8e   : > { %5287 = vrot.lane.b32.xlu1 %v4938_v27, %s6482_s24 }
0x1ae6   : > { %v5080_v46 = vpop.permute.xlu0 %5079 }
0x1ae8   : > { %v5078_v22 = vpop.permute.xlu1 %5077 }
0x1ae9   : > { %6146 = vmatprep.mubr.msk.f32.mxu0 %vm798_vm0, %v5078_v22 }
0x1aea   : > { %6147 = vmatmul.mubr.msk.f32.vlgmr.msra.gmra.mxu0 %vm798_vm0, %v5080_v46  ;;  %v5250_v61 = vpop.permute.xlu0 %5249 }
0x1aeb   : > { %v5303_v26 = vsel %vm5301_vm6, %v3149_v33, %v5250_v61 }
0x1aec   : > { %v5248_v6 = vpop.permute.xlu1 %5247 }
0x1aed   : > { %v5302_v42 = vsel %vm5301_vm6, %v3144_v11, %v5248_v6 }
0x1aee   : > { %v5258_v7 = vpop.permute.xlu0 %5257 }
0x1aef   : > { %v5306_v38 = vsel %vm5304_vm1, %v5303_v26, %v5258_v7 }
0x1af0   : > { %v5256_v18 = vpop.permute.xlu1 %5255 }
0x1af1   : > { %v5305_v17 = vsel %vm5304_vm1, %v5302_v42, %v5256_v18 }
0x1af2   : > { %v5266_v25 = vpop.permute.xlu0 %5265 }
0x1af3   : > { %v5309_v40 = vsel %vm5307_vm2, %v5306_v38, %v5266_v25 }
0x1af4   : > { %v5264_v51 = vpop.permute.xlu1 %5263 }
0x1af5   : > { %v5308_v29 = vsel %vm5307_vm2, %v5305_v17, %v5264_v51 }
0x1af6   : > { %v5274_v57 = vpop.permute.xlu0 %5273 }
0x1af7   : > { %v5311_v54 = vsel %vm798_vm0, %v5309_v40, %v5274_v57 }
0x1af8   : > { %v5272_v55 = vpop.permute.xlu1 %5271 }
0x1af9   : > { %v5310_v8 = vsel %vm798_vm0, %v5308_v29, %v5272_v55 }
0x1afa   : > { %v5282_v58 = vpop.permute.xlu0 %5281 }
0x1afb   : > { %v5314_v41 = vsel %vm5312_vm3, %v5311_v54, %v5282_v58 }
0x1afc   : > { %v5280_v14 = vpop.permute.xlu1 %5279 }
0x1afd   : > { %v5313_v5 = vsel %vm5312_vm3, %v5310_v8, %v5280_v14 }
0x1afe   : > { %v5290_v3 = vpop.permute.xlu0 %5289 }
0x1aff   : > { %v5317_v47 = vsel %vm5315_vm4, %v5314_v41, %v5290_v3 }
0x1b00   : > { %v5288_v53 = vpop.permute.xlu1 %5287 }
0x1b01   : > { %v5316_v31 = vsel %vm5315_vm4, %v5313_v5, %v5288_v53 }
0x1baa   : > { %v6148_v60 = vpop.f32.mrf.mxu0 }
0x1bab   : > { %v5161_v30 = vadd.f32 %v6148_v60, %v8357_v1 }
0x1bac   : > { %v5151_v32 = vpop.f32.mrf.mxu0 }
0x1bad   : > { %v5160_v2 = vadd.f32 %v5151_v32, %v2814_v20  ;;  %v5163_v62 = vmax.f32 %v5161_v30, 0.0 }
0x1baf   : > { %v5162_v63 = vmax.f32 %v5160_v2, 0.0 }
0x1bb1   : > { %6157 = vmatprep.mubr.msk.f32.mxu1 %vm798_vm0, %v5162_v63 }
0x1bb2   : > { %6158 = vmatmul.mubr.msk.f32.vlgmr.msra.gmra.mxu1 %vm798_vm0, %v5163_v62 }
0x1c72   : > { %v6159_v56 = vpop.f32.mrf.mxu1 }
0x1c73   : > { %v5242_v9 = vadd.f32 %v6159_v56, %v8232_v4 }
0x1c74   : > { %v5236_v35 = vpop.f32.mrf.mxu1 }
0x1c75   : > { %v5237_v43 = vadd.f32 %v8232_v4, %v5236_v35  ;;  %5297 = vrot.lane.b32.xlu0 %v5242_v9, %s6483_s18 }
0x1c77   : > { %5295 = vrot.lane.b32.xlu1 %v5237_v43, %s6483_s18 }
0x1ce7   : > { %v5298_v23 = vpop.permute.xlu0 %5297 }
0x1ce8   : > { %v5320_v50 = vsel %vm5318_vm5, %v5317_v47, %v5298_v23 }
0x1ce9   : > { %v5296_v44 = vpop.permute.xlu1 %5295  ;;  %5323 = vst.msk [vmem:[%s716_s28 + $0x8] sm:$0xff] %vm5321_vm7, %v5320_v50 }
0x1cea   : > { %v5319_v13 = vsel %vm5318_vm5, %v5316_v31, %v5296_v44 }
0x1ceb   : > { %5322 = vst.msk [vmem:[%s716_s28] sm:$0xff] %vm5321_vm7, %v5319_v13 }
0x1cec PF: > { %p22_p9 = scmp.ge.s32.totalorder %s6581_s22, 4   ;;  %s8358_s18 = smov %s6462_s19 }
0x1ced   : > { %s8359_s19 = smov %s6590_s25  ;;  %s8360_s20 = smov %s6581_s22 }
0x1cee   :  { %24 = sbr.rel (!%p22_p9) target bundleno = 2 (0x2), region = 202 }

</bundles_post_ra>
